<compile_context>
chip_gen: v7x
topology: tpu7x:2x2x1
jax: 0.10.0
libtpu: 0.0.40
codegen_flags: <defaults>
</compile_context>

<pallas_src>
import functools

import jax
import jax.numpy as jnp
from jax.experimental import pallas as pl
from jax.experimental.pallas import tpu as pltpu

LN_EPS = 1e-5  # PyTorch nn.LayerNorm default


def _round_up(n, m):
    return ((n + m - 1) // m) * m


def _vmem_cap_bytes():
    """Physical VMEM capacity (64 MiB on v7x, 128 MiB on v5e/v6e), with a safe fallback."""
    try:
        return int(pltpu.get_tpu_info().vmem_capacity_bytes)
    except Exception:
        return 64 * 2 ** 20


def _fused_blocks_kernel(x_ref, w1_ref, b1_ref, w2_ref, vecs_ref, o_ref, h_ref, acc_ref):
    """One (batch_tile, layer, h_chunk) grid step.

    grid = (num_batch_tiles, depth, H // tile_h); depth and the H-chunk axis are
    "arbitrary" (innermost).  The activation is carried across depth in the VMEM scratch
    `h_ref`; the second GEMM accumulates over H chunks into `acc_ref`; per-layer weight
    chunks stream in (auto double-buffered) indexed by the (d, k) grid position.
    """
    d = pl.program_id(1)
    k = pl.program_id(2)
    nk = pl.num_programs(2)

    @pl.when(jnp.logical_and(d == 0, k == 0))
    def _init_carry():
        h_ref[...] = x_ref[...]

    @pl.when(k == 0)
    def _init_acc():
        acc_ref[...] = jnp.zeros_like(acc_ref)

    h = h_ref[...]                  # (tile_b, D) f32 activation carry
    cdt = w1_ref.dtype              # matmul operand dtype (bf16 default, or f32)

    # Linear(D, 4D) chunk + ReLU  (MXU, f32 accumulation): (tile_b, D) x (D, tile_h)
    y = jnp.dot(h.astype(cdt), w1_ref[...], preferred_element_type=jnp.float32)
    y = jnp.maximum(y + b1_ref[...], 0.0)

    # Linear(4D, D) chunk, accumulated over H chunks: (tile_b, tile_h) x (tile_h, D)
    acc_ref[...] += jnp.dot(y.astype(cdt), w2_ref[...], preferred_element_type=jnp.float32)

    @pl.when(k == nk - 1)
    def _epilogue():
        vecs = vecs_ref[...]        # (3, D): [b2; gamma; beta]
        b2, gamma, beta = vecs[0:1], vecs[1:2], vecs[2:3]

        y2 = acc_ref[...] + b2

        # LayerNorm (biased variance, like torch.nn.LayerNorm), one-pass stats in f32.
        mean = jnp.mean(y2, axis=-1, keepdims=True)
        msq = jnp.mean(y2 * y2, axis=-1, keepdims=True)
        var = jnp.maximum(msq - mean * mean, 0.0)
        scale = gamma * jax.lax.rsqrt(var + LN_EPS)
        y2 = y2 * scale + (beta - mean * scale)

        # h = h * sigmoid(h); h = h + tanh(h)
        y2 = y2 * jax.nn.sigmoid(y2)
        y2 = y2 + jnp.tanh(y2)

        h_ref[...] = y2

        @pl.when(d == pl.num_programs(1) - 1)
        def _finalize():
            # Final residual: original x tile is resident across the whole depth sweep.
            o_ref[...] = y2 + x_ref[...]


def pack_params(params, compute_dtype=jnp.bfloat16):
    """Stack per-layer params along a leading depth axis.

    Weights are stored in `compute_dtype` (bf16 default: fast MXU path + half the DMA
    bytes); biases / LayerNorm vectors stay f32.  b2/gamma/beta are packed into one
    (L, 3, D) array to cut per-step DMA streams.
    """
    w1 = jnp.stack([p[0] for p in params]).astype(compute_dtype)   # (L, D, H)
    b1 = jnp.stack([p[1] for p in params]).astype(jnp.float32)     # (L, 1, H)
    w2 = jnp.stack([p[2] for p in params]).astype(compute_dtype)   # (L, H, D)
    vecs = jnp.stack(                                              # (L, 3, D)
        [jnp.concatenate([p[3], p[4], p[5]], axis=0) for p in params]
    ).astype(jnp.float32)
    return w1, b1, w2, vecs


@functools.partial(jax.jit, static_argnames=("tile_b", "tile_h"))
def large_model_forward(x, packed, *, tile_b=512, tile_h=512):
    w1, b1, w2, vecs = packed
    L, D, H = w1.shape
    B = x.shape[0]

    # Batch tile: multiple of 8, no bigger than the (8-rounded) batch.
    tile_b = _round_up(min(tile_b, _round_up(B, 8)), 8)
    B_pad = _round_up(B, tile_b)
    x_pad = x if B_pad == B else jnp.pad(x, ((0, B_pad - B), (0, 0)))
    nb = B_pad // tile_b

    # Hidden-dim tile: must divide H (H = 4*D, so 512 divides it for lane-aligned D).
    tile_h = min(tile_h, H)
    if H % tile_h != 0:
        tile_h = H  # fall back to un-tiled H for odd sizes
    kh = H // tile_h

    grid = (nb, L, kh)

    # Advisory cost estimate for XLA's scheduler.
    flops = 2 * 2 * B_pad * D * H * L                     # two GEMMs per layer
    transcendentals = 3 * B_pad * D * L                   # sigmoid + tanh + rsqrt
    param_bytes = sum(int(a.size) * a.dtype.itemsize for a in (w1, b1, w2, vecs))
    bytes_accessed = param_bytes * nb + 2 * B_pad * D * 4  # weights re-streamed per batch tile
    cost = pl.CostEstimate(flops=int(flops),
                           transcendentals=int(transcendentals),
                           bytes_accessed=int(bytes_accessed))

    # VMEM budget: double-buffered weight chunks + tiles + carry + accumulator + MLP chunk.
    w_bytes = jnp.dtype(w1.dtype).itemsize
    needed = (2 * 2 * D * tile_h * w_bytes          # w1 + w2 chunks, double-buffered
              + 2 * tile_h * 4 + 2 * 3 * D * 4      # b1 chunk + (b2,gamma,beta), double-buffered
              + 6 * tile_b * D * 4                  # x(2) + out(2) + carry + accumulator
              + 2 * tile_b * tile_h * 4)            # ReLU intermediate headroom
    cap = _vmem_cap_bytes()                          # 64 MiB on v7x, 128 MiB on v5e/v6e
    vmem_limit = int(min(max(cap - 8 * 2 ** 20, 32 * 2 ** 20),
                         max(48 * 2 ** 20, 2 * needed)))

    out = pl.pallas_call(
        _fused_blocks_kernel,
        out_shape=jax.ShapeDtypeStruct((B_pad, D), jnp.float32),
        grid_spec=pltpu.PrefetchScalarGridSpec(
            num_scalar_prefetch=0,
            grid=grid,
            in_specs=[
                pl.BlockSpec((tile_b, D), lambda i, d, k: (i, 0)),          # x tile (resident)
                pl.BlockSpec((None, D, tile_h), lambda i, d, k: (d, 0, k)),  # w1[d] H-chunk
                pl.BlockSpec((None, 1, tile_h), lambda i, d, k: (d, 0, k)),  # b1[d] H-chunk
                pl.BlockSpec((None, tile_h, D), lambda i, d, k: (d, k, 0)),  # w2[d] H-chunk
                pl.BlockSpec((None, 3, D), lambda i, d, k: (d, 0, 0)),       # [b2; gamma; beta][d]
            ],
            out_specs=pl.BlockSpec((tile_b, D), lambda i, d, k: (i, 0)),
            scratch_shapes=[
                pltpu.VMEM((tile_b, D), jnp.float32),   # activation carry across depth
                pltpu.VMEM((tile_b, D), jnp.float32),   # second-GEMM accumulator over H chunks
            ],
        ),
        compiler_params=pltpu.CompilerParams(
            dimension_semantics=("parallel", "arbitrary", "arbitrary"),
            vmem_limit_bytes=vmem_limit,
        ),
        cost_estimate=cost,
    )(x_pad, w1, b1, w2, vecs)

    return out if B_pad == B else out[:B]


def init_params(key, size, depth):
    """Deterministic synthetic parameters (shapes match the PyTorch module)."""
    params = []
    hidden = size * 4
    for _ in range(depth):
        k1, k2, k3, k4, key = jax.random.split(key, 5)
        scale1 = 1.0 / jnp.sqrt(size)
        scale2 = 1.0 / jnp.sqrt(hidden)
        w1 = jax.random.uniform(k1, (size, hidden), jnp.float32, -scale1, scale1)
        b1 = jax.random.uniform(k2, (1, hidden), jnp.float32, -scale1, scale1)
        w2 = jax.random.uniform(k3, (hidden, size), jnp.float32, -scale2, scale2)
        b2 = jax.random.uniform(k4, (1, size), jnp.float32, -scale2, scale2)
        gamma = jnp.ones((1, size), jnp.float32)
        beta = jnp.zeros((1, size), jnp.float32)
        params.append((w1, b1, w2, b2, gamma, beta))
    return params


def _reference_forward(x, packed):
    """Pure-JAX reference with the same operand-dtype policy as the kernel."""
    w1, b1, w2, vecs = packed
    cdt = w1.dtype
    h = x
    for l in range(w1.shape[0]):
        y = jnp.dot(h.astype(cdt), w1[l], preferred_element_type=jnp.float32) + b1[l]
        y = jnp.maximum(y, 0.0)
        y = jnp.dot(y.astype(cdt), w2[l], preferred_element_type=jnp.float32) + vecs[l, 0:1]
        mean = y.mean(-1, keepdims=True)
        var = ((y - mean) ** 2).mean(-1, keepdims=True)
        y = (y - mean) * jax.lax.rsqrt(var + LN_EPS) * vecs[l, 1:2] + vecs[l, 2:3]
        y = y * jax.nn.sigmoid(y)
        h = y + jnp.tanh(y)
    return h + x


if __name__ == "__main__":
    # Small shapes consistent with the module (module default is size=1024, depth=16).
    # D=256 is a multiple of 256 (full MXU fill on v6e/v7x); hidden = 4*D = 1024.
    SIZE = 256
    DEPTH = 4
    BATCH = 256     # 2 batch tiles -> even tile count for v7x's two TensorCores
    TILE_B = 128
    TILE_H = 512    # 2 H chunks per layer exercises the accumulator path

    key = jax.random.PRNGKey(0)
    kx, kp = jax.random.split(key)
    x = jax.random.normal(kx, (BATCH, SIZE), jnp.float32)
    params = init_params(kp, SIZE, DEPTH)

    # bf16 operand path (default: fast MXU + half the weight DMA; f32 accumulation/LN).
    packed_bf16 = pack_params(params)  # compute_dtype defaults to bf16
    out_bf16 = jax.block_until_ready(
        large_model_forward(x, packed_bf16, tile_b=TILE_B, tile_h=TILE_H))
    ref_bf16 = _reference_forward(x, packed_bf16)
    assert out_bf16.shape == (BATCH, SIZE)
    assert jnp.allclose(out_bf16, ref_bf16, atol=2e-2, rtol=2e-2), "bf16 mismatch vs reference"

    # f32 operand path (matches PyTorch fp32 semantics).
    packed_f32 = pack_params(params, jnp.float32)
    out_f32 = jax.block_until_ready(
        large_model_forward(x, packed_f32, tile_b=TILE_B, tile_h=TILE_H))
    ref_f32 = _reference_forward(x, packed_f32)
    assert jnp.allclose(out_f32, ref_f32, atol=2e-3, rtol=2e-3), "f32 mismatch vs reference"

    # Ragged batch (not a multiple of tile_b) exercises the padding path.
    x_odd = x[:100]
    out_odd = jax.block_until_ready(
        large_model_forward(x_odd, packed_f32, tile_b=TILE_B, tile_h=TILE_H))
    ref_odd = _reference_forward(x_odd, packed_f32)
    assert out_odd.shape == (100, SIZE)
    assert jnp.allclose(out_odd, ref_odd, atol=2e-3, rtol=2e-3), "ragged-batch mismatch"

    print("KERNEL_OK")
</pallas_src>

<mosaic_0001>
module attributes {stable_mosaic.version = 11 : i64} {
  func.func @_fused_blocks_kernel(%arg0: i32, %arg1: i32, %arg2: i32, %arg3: memref<128x256xf32, #tpu.memory_space<vmem>>, %arg4: memref<1x256x512xbf16, #tpu.memory_space<vmem>>, %arg5: memref<1x1x512xf32, #tpu.memory_space<vmem>>, %arg6: memref<1x512x256xbf16, #tpu.memory_space<vmem>>, %arg7: memref<1x3x256xf32, #tpu.memory_space<vmem>>, %arg8: memref<128x256xf32, #tpu.memory_space<vmem>>, %arg9: memref<128x256xf32, #tpu.memory_space<vmem>>, %arg10: memref<128x256xf32, #tpu.memory_space<vmem>>) attributes {dimension_semantics = [#tpu.dimension_semantics<parallel>, #tpu.dimension_semantics<arbitrary>, #tpu.dimension_semantics<arbitrary>], iteration_bounds = array<i64: 2, 4, 2>, scalar_prefetch = 0 : i64, scratch_operands = 2 : i64, tpu.core_type = #tpu.core_type<tc>, window_params = [{transform_indices = @transform_0, window_bounds = array<i64: 128, 256>}, {transform_indices = @transform_1, window_bounds = array<i64: 1, 256, 512>}, {transform_indices = @transform_2, window_bounds = array<i64: 1, 1, 512>}, {transform_indices = @transform_3, window_bounds = array<i64: 1, 512, 256>}, {transform_indices = @transform_4, window_bounds = array<i64: 1, 3, 256>}, {transform_indices = @transform_5, window_bounds = array<i64: 128, 256>}]} {
    %c0_i32 = arith.constant 0 : i32
    %0 = arith.cmpi eq, %arg1, %c0_i32 : i32
    %c0_i32_0 = arith.constant 0 : i32
    %1 = arith.cmpi eq, %arg2, %c0_i32_0 : i32
    %2 = arith.andi %0, %1 : i1
    %3 = arith.extui %2 : i1 to i32
    %c0_i32_1 = arith.constant 0 : i32
    %4 = arith.cmpi ne, %3, %c0_i32_1 : i32
    scf.if %4 {
      %c0_21 = arith.constant 0 : index
      %c0_22 = arith.constant 0 : index
      %29 = vector.load %arg3[%c0_21, %c0_22] : memref<128x256xf32, #tpu.memory_space<vmem>>, vector<128x256xf32>
      %c0_23 = arith.constant 0 : index
      %c0_24 = arith.constant 0 : index
      %30 = vector.load %arg9[%c0_23, %c0_24] : memref<128x256xf32, #tpu.memory_space<vmem>>, vector<128x256xf32>
      tpu.vector_store %arg9[%c0_23, %c0_24], %29 {strides = array<i32>} : memref<128x256xf32, #tpu.memory_space<vmem>>, vector<128x256xf32>,
    } else {
    }
    %c0_i32_2 = arith.constant 0 : i32
    %5 = arith.cmpi eq, %arg2, %c0_i32_2 : i32
    %6 = arith.extui %5 : i1 to i32
    %c0_i32_3 = arith.constant 0 : i32
    %7 = arith.cmpi ne, %6, %c0_i32_3 : i32
    scf.if %7 {
      %cst_21 = arith.constant 0.000000e+00 : f32
      %29 = vector.broadcast %cst_21 : f32 to vector<128x256xf32>
      %c0_22 = arith.constant 0 : index
      %c0_23 = arith.constant 0 : index
      %30 = vector.load %arg10[%c0_22, %c0_23] : memref<128x256xf32, #tpu.memory_space<vmem>>, vector<128x256xf32>
      tpu.vector_store %arg10[%c0_22, %c0_23], %29 {strides = array<i32>} : memref<128x256xf32, #tpu.memory_space<vmem>>, vector<128x256xf32>,
    } else {
    }
    %c0 = arith.constant 0 : index
    %c0_4 = arith.constant 0 : index
    %8 = vector.load %arg9[%c0, %c0_4] : memref<128x256xf32, #tpu.memory_space<vmem>>, vector<128x256xf32>
    %9 = arith.truncf %8 : vector<128x256xf32> to vector<128x256xbf16>
    %c0_5 = arith.constant 0 : index
    %c0_6 = arith.constant 0 : index
    %c0_7 = arith.constant 0 : index
    %10 = vector.load %arg4[%c0_5, %c0_6, %c0_7] : memref<1x256x512xbf16, #tpu.memory_space<vmem>>, vector<1x256x512xbf16>
    %11 = vector.shape_cast %10 : vector<1x256x512xbf16> to vector<256x512xbf16>
    %cst = arith.constant dense<0.000000e+00> : vector<128x512xf32>
    %12 = tpu.matmul %9, %11, %cst {dimension_numbers = #tpu.dot_dimension_numbers<[1], [0], [0], [1], [0, 0, 1, 1], [], []>} : vector<128x256xbf16>, vector<256x512xbf16>, vector<128x512xf32> -> vector<128x512xf32>
    %c0_8 = arith.constant 0 : index
    %c0_9 = arith.constant 0 : index
    %c0_10 = arith.constant 0 : index
    %13 = vector.load %arg5[%c0_8, %c0_9, %c0_10] : memref<1x1x512xf32, #tpu.memory_space<vmem>>, vector<1x1x512xf32>
    %14 = vector.shape_cast %13 : vector<1x1x512xf32> to vector<1x512xf32>
    %15 = vector.broadcast %14 : vector<1x512xf32> to vector<128x512xf32>
    %16 = arith.addf %12, %15 : vector<128x512xf32>
    %cst_11 = arith.constant 0.000000e+00 : f32
    %17 = vector.broadcast %cst_11 : f32 to vector<128x512xf32>
    %18 = arith.maximumf %16, %17 : vector<128x512xf32>
    %c0_12 = arith.constant 0 : index
    %c0_13 = arith.constant 0 : index
    %19 = vector.load %arg10[%c0_12, %c0_13] : memref<128x256xf32, #tpu.memory_space<vmem>>, vector<128x256xf32>
    %20 = arith.truncf %18 : vector<128x512xf32> to vector<128x512xbf16>
    %c0_14 = arith.constant 0 : index
    %c0_15 = arith.constant 0 : index
    %c0_16 = arith.constant 0 : index
    %21 = vector.load %arg6[%c0_14, %c0_15, %c0_16] : memref<1x512x256xbf16, #tpu.memory_space<vmem>>, vector<1x512x256xbf16>
    %22 = vector.shape_cast %21 : vector<1x512x256xbf16> to vector<512x256xbf16>
    %cst_17 = arith.constant dense<0.000000e+00> : vector<128x256xf32>
    %23 = tpu.matmul %20, %22, %cst_17 {dimension_numbers = #tpu.dot_dimension_numbers<[1], [0], [0], [1], [0, 0, 1, 1], [], []>} : vector<128x512xbf16>, vector<512x256xbf16>, vector<128x256xf32> -> vector<128x256xf32>
    %24 = arith.addf %19, %23 : vector<128x256xf32>
    %c0_18 = arith.constant 0 : index
    %c0_19 = arith.constant 0 : index
    %25 = vector.load %arg10[%c0_18, %c0_19] : memref<128x256xf32, #tpu.memory_space<vmem>>, vector<128x256xf32>
    tpu.vector_store %arg10[%c0_18, %c0_19], %24 {strides = array<i32>} : memref<128x256xf32, #tpu.memory_space<vmem>>, vector<128x256xf32>,
    %c1_i32 = arith.constant 1 : i32
    %26 = arith.cmpi eq, %arg2, %c1_i32 : i32
    %27 = arith.extui %26 : i1 to i32
    %c0_i32_20 = arith.constant 0 : i32
    %28 = arith.cmpi ne, %27, %c0_i32_20 : i32
    scf.if %28 {
      %c0_21 = arith.constant 0 : index
      %c0_22 = arith.constant 0 : index
      %c0_23 = arith.constant 0 : index
      %29 = vector.load %arg7[%c0_21, %c0_22, %c0_23] : memref<1x3x256xf32, #tpu.memory_space<vmem>>, vector<1x3x256xf32>
      %30 = vector.shape_cast %29 : vector<1x3x256xf32> to vector<3x256xf32>
      %31 = vector.extract_strided_slice %30 {offsets = [0, 0], sizes = [1, 256], strides = [1, 1]} : vector<3x256xf32> to vector<1x256xf32>
      %32 = vector.extract_strided_slice %30 {offsets = [1, 0], sizes = [1, 256], strides = [1, 1]} : vector<3x256xf32> to vector<1x256xf32>
      %33 = vector.extract_strided_slice %30 {offsets = [2, 0], sizes = [1, 256], strides = [1, 1]} : vector<3x256xf32> to vector<1x256xf32>
      %c0_24 = arith.constant 0 : index
      %c0_25 = arith.constant 0 : index
      %34 = vector.load %arg10[%c0_24, %c0_25] : memref<128x256xf32, #tpu.memory_space<vmem>>, vector<128x256xf32>
      %35 = vector.broadcast %31 : vector<1x256xf32> to vector<128x256xf32>
      %36 = arith.addf %34, %35 : vector<128x256xf32>
      %cst_26 = arith.constant dense<0.000000e+00> : vector<128xf32>
      %37 = vector.multi_reduction <add>, %36, %cst_26 [1] : vector<128x256xf32> to vector<128xf32>
      %38 = vector.shape_cast %37 : vector<128xf32> to vector<128x1xf32>
      %cst_27 = arith.constant 2.560000e+02 : f32
      %39 = vector.broadcast %cst_27 : f32 to vector<128x1xf32>
      %40 = arith.divf %38, %39 : vector<128x1xf32>
      %41 = arith.mulf %36, %36 : vector<128x256xf32>
      %cst_28 = arith.constant dense<0.000000e+00> : vector<128xf32>
      %42 = vector.multi_reduction <add>, %41, %cst_28 [1] : vector<128x256xf32> to vector<128xf32>
      %43 = vector.shape_cast %42 : vector<128xf32> to vector<128x1xf32>
      %cst_29 = arith.constant 2.560000e+02 : f32
      %44 = vector.broadcast %cst_29 : f32 to vector<128x1xf32>
      %45 = arith.divf %43, %44 : vector<128x1xf32>
      %46 = arith.mulf %40, %40 : vector<128x1xf32>
      %47 = arith.subf %45, %46 : vector<128x1xf32>
      %cst_30 = arith.constant 0.000000e+00 : f32
      %48 = vector.broadcast %cst_30 : f32 to vector<128x1xf32>
      %49 = arith.maximumf %47, %48 : vector<128x1xf32>
      %cst_31 = arith.constant 9.99999974E-6 : f32
      %50 = vector.broadcast %cst_31 : f32 to vector<128x1xf32>
      %51 = arith.addf %49, %50 : vector<128x1xf32>
      %52 = math.rsqrt %51 : vector<128x1xf32>
      %53 = vector.broadcast %32 : vector<1x256xf32> to vector<128x256xf32>
      %54 = vector.broadcast %52 : vector<128x1xf32> to vector<128x256xf32>
      %55 = arith.mulf %53, %54 : vector<128x256xf32>
      %56 = arith.mulf %36, %55 : vector<128x256xf32>
      %57 = vector.broadcast %40 : vector<128x1xf32> to vector<128x256xf32>
      %58 = arith.mulf %57, %55 : vector<128x256xf32>
      %59 = vector.broadcast %33 : vector<1x256xf32> to vector<128x256xf32>
      %60 = arith.subf %59, %58 : vector<128x256xf32>
      %61 = arith.addf %56, %60 : vector<128x256xf32>
      %62 = arith.negf %61 : vector<128x256xf32>
      %63 = math.exp %62 : vector<128x256xf32>
      %cst_32 = arith.constant 1.000000e+00 : f32
      %64 = vector.broadcast %cst_32 : f32 to vector<128x256xf32>
      %65 = arith.addf %64, %63 : vector<128x256xf32>
      %66 = arith.divf %64, %65 : vector<128x256xf32>
      %67 = arith.mulf %61, %66 : vector<128x256xf32>
      %68 = math.tanh %67 : vector<128x256xf32>
      %69 = arith.addf %67, %68 : vector<128x256xf32>
      %c0_33 = arith.constant 0 : index
      %c0_34 = arith.constant 0 : index
      %70 = vector.load %arg9[%c0_33, %c0_34] : memref<128x256xf32, #tpu.memory_space<vmem>>, vector<128x256xf32>
      tpu.vector_store %arg9[%c0_33, %c0_34], %69 {strides = array<i32>} : memref<128x256xf32, #tpu.memory_space<vmem>>, vector<128x256xf32>,
      %c3_i32 = arith.constant 3 : i32
      %71 = arith.cmpi eq, %arg1, %c3_i32 : i32
      %72 = arith.extui %71 : i1 to i32
      %c0_i32_35 = arith.constant 0 : i32
      %73 = arith.cmpi ne, %72, %c0_i32_35 : i32
      scf.if %73 {
        %c0_36 = arith.constant 0 : index
        %c0_37 = arith.constant 0 : index
        %74 = vector.load %arg3[%c0_36, %c0_37] : memref<128x256xf32, #tpu.memory_space<vmem>>, vector<128x256xf32>
        %75 = arith.addf %69, %74 : vector<128x256xf32>
        %c0_38 = arith.constant 0 : index
        %c0_39 = arith.constant 0 : index
        %76 = vector.load %arg8[%c0_38, %c0_39] : memref<128x256xf32, #tpu.memory_space<vmem>>, vector<128x256xf32>
        tpu.vector_store %arg8[%c0_38, %c0_39], %75 {strides = array<i32>} : memref<128x256xf32, #tpu.memory_space<vmem>>, vector<128x256xf32>,
      } else {
      }
    } else {
    }
    return
  }
  func.func @transform_0(%arg0: i32, %arg1: i32, %arg2: i32) -> (i32, i32) {
    %c0_i32 = arith.constant 0 : i32
    %c0_i32_0 = arith.constant 0 : i32
    return %arg0, %c0_i32 : i32, i32
  }
  func.func @transform_1(%arg0: i32, %arg1: i32, %arg2: i32) -> (i32, i32, i32) {
    %c0_i32 = arith.constant 0 : i32
    %c0_i32_0 = arith.constant 0 : i32
    return %arg1, %c0_i32, %arg2 : i32, i32, i32
  }
  func.func @transform_2(%arg0: i32, %arg1: i32, %arg2: i32) -> (i32, i32, i32) {
    %c0_i32 = arith.constant 0 : i32
    %c0_i32_0 = arith.constant 0 : i32
    return %arg1, %c0_i32, %arg2 : i32, i32, i32
  }
  func.func @transform_3(%arg0: i32, %arg1: i32, %arg2: i32) -> (i32, i32, i32) {
    %c0_i32 = arith.constant 0 : i32
    %c0_i32_0 = arith.constant 0 : i32
    return %arg1, %arg2, %c0_i32 : i32, i32, i32
  }
  func.func @transform_4(%arg0: i32, %arg1: i32, %arg2: i32) -> (i32, i32, i32) {
    %c0_i32 = arith.constant 0 : i32
    %c0_i32_0 = arith.constant 0 : i32
    %c0_i32_1 = arith.constant 0 : i32
    return %arg1, %c0_i32, %c0_i32_0 : i32, i32, i32
  }
  func.func @transform_5(%arg0: i32, %arg1: i32, %arg2: i32) -> (i32, i32) {
    %c0_i32 = arith.constant 0 : i32
    %c0_i32_0 = arith.constant 0 : i32
    return %arg0, %c0_i32 : i32, i32
  }
}

</mosaic_0001>

<bundles_post_ra>
// kernel: large_model_forward.1
= control target key start
LH: loop header
LB: loop body
LE: loop exit
PB: predicated region body
PF: predicated region fallthrough
CT: control target
= control target key end

     0   :  { %s5839_s0 = inlined_call_operand.hbm [shape: f32[256,256], index: 0, kind: input, shape index: {}]   ;;  %s5840_s1 = inlined_call_operand.hbm [shape: bf16[4,256,1024], index: 1, kind: input, shape index: {}]   ;;  %s5841_s2 = inlined_call_operand.hbm [shape: f32[4,1,1024], index: 2, kind: input, shape index: {}]   ;;  %s5842_s3 = inlined_call_operand.hbm [shape: bf16[4,1024,256], index: 3, kind: input, shape index: {}]   ;;  %s5843_s4 = inlined_call_operand.vmem [shape: f32[4,3,256], index: 4, kind: input, shape index: {}]   ;;  %s5844_s5 = inlined_call_operand.hbm [shape: f32[256,256], index: 5, kind: output, shape index: {}]  }
   0x1   :  { %5881 = sst [smem:[#allocation41_spill]] %s5839_s0 }
   0x2   :  { %5882 = sst [smem:[#allocation42_spill]] %s5840_s1 }
   0x3   :  { %5883 = sst [smem:[#allocation43_spill]] %s5843_s4 }
   0x4   :  { %5884 = sst [smem:[#allocation44_spill]] %s5844_s5 }
   0x5   :  { %10 = vsyncpa [#allocation5], 0 }
   0x6   :  { %12 = vsyncpa [#allocation5 + $0x1], 0 }
   0x7   :  { %13 = vsyncpa [#allocation8], 0 }
   0x8   :  { %15 = vsyncpa [#allocation8 + $0x1], 0 }
   0x9   :  { %16 = vsyncpa [#allocation11], 0 }
   0xa   :  { %18 = vsyncpa [#allocation11 + $0x1], 0 }
   0xb   :  { %19 = vsyncpa [#allocation6], 0 }
   0xc   :  { %21 = vsyncpa [#allocation6 + $0x1], 0  ;;  %s4244_s18 = smov 0   ;;  %s4246_s19 = smov 0  }
   0xd   :  { %s4248_s20 = smov 0   ;;  %s4250_s21 = smov 0  }
   0xe   :  { %s4252_s22 = smov 0   ;;  %s4254_s23 = smov 0  }
   0xf   :  { %s4256_s24 = smov 0   ;;  %s4258_s25 = smov 0  }
  0x10   :  { %s4260_s26 = smov 0   ;;  %s4262_s27 = smov 0  }
  0x11   :  { %s4264_s28 = smov 0   ;;  %s4266_s29 = smov 0  }
  0x12   :  { %s4268_s30 = smov 0  }
  0x13 LB: > { %5885 = sst [smem:[#allocation17_spill]] %s4159_s20  ;;  %s39_s6 = sadd.s32 1, %s4187_s27  ;;  %s4199_s30 = sphi %s4268_s30, %s27_s30   ;;  %s4195_s29 = sphi %s4266_s29, %s5979_s29   ;;  %s4191_s28 = sphi %s4264_s28, %s5978_s28   ;;  %s4187_s27 = sphi %s4262_s27, %s5977_s27   ;;  %s4183_s26 = sphi %s4260_s26, %s5967_s26   ;;  %s4179_s25 = sphi %s4258_s25, %s5976_s25   ;;  %s4175_s24 = sphi %s4256_s24, %s5975_s24   ;;  %s4171_s23 = sphi %s4254_s23, %s5966_s23   ;;  %s4167_s22 = sphi %s4252_s22, %s5974_s22   ;;  %s4163_s21 = sphi %s4250_s21, %s5973_s21   ;;  %s4159_s20 = sphi %s4248_s20, %s5964_s20   ;;  %s4155_s19 = sphi %s4246_s19, %s5972_s19   ;;  %s4151_s18 = sphi %s4244_s18, %s5971_s18  }
  0x14   : > { %5886 = sst [smem:[#allocation18_spill]] %s4163_s21  ;;  %p5849_p0 = scmp.eq.s32.totalorder %s4199_s30, 0 }
  0x15   : > { %5887 = sst [smem:[#allocation19_spill]] %s4171_s23  ;;  %p4311_p1 = scmp.ge.s32.totalorder %s39_s6, 2 }
  0x16   : > { %5888 = sst [smem:[#allocation20_spill]] %s4175_s24  ;;  %p88_p2 = scmp.ne.s32.totalorder %s4159_s20, %s4155_s19 }
  0x17   : > { %5889 = sst [smem:[#allocation21_spill]] %s4179_s25  ;;  %s5981_s6 = smov (%p4311_p1, %s39_s6), 0 }
  0x18   : > { %5890 = sst [smem:[#allocation22_spill]] %s4183_s26  ;;  %p4326_p4 = por %p88_p2, %p5849_p0 }
  0x19   : > { %5891 = sst [smem:[#allocation23_spill]] %s4195_s29  ;;  %p5848_p5 = scmp.lt.s32.totalorder %s4199_s30, 16 }
  0x1a   : > { %5892 = sst [smem:[#allocation24_spill]] %s4199_s30  ;;  %s248_s11 = sand.u32 1, %s4199_s30  }
  0x1b   : > { %s5893_s7 = scalar_select %p4311_p1, 1, 0 }
  0x1c   : > { %5894 = sst [smem:[#allocation25_spill]] %s5981_s6  ;;  %s4335_s12 = sand.u32 1, %s4159_s20  }
  0x1d   : > { %s5847_s13 = sshll.u32 %s4335_s12, 9  ;;  %s5851_s14 = sshll.u32 %s4187_s27, 2 }
  0x1e   : > { %s5846_s15 = sshll.u32 %s4191_s28, 8  ;;  %s252_s16 = scalar_lea.vmem [#allocation7], %s5847_s13 }
  0x1f   : > { %s261_s17 = sshll.u32 %s252_s16, 4  ;;  %s258_s8 = sadd.s32 %s5846_s15, %s5851_s14  ;;  %s4346_s17 = int_to_ptr.vmem [resolvable:$true] %s261_s17 }
  0x20   : > { %s3151_s5 = sshll.u32 %s258_s8, 6  ;;  %p4352_p6 = pnand %p5848_p5, %p4326_p4 }
  0x21   : > { %s5897_s1 = sld [smem:[#allocation42_spill]]  ;;  %s4362_s16 = scalar_lea.sflag [#allocation8], %s248_s11 }
  0x22   : > { %s5896_s10 = scalar_select %p4352_p6, 1, 0 }
  0x23   : > { %p4368_p9 = pneg %p4352_p6 }
  0x27   : > { %s4359_s24 = scalar_lea.hbm %s5897_s1, %s3151_s5  ;;  %s3938_s26 = scalar_lea.hbm %s5897_s1, 65536 }
  0x28   : > { %s3933_s8 = scalar_lea.hbm %s4359_s24, 8192  ;;  %p3939_p12 = scmp.lt.u32.totalorder %s4359_s24, %s5897_s1 }
  0x29   : > { %p3934_p8 = scmp.ne.s32.totalorder %s4359_s24, %s3933_s8  ;;  %p3940_p13 = scmp.lt.u32.totalorder %s3938_s26, %s3933_s8 }
  0x2a   : > { %p3942_p4 = scmp.lt.u32.totalorder %s3933_s8, %s4359_s24 }
  0x2b   : > { %p3936_p10 = pnand %p4368_p9, %p3934_p8  ;;  %p3941_p2 = por %p3940_p13, %p3939_p12 }
  0x2d   : > { %p3937_p11 = pneg %p3936_p10  ;;  %p3943_p5 = por %p3942_p4, %p3941_p2 }
  0x2f   : > { %p3944_p3 = pnand %p3943_p5, %p3937_p11 }
  0x31   : > { %3947 = shalt.err (!%p3944_p3)
}
  0x32   : > { %s3948_s11 = scalar_lea.vmem %s4346_s17, 8192  ;;  %s4201_s4 = smov [#allocation7]  }
  0x33   : > { %p3949_p8 = scmp.ne.s32.totalorder %s4346_s17, %s3948_s11  ;;  %s3953_s5 = sshll.u32 %s4201_s4, 4  ;;  %s3954_s5 = int_to_ptr.vmem [resolvable:$false] %s3953_s5 }
  0x34   : > { %s3955_s13 = scalar_lea.vmem %s3954_s5, 16384  ;;  %p3956_p7 = scmp.lt.s32.totalorder %s4346_s17, %s3954_s5 }
  0x35   : > { %p3951_p10 = pnand %p3949_p8, %p4368_p9  ;;  %p3957_p1 = scmp.lt.s32.totalorder %s3955_s13, %s3948_s11 }
  0x37   : > { %p3952_p0 = pneg %p3951_p10  ;;  %p3958_p12 = por %p3957_p1, %p3956_p7 }
  0x39   : > { %p3959_p13 = pnand %p3958_p12, %p3952_p0 }
  0x3b   : > { %3962 = shalt.err (!%p3959_p13)
}
  0x3c   : > { %s4202_s15 = smov 512   ;;  %s5852_s8 = smov 256  }
  0x3d   : > { %s5853_s26 = smov 16   ;;  %p322_p0 = scmp.lt.s32.totalorder %s4199_s30, 17 }
  0x3e   : > { %3392 = dma.hbm_to_vmem [thread:$0]  (!%p4352_p6), %s4359_s24, 8192, %s4346_s17, %s4362_s16, %s4202_s15, %s5852_s8, %s5853_s26  }
  0x3f   : > { %p5899_p1 = scmp.ge.s32.totalorder %s4199_s30, 1  ;;  %s4402_s4 = sadd.s32 4294967295, %s4199_s30  }
  0x40   : > { %s3141_s5 = sadd.s32 4294967294, %s4199_s30   ;;  %s42_s13 = sadd.s32 1, %s4191_s28 }
  0x41   : > { %p4397_p3 = pnand %p5899_p1, %p322_p0  ;;  %s46_s14 = sadd.s32 1, %s4195_s29 }
  0x42   : > { %p5902_p5 = scmp.ne.s32.totalorder %s5893_s7, 0  ;;  %s53_s24 = sadd.s32 1, %s4171_s23 }
  0x43   : > { %s5900_s11 = scalar_select %p4397_p3, 1, 0 }
  0x44   : > { %s5983_s13 = smov (!%p5902_p5, %s42_s13), %s4191_s28  ;;  %p60_p7 = scmp.ne.s32.totalorder %s4171_s23, %s4167_s22 }
  0x45   : > { %5901 = sst [smem:[#allocation26_spill]] %s5900_s11  ;;  %p44_p11 = scmp.ge.s32.totalorder %s5983_s13, 4 }
  0x46   : > { %p5857_p2 = scmp.ne.s32.totalorder %s4167_s22, %s4163_s21  ;;  %p5903_p4 = scmp.eq.s32.totalorder %s4199_s30, 0 }
  0x47   : > { %p67_p10 = scmp.eq.s32.totalorder %s4402_s4, 0  ;;  %s5985_s13 = smov (%p44_p11, %s5983_s13), 0 }
  0x48   : > { %p4420_p8 = por %p5903_p4, %p60_p7  ;;  %5905 = sst [smem:[#allocation27_spill]] %s5985_s13 }
  0x49   : > { %s5987_s14 = smov (!%p44_p11, %s46_s14), %s4195_s29  ;;  %p4431_p12 = por %p67_p10, %p5857_p2 }
  0x4a   : > { %s76_s15 = ssub.s32 %s4191_s28, %s5985_s13  ;;  %p48_p13 = scmp.ge.s32.totalorder %s5987_s14, 2 }
  0x4b   : > { %s5906_s7 = scalar_select %p4431_p12, 1, 0 }
  0x4c   : > { %s5907_s8 = ssub.s32 %s4187_s27, %s5981_s6  ;;  %p5908_p1 = scmp.ne.s32.totalorder %s4155_s19, %s4151_s18 }
  0x4d   : > { %s78_s26 = sor.u32 %s5907_s8, %s76_s15  ;;  %s5989_s14 = smov (%p48_p13, %s5987_s14), 0 }
  0x4e   : > { %p79_p0 = scmp.eq.s32.totalorder %s78_s26, 0  ;;  %p4443_p5 = por %p5908_p1, %p67_p10 }
  0x4f   : > { %5910 = sst [smem:[#allocation28_spill]] %s5989_s14  ;;  %s5911_s25 = sadd.s32 1, %s4159_s20 }
  0x50   : > { %s5909_s1 = scalar_select %p4443_p5, 1, 0 }
  0x51   : > { %s4452_s11 = scalar_select %p79_p0, %s4159_s20, %s5911_s25  }
  0x52   : > { %s50_s13 = ssub.s32 %s4195_s29, %s5989_s14  ;;  %p200_p11 = scmp.eq.s32.totalorder %s4402_s4, 15 }
  0x53   : > { %5912 = sst [smem:[#allocation29_spill]] %s4452_s11  ;;  %p51_p4 = scmp.eq.s32.totalorder %s50_s13, 0 }
  0x54   : > { %p206_p2 = scmp.eq.s32.totalorder %s3141_s5, 15  ;;  %p4460_p12 = por %p200_p11, %p60_p7 }
  0x55   : > { %s226_s8 = sand.u32 1, %s4171_s23   ;;  %p5915_p10 = scmp.ne.s32.totalorder %s4167_s22, %s4163_s21 }
  0x56   : > { %s5913_s18 = scalar_select %p4460_p12, 1, 0 }
  0x57   : > { %s4466_s26 = scalar_select %p51_p4, %s4171_s23, %s53_s24  }
  0x58   : > { %p4471_p13 = por %p206_p2, %p5915_p10  ;;  %s3144_s25 = sshll.u32 %s226_s8, 8 }
  0x59   : > { %5914 = sst [smem:[#allocation30_spill]] %s4466_s26  ;;  %s3339_s6 = sshll.u32 %s4195_s29, 12 }
  0x5a   : > { %s5916_s15 = scalar_select %p4471_p13, 1, 0 }
  0x5b   : > { %s5918_s0 = sld [smem:[#allocation41_spill]]  ;;  %s230_s5 = scalar_lea.vmem [#allocation4], %s3144_s25 }
  0x5c   : > { %5917 = sst [smem:[#allocation31_spill]] %s5916_s15  ;;  %s238_s20 = sshll.u32 %s230_s5, 4  ;;  %s4489_s20 = int_to_ptr.vmem [resolvable:$true] %s238_s20 }
  0x5d   : > { %p5919_p7 = scmp.lt.s32.totalorder %s4199_s30, 16  ;;  %s3152_s29 = sshll.u32 %s4335_s12, 2 }
  0x5e   : > { %s4492_s14 = scalar_lea.sflag [#allocation5], %s226_s8 }
  0x5f   : > { %p4485_p0 = pnand %p5919_p7, %p4420_p8 }
  0x61   : > { %s4479_s13 = scalar_lea.hbm %s5918_s0, %s3339_s6  ;;  %p3965_p1 = pneg %p4485_p0 }
  0x62   : > { %s3963_s6 = scalar_lea.hbm %s4479_s13, 4096  ;;  %s3968_s25 = scalar_lea.hbm %s5918_s0, 8192 }
  0x63   : > { %p3964_p2 = scmp.ne.s32.totalorder %s4479_s13, %s3963_s6  ;;  %p3969_p8 = scmp.lt.u32.totalorder %s4479_s13, %s5918_s0 }
  0x64   : > { %p3970_p10 = scmp.lt.u32.totalorder %s3968_s25, %s3963_s6  ;;  %p3972_p13 = scmp.lt.u32.totalorder %s3963_s6, %s4479_s13 }
  0x65   : > { %p3966_p11 = pnand %p3965_p1, %p3964_p2 }
  0x66   : > { %p3971_p7 = por %p3970_p10, %p3969_p8 }
  0x67   : > { %p3967_p4 = pneg %p3966_p11 }
  0x68   : > { %p3973_p12 = por %p3972_p13, %p3971_p7 }
  0x6a   : > { %p3974_p5 = pnand %p3973_p12, %p3967_p4 }
  0x6c   : > { %3977 = shalt.err (!%p3974_p5)
}
  0x6d   : > { %s3978_s8 = scalar_lea.vmem %s4489_s20, 4096  ;;  %s4205_s11 = smov [#allocation4]  }
  0x6e   : > { %p3979_p2 = scmp.ne.s32.totalorder %s4489_s20, %s3978_s8  ;;  %s3983_s17 = sshll.u32 %s4205_s11, 4  ;;  %s3984_s17 = int_to_ptr.vmem [resolvable:$false] %s3983_s17 }
  0x6f   : > { %s3985_s26 = scalar_lea.vmem %s3984_s17, 8192  ;;  %p3986_p6 = scmp.lt.s32.totalorder %s4489_s20, %s3984_s17 }
  0x70   : > { %p3981_p11 = pnand %p3979_p2, %p3965_p1  ;;  %p3987_p8 = scmp.lt.s32.totalorder %s3985_s26, %s3978_s8 }
  0x72   : > { %p3982_p3 = pneg %p3981_p11  ;;  %p3988_p10 = por %p3987_p8, %p3986_p6 }
  0x74   : > { %p3989_p13 = pnand %p3988_p10, %p3982_p3 }
  0x76   : > { %3992 = shalt.err (!%p3989_p13)
}
  0x77   : > { %s5921_s6 = smov 16   ;;  %s5922_s25 = smov 256  }
  0x78   : > { %3389 = dma.hbm_to_vmem [thread:$0]  (!%p4485_p0), %s4479_s13, 4096, %s4489_s20, %s4492_s14, %s5922_s25, %s5922_s25, %s5921_s6  }
  0x79   : > { %s3154_s5 = sshll.u32 %s4191_s28, 3  ;;  %s275_s11 = scalar_lea.vmem [#allocation9], %s3152_s29 }
  0x7a   : > { %s285_s8 = sshll.u32 %s275_s11, 4  ;;  %s5923_s17 = sshll.u32 %s4187_s27, 2  ;;  %s4528_s8 = int_to_ptr.vmem [resolvable:$true] %s285_s8 }
  0x7b   : > { %s281_s26 = sadd.s32 %s3154_s5, %s5923_s17  ;;  %s3998_s13 = scalar_lea.hbm %s5841_s2, 512 }
  0x7c   : > { %s3155_s24 = sshll.u32 %s281_s26, 4 }
  0x7d   : > { %s283_s15 = scalar_lea.hbm %s5841_s2, %s3155_s24 }
  0x7e   : > { %s3993_s21 = scalar_lea.hbm %s283_s15, 64  ;;  %p3999_p5 = scmp.lt.u32.totalorder %s283_s15, %s5841_s2 }
  0x7f   : > { %p3994_p6 = scmp.ne.s32.totalorder %s283_s15, %s3993_s21  ;;  %p4000_p0 = scmp.lt.u32.totalorder %s3998_s13, %s3993_s21 }
  0x80   : > { %p4002_p4 = scmp.lt.u32.totalorder %s3993_s21, %s283_s15 }
  0x81   : > { %p3996_p3 = pnand %p3994_p6, %p4368_p9  ;;  %p4001_p1 = por %p4000_p0, %p3999_p5 }
  0x83   : > { %p3997_p12 = pneg %p3996_p3  ;;  %p4003_p7 = por %p4002_p4, %p4001_p1 }
  0x85   : > { %p4004_p2 = pnand %p4003_p7, %p3997_p12 }
  0x87   : > { %4007 = shalt.err (!%p4004_p2)
}
  0x88   : > { %s4008_s0 = scalar_lea.vmem %s4528_s8, 64  ;;  %s4206_s23 = smov [#allocation9]  }
  0x89   : > { %p4009_p11 = scmp.ne.s32.totalorder %s4528_s8, %s4008_s0  ;;  %s4013_s30 = sshll.u32 %s4206_s23, 4  ;;  %s4014_s30 = int_to_ptr.vmem [resolvable:$false] %s4013_s30 }
  0x8a   : > { %s4015_s6 = scalar_lea.vmem %s4014_s30, 128  ;;  %p4016_p13 = scmp.lt.s32.totalorder %s4528_s8, %s4014_s30 }
  0x8b   : > { %p4011_p8 = pnand %p4009_p11, %p4368_p9  ;;  %p4017_p6 = scmp.lt.s32.totalorder %s4015_s6, %s4008_s0 }
  0x8d   : > { %p4012_p10 = pneg %p4011_p8  ;;  %p4018_p3 = por %p4017_p6, %p4016_p13 }
  0x8f   : > { %p4019_p5 = pnand %p4018_p3, %p4012_p10 }
  0x91   : > { %4022 = shalt.err (!%p4019_p5)
}
  0x92   : > { %p5924_p12 = scmp.ne.s32.totalorder %s5896_s10, 0  ;;  %s3340_s21 = sshll.u32 %s4187_s27, 7 }
  0x93   : > { %s5925_s25 = sshll.u32 %s4335_s12, 9  ;;  %s5926_s17 = sshll.u32 %s4191_s28, 8 }
  0x94   : > { %3395 = dma.hbm_to_vmem [thread:$0]  (!%p5924_p12), %s283_s15, 64, %s4528_s8, %s4362_s16  }
  0x95   : > { %s296_s5 = scalar_lea.vmem [#allocation10], %s5925_s25  ;;  %s303_s26 = sadd.s32 %s3340_s21, %s5926_s17 }
  0x96   : > { %s306_s11 = sshll.u32 %s296_s5, 4  ;;  %s3160_s24 = sshll.u32 %s303_s26, 6  ;;  %s4555_s11 = int_to_ptr.vmem [resolvable:$true] %s306_s11 }
  0x97   : > { %s4560_s29 = scalar_lea.hbm %s5842_s3, %s3160_s24  ;;  %s293_s14 = scalar_lea.sflag [#allocation11], %s4335_s12 }
  0x98   : > { %s4023_s16 = scalar_lea.hbm %s4560_s29, 8192  ;;  %s4028_s0 = scalar_lea.hbm %s5842_s3, 65536 }
  0x99   : > { %p4024_p0 = scmp.ne.s32.totalorder %s4560_s29, %s4023_s16  ;;  %p4029_p7 = scmp.lt.u32.totalorder %s4560_s29, %s5842_s3 }
  0x9a   : > { %p4030_p2 = scmp.lt.u32.totalorder %s4028_s0, %s4023_s16  ;;  %p4032_p8 = scmp.lt.u32.totalorder %s4023_s16, %s4560_s29 }
  0x9b   : > { %p4026_p1 = pnand %p4024_p0, %p4368_p9 }
  0x9c   : > { %p4031_p11 = por %p4030_p2, %p4029_p7 }
  0x9d   : > { %p4027_p4 = pneg %p4026_p1 }
  0x9e   : > { %p4033_p10 = por %p4032_p8, %p4031_p11 }
  0xa0   : > { %p4034_p13 = pnand %p4033_p10, %p4027_p4 }
  0xa2   : > { %4037 = shalt.err (!%p4034_p13)
}
  0xa3   : > { %s4038_s6 = scalar_lea.vmem %s4555_s11, 8192  ;;  %s4207_s21 = smov [#allocation10]  }
  0xa4   : > { %p4039_p6 = scmp.ne.s32.totalorder %s4555_s11, %s4038_s6  ;;  %s4043_s25 = sshll.u32 %s4207_s21, 4  ;;  %s4044_s25 = int_to_ptr.vmem [resolvable:$false] %s4043_s25 }
  0xa5   : > { %s4045_s5 = scalar_lea.vmem %s4044_s25, 16384  ;;  %p4046_p0 = scmp.lt.s32.totalorder %s4555_s11, %s4044_s25 }
  0xa6   : > { %p4041_p3 = pnand %p4039_p6, %p4368_p9  ;;  %p4047_p1 = scmp.lt.s32.totalorder %s4045_s5, %s4038_s6 }
  0xa8   : > { %p4042_p5 = pneg %p4041_p3  ;;  %p4048_p7 = por %p4047_p1, %p4046_p0 }
  0xaa   : > { %p4049_p2 = pnand %p4048_p7, %p4042_p5 }
  0xac   : > { %4052 = shalt.err (!%p4049_p2)
}
  0xad   : > { %s4208_s17 = smov 128   ;;  %s4209_s26 = smov 8  }
  0xae   : > { %3398 = dma.hbm_to_vmem [thread:$0]  (!%p5924_p12), %s4560_s29, 8192, %s4555_s11, %s293_s14, %s4208_s17, %s4208_s17, %s4209_s26  }
  0xaf   : > { %s5927_s9 = sld [smem:[#allocation26_spill]] }
  0xb5   : > { %p5928_p9 = scmp.ne.s32.totalorder %s5927_s9, 0 }
  0xb6   : > { %s4589_s24 = sand.u32 (!%p5928_p9), 1, %s4167_s22   ;;  %p5929_p4 = scmp.ne.s32.totalorder (!%p5928_p9), %s5906_s7, 0 }
  0xb7   : > { %326 = sbr.rel (%p5928_p9) target bundleno = 1286 (0x506), region = 40  ;;  %s3162_s20 = sshll.u32 (!%p5928_p9), %s4589_s24, 8 }
  0xb8   : > { %s329_s13 = scalar_lea.sflag (!%p5928_p9), [#allocation5], %s4589_s24  ;;  %s4593_s16 = scalar_lea.vmem (!%p5928_p9), [#allocation4], %s3162_s20 }
  0xbe   : > { %4134 = dma.done.wait (%p5929_p4), %s329_s13, 4096  }
  0xbf   : > { %4136 = vsyncadd (%p5929_p4), %s329_s13, 4294963200  ;;  %s337_s10 = sand.u32 1, %s4402_s4   ;;  %s339_s12 = sand.u32 1, %s4155_s19  }
  0xc0   : > { %s3163_s11 = sshll.u32 %s339_s12, 9  ;;  %s338_s29 = scalar_lea.sflag [#allocation8], %s337_s10 }
  0xc1   : > { %s4601_s14 = scalar_lea.vmem [#allocation7], %s3163_s11  ;;  %p5930_p12 = scmp.ne.s32.totalorder %s5909_s1, 0 }
  0xc3   : > { %4138 = dma.done.wait (%p5930_p12), %s338_s29, 8256  }
  0xc4   : > { %4140 = vsyncadd (%p5930_p12), %s338_s29, 4294959040  ;;  %s3164_s15 = sshll.u32 %s339_s12, 2  ;;  %s356_s7 = scalar_lea.sflag [#allocation11], %s339_s12 }
  0xc5   : > { %s4607_s8 = scalar_lea.vmem [#allocation9], %s3164_s15  ;;  %s4609_s0 = scalar_lea.vmem [#allocation10], %s3163_s11 }
  0xc6   : > { %4142 = dma.done.wait (%p5930_p12), %s356_s7, 8192  }
  0xc7   : > { %4144 = vsyncadd (%p5930_p12), %s356_s7, 4294959104  ;;  %s5931_s4 = sld [smem:[#allocation21_spill]]  ;;  %s5932_s23 = sld [smem:[#allocation20_spill]] }
  0xc8   : > { %s5933_s25 = sld [smem:[#allocation43_spill]]  ;;  %s4624_s17 = scalar_lea.vmem [#allocation12], %s3162_s20 }
  0xcd   : > { %p410_p11 = scmp.lt.s32.totalorder %s5931_s4, 3  ;;  %p416_p8 = scmp.eq.s32.totalorder %s5931_s4, 0 }
  0xce   : > { %p417_p10 = scmp.eq.s32.totalorder %s5932_s23, 0 }
  0xcf   : > { %s5991_s4 = smov (!%p410_p11, %s5931_s4), 3 }
  0xd0   : > { %p418_p13 = pnand %p417_p10, %p416_p8  ;;  %s3341_s30 = sshll.u32 %s5991_s4, 3 }
  0xd1   : > { %s4622_s5 = scalar_lea.vmem %s5933_s25, %s3341_s30  ;;  %v422_v0 = vld [vmem:[%s4593_s16] sm:$0xff] (!%p418_p13)  ;;  %v423_v1 = vld [vmem:[%s4593_s16 + $0x8] sm:$0xff] (!%p418_p13)  ;;  %v424_v2 = vld [vmem:[%s4593_s16 + $0x10] sm:$0xff] (!%p418_p13) }
  0xd2   : > { %421 = sbr.rel (%p418_p13) target bundleno = 226 (0xe2), region = 60  ;;  %454 = vst [vmem:[#allocation2] sm:$0xff] (!%p418_p13), %v422_v0  ;;  %455 = vst [vmem:[#allocation2 + $0x8] sm:$0xff] (!%p418_p13), %v423_v1  ;;  %v425_v3 = vld [vmem:[%s4593_s16 + $0x18] sm:$0xff] (!%p418_p13)  ;;  %v426_v4 = vld [vmem:[%s4593_s16 + $0x20] sm:$0xff] (!%p418_p13) }
  0xd3   : > { %456 = vst [vmem:[#allocation2 + $0x10] sm:$0xff] (!%p418_p13), %v424_v2  ;;  %v427_v5 = vld [vmem:[%s4593_s16 + $0x28] sm:$0xff] (!%p418_p13)  ;;  %457 = vst [vmem:[#allocation2 + $0x18] sm:$0xff] (!%p418_p13), %v425_v3  ;;  %v428_v6 = vld [vmem:[%s4593_s16 + $0x30] sm:$0xff] (!%p418_p13) }
  0xd4   : > { %458 = vst [vmem:[#allocation2 + $0x20] sm:$0xff] (!%p418_p13), %v426_v4  ;;  %459 = vst [vmem:[#allocation2 + $0x28] sm:$0xff] (!%p418_p13), %v427_v5  ;;  %v429_v7 = vld [vmem:[%s4593_s16 + $0x38] sm:$0xff] (!%p418_p13)  ;;  %v430_v8 = vld [vmem:[%s4593_s16 + $0x40] sm:$0xff] (!%p418_p13) }
  0xd5   : > { %460 = vst [vmem:[#allocation2 + $0x30] sm:$0xff] (!%p418_p13), %v428_v6  ;;  %461 = vst [vmem:[#allocation2 + $0x38] sm:$0xff] (!%p418_p13), %v429_v7  ;;  %v431_v9 = vld [vmem:[%s4593_s16 + $0x48] sm:$0xff] (!%p418_p13)  ;;  %v432_v10 = vld [vmem:[%s4593_s16 + $0x50] sm:$0xff] (!%p418_p13) }
  0xd6   : > { %462 = vst [vmem:[#allocation2 + $0x40] sm:$0xff] (!%p418_p13), %v430_v8  ;;  %v433_v11 = vld [vmem:[%s4593_s16 + $0x58] sm:$0xff] (!%p418_p13)  ;;  %463 = vst [vmem:[#allocation2 + $0x48] sm:$0xff] (!%p418_p13), %v431_v9  ;;  %v434_v12 = vld [vmem:[%s4593_s16 + $0x60] sm:$0xff] (!%p418_p13) }
  0xd7   : > { %464 = vst [vmem:[#allocation2 + $0x50] sm:$0xff] (!%p418_p13), %v432_v10  ;;  %465 = vst [vmem:[#allocation2 + $0x58] sm:$0xff] (!%p418_p13), %v433_v11  ;;  %v435_v13 = vld [vmem:[%s4593_s16 + $0x68] sm:$0xff] (!%p418_p13)  ;;  %v436_v14 = vld [vmem:[%s4593_s16 + $0x70] sm:$0xff] (!%p418_p13) }
  0xd8   : > { %466 = vst [vmem:[#allocation2 + $0x60] sm:$0xff] (!%p418_p13), %v434_v12  ;;  %467 = vst [vmem:[#allocation2 + $0x68] sm:$0xff] (!%p418_p13), %v435_v13  ;;  %v437_v15 = vld [vmem:[%s4593_s16 + $0x78] sm:$0xff] (!%p418_p13)  ;;  %v438_v16 = vld [vmem:[%s4593_s16 + $0x80] sm:$0xff] (!%p418_p13) }
  0xd9   : > { %468 = vst [vmem:[#allocation2 + $0x70] sm:$0xff] %v436_v14  ;;  %v439_v17 = vld [vmem:[%s4593_s16 + $0x88] sm:$0xff]  ;;  %469 = vst [vmem:[#allocation2 + $0x78] sm:$0xff] %v437_v15  ;;  %v440_v18 = vld [vmem:[%s4593_s16 + $0x90] sm:$0xff] }
  0xda   : > { %470 = vst [vmem:[#allocation2 + $0x80] sm:$0xff] %v438_v16  ;;  %471 = vst [vmem:[#allocation2 + $0x88] sm:$0xff] %v439_v17  ;;  %v441_v19 = vld [vmem:[%s4593_s16 + $0x98] sm:$0xff]  ;;  %v442_v20 = vld [vmem:[%s4593_s16 + $0xa0] sm:$0xff] }
  0xdb   : > { %472 = vst [vmem:[#allocation2 + $0x90] sm:$0xff] %v440_v18  ;;  %473 = vst [vmem:[#allocation2 + $0x98] sm:$0xff] %v441_v19  ;;  %v443_v21 = vld [vmem:[%s4593_s16 + $0xa8] sm:$0xff]  ;;  %v444_v22 = vld [vmem:[%s4593_s16 + $0xb0] sm:$0xff] }
  0xdc   : > { %474 = vst [vmem:[#allocation2 + $0xa0] sm:$0xff] %v442_v20  ;;  %v445_v23 = vld [vmem:[%s4593_s16 + $0xb8] sm:$0xff]  ;;  %475 = vst [vmem:[#allocation2 + $0xa8] sm:$0xff] %v443_v21  ;;  %v446_v24 = vld [vmem:[%s4593_s16 + $0xc0] sm:$0xff] }
  0xdd   : > { %476 = vst [vmem:[#allocation2 + $0xb0] sm:$0xff] %v444_v22  ;;  %477 = vst [vmem:[#allocation2 + $0xb8] sm:$0xff] %v445_v23  ;;  %v447_v25 = vld [vmem:[%s4593_s16 + $0xc8] sm:$0xff]  ;;  %v448_v26 = vld [vmem:[%s4593_s16 + $0xd0] sm:$0xff] }
  0xde   : > { %478 = vst [vmem:[#allocation2 + $0xc0] sm:$0xff] %v446_v24  ;;  %479 = vst [vmem:[#allocation2 + $0xc8] sm:$0xff] %v447_v25  ;;  %v449_v27 = vld [vmem:[%s4593_s16 + $0xd8] sm:$0xff]  ;;  %v450_v28 = vld [vmem:[%s4593_s16 + $0xe0] sm:$0xff] }
  0xdf   : > { %480 = vst [vmem:[#allocation2 + $0xd0] sm:$0xff] %v448_v26  ;;  %v451_v29 = vld [vmem:[%s4593_s16 + $0xe8] sm:$0xff]  ;;  %481 = vst [vmem:[#allocation2 + $0xd8] sm:$0xff] %v449_v27  ;;  %v452_v30 = vld [vmem:[%s4593_s16 + $0xf0] sm:$0xff] }
  0xe0   : > { %482 = vst [vmem:[#allocation2 + $0xe0] sm:$0xff] %v450_v28  ;;  %483 = vst [vmem:[#allocation2 + $0xe8] sm:$0xff] %v451_v29  ;;  %v453_v31 = vld [vmem:[%s4593_s16 + $0xf8] sm:$0xff] }
  0xe1   : > { %484 = vst [vmem:[#allocation2 + $0xf0] sm:$0xff] %v452_v30  ;;  %485 = vst [vmem:[#allocation2 + $0xf8] sm:$0xff] %v453_v31 }
  0xe2 PF: > { %s5934_s1 = sld [smem:[#allocation20_spill]] }
  0xe8   : > { %p3169_p6 = scmp.ne.s32.totalorder %s5934_s1, 0 }
  0xe9   : > { %v4210_v32 = vmov (!%p3169_p6), 0.0  }
  0xea   : > { %488 = sbr.rel (%p3169_p6) target bundleno = 250 (0xfa), region = 64  ;;  %489 = vst [vmem:[#allocation3] sm:$0xff] (!%p3169_p6), %v4210_v32  ;;  %490 = vst [vmem:[#allocation3 + $0x8] sm:$0xff] (!%p3169_p6), %v4210_v32 }
  0xeb   : > { %491 = vst [vmem:[#allocation3 + $0x10] sm:$0xff] (!%p3169_p6), %v4210_v32  ;;  %492 = vst [vmem:[#allocation3 + $0x18] sm:$0xff] (!%p3169_p6), %v4210_v32 }
  0xec   : > { %493 = vst [vmem:[#allocation3 + $0x20] sm:$0xff] (!%p3169_p6), %v4210_v32  ;;  %494 = vst [vmem:[#allocation3 + $0x28] sm:$0xff] (!%p3169_p6), %v4210_v32 }
  0xed   : > { %495 = vst [vmem:[#allocation3 + $0x30] sm:$0xff] (!%p3169_p6), %v4210_v32  ;;  %496 = vst [vmem:[#allocation3 + $0x38] sm:$0xff] (!%p3169_p6), %v4210_v32 }
  0xee   : > { %497 = vst [vmem:[#allocation3 + $0x40] sm:$0xff] (!%p3169_p6), %v4210_v32  ;;  %498 = vst [vmem:[#allocation3 + $0x48] sm:$0xff] (!%p3169_p6), %v4210_v32 }
  0xef   : > { %499 = vst [vmem:[#allocation3 + $0x50] sm:$0xff] (!%p3169_p6), %v4210_v32  ;;  %500 = vst [vmem:[#allocation3 + $0x58] sm:$0xff] (!%p3169_p6), %v4210_v32 }
  0xf0   : > { %501 = vst [vmem:[#allocation3 + $0x60] sm:$0xff] (!%p3169_p6), %v4210_v32  ;;  %502 = vst [vmem:[#allocation3 + $0x68] sm:$0xff] (!%p3169_p6), %v4210_v32 }
  0xf1   : > { %503 = vst [vmem:[#allocation3 + $0x70] sm:$0xff] %v4210_v32  ;;  %504 = vst [vmem:[#allocation3 + $0x78] sm:$0xff] %v4210_v32 }
  0xf2   : > { %505 = vst [vmem:[#allocation3 + $0x80] sm:$0xff] %v4210_v32  ;;  %506 = vst [vmem:[#allocation3 + $0x88] sm:$0xff] %v4210_v32 }
  0xf3   : > { %507 = vst [vmem:[#allocation3 + $0x90] sm:$0xff] %v4210_v32  ;;  %508 = vst [vmem:[#allocation3 + $0x98] sm:$0xff] %v4210_v32 }
  0xf4   : > { %509 = vst [vmem:[#allocation3 + $0xa0] sm:$0xff] %v4210_v32  ;;  %510 = vst [vmem:[#allocation3 + $0xa8] sm:$0xff] %v4210_v32 }
  0xf5   : > { %511 = vst [vmem:[#allocation3 + $0xb0] sm:$0xff] %v4210_v32  ;;  %512 = vst [vmem:[#allocation3 + $0xb8] sm:$0xff] %v4210_v32 }
  0xf6   : > { %513 = vst [vmem:[#allocation3 + $0xc0] sm:$0xff] %v4210_v32  ;;  %514 = vst [vmem:[#allocation3 + $0xc8] sm:$0xff] %v4210_v32 }
  0xf7   : > { %515 = vst [vmem:[#allocation3 + $0xd0] sm:$0xff] %v4210_v32  ;;  %516 = vst [vmem:[#allocation3 + $0xd8] sm:$0xff] %v4210_v32 }
  0xf8   : > { %517 = vst [vmem:[#allocation3 + $0xe0] sm:$0xff] %v4210_v32  ;;  %518 = vst [vmem:[#allocation3 + $0xe8] sm:$0xff] %v4210_v32 }
  0xf9   : > { %519 = vst [vmem:[#allocation3 + $0xf0] sm:$0xff] %v4210_v32  ;;  %520 = vst [vmem:[#allocation3 + $0xf8] sm:$0xff] %v4210_v32 }
  0xfa PF: > { %v3517_v33 = vld [vmem:[%s4601_s14 + $0x4] ss:$16 sps:$4 sm:$0xff]   ;;  %v3519_v34 = vld [vmem:[%s4601_s14] ss:$16 sps:$4 sm:$0xff]   ;;  %v522_v46 = vld [vmem:[#allocation2 + $0x8] sm:$0xff]  ;;  %s5935_s26 = sld [smem:[#allocation20_spill]] }
  0xfb   : > { %975 = vmatprep.subr.bf16.mxu1 %v3517_v33  ;;  %v3520_v35 = vld [vmem:[%s4601_s14 + $0x24] ss:$16 sps:$4 sm:$0xff]   ;;  %v3522_v36 = vld [vmem:[%s4601_s14 + $0x20] ss:$16 sps:$4 sm:$0xff]   ;;  %v524_v47 = vld [vmem:[#allocation2 + $0x18] sm:$0xff] }
  0xfc   : > { %976 = vmatpush1.bf16.msra.mxu1 %v3519_v34  ;;  %v3523_v37 = vld [vmem:[%s4601_s14 + $0x44] ss:$16 sps:$4 sm:$0xff]   ;;  %v3525_v38 = vld [vmem:[%s4601_s14 + $0x40] ss:$16 sps:$4 sm:$0xff]   ;;  %v4672_v48 = vpack.c.bf16 %v524_v47, %v522_v46  ;;  %v3567_v9 = vld [vmem:[%s4601_s14 + $0xc] ss:$16 sps:$4 sm:$0xff]  }
  0xfd   : > { %977 = vmatprep.subr.bf16.mxu1 %v3520_v35  ;;  %v3526_v39 = vld [vmem:[%s4601_s14 + $0x64] ss:$16 sps:$4 sm:$0xff]   ;;  %v3528_v40 = vld [vmem:[%s4601_s14 + $0x60] ss:$16 sps:$4 sm:$0xff]   ;;  %v526_v10 = vld [vmem:[#allocation2 + $0x28] sm:$0xff] }
  0xfe   : > { %v3529_v41 = vld [vmem:[%s4601_s14 + $0x84] ss:$16 sps:$4 sm:$0xff]   ;;  %v3531_v42 = vld [vmem:[%s4601_s14 + $0x80] ss:$16 sps:$4 sm:$0xff]   ;;  %1007 = vmatprep.mubr.bf16.mxu1 %v4672_v48  ;;  %v528_v11 = vld [vmem:[#allocation2 + $0x38] sm:$0xff] }
  0xff   : > { %v3532_v43 = vld [vmem:[%s4601_s14 + $0xa4] ss:$16 sps:$4 sm:$0xff]   ;;  %v3534_v44 = vld [vmem:[%s4601_s14 + $0xa0] ss:$16 sps:$4 sm:$0xff]   ;;  %v3565_v15 = vld [vmem:[%s4601_s14 + $0x8] ss:$16 sps:$4 sm:$0xff]   ;;  %v4703_v16 = vpack.c.bf16 %v528_v11, %v526_v10 }
 0x100   : > { %978 = vmatpush1.bf16.msra.mxu1 %v3522_v36  ;;  %v3535_v45 = vld [vmem:[%s4601_s14 + $0xc4] ss:$16 sps:$4 sm:$0xff]   ;;  %v3537_v49 = vld [vmem:[%s4601_s14 + $0xc0] ss:$16 sps:$4 sm:$0xff]   ;;  %v3570_v17 = vld [vmem:[%s4601_s14 + $0x2c] ss:$16 sps:$4 sm:$0xff]  }
 0x101   : > { %979 = vmatprep.subr.bf16.mxu1 %v3523_v37  ;;  %v3538_v50 = vld [vmem:[%s4601_s14 + $0xe4] ss:$16 sps:$4 sm:$0xff]   ;;  %v3540_v51 = vld [vmem:[%s4601_s14 + $0xe0] ss:$16 sps:$4 sm:$0xff]   ;;  %v3568_v18 = vld [vmem:[%s4601_s14 + $0x28] ss:$16 sps:$4 sm:$0xff]  }
 0x102   : > { %v3541_v52 = vld [vmem:[%s4601_s14 + $0x104] ss:$16 sps:$4 sm:$0xff]   ;;  %v3543_v53 = vld [vmem:[%s4601_s14 + $0x100] ss:$16 sps:$4 sm:$0xff]   ;;  %v3573_v23 = vld [vmem:[%s4601_s14 + $0x4c] ss:$16 sps:$4 sm:$0xff]  }
 0x103   : > { %v3544_v54 = vld [vmem:[%s4601_s14 + $0x124] ss:$16 sps:$4 sm:$0xff]   ;;  %v3546_v55 = vld [vmem:[%s4601_s14 + $0x120] ss:$16 sps:$4 sm:$0xff]   ;;  %v530_v24 = vld [vmem:[#allocation2 + $0x48] sm:$0xff]  ;;  %p3298_p3 = scmp.ne.s32.totalorder %s5935_s26, 1 }
 0x104   : > { %980 = vmatpush1.bf16.msra.mxu1 %v3525_v38  ;;  %v3547_v56 = vld [vmem:[%s4601_s14 + $0x144] ss:$16 sps:$4 sm:$0xff]   ;;  %v3549_v57 = vld [vmem:[%s4601_s14 + $0x140] ss:$16 sps:$4 sm:$0xff]   ;;  %v532_v25 = vld [vmem:[#allocation2 + $0x58] sm:$0xff] }
 0x105   : > { %981 = vmatprep.subr.bf16.mxu1 %v3526_v39  ;;  %v3550_v58 = vld [vmem:[%s4601_s14 + $0x164] ss:$16 sps:$4 sm:$0xff]   ;;  %v3552_v59 = vld [vmem:[%s4601_s14 + $0x160] ss:$16 sps:$4 sm:$0xff]   ;;  %v3571_v28 = vld [vmem:[%s4601_s14 + $0x48] ss:$16 sps:$4 sm:$0xff]   ;;  %v4718_v31 = vpack.c.bf16 %v532_v25, %v530_v24 }
 0x106   : > { %v3553_v60 = vld [vmem:[%s4601_s14 + $0x184] ss:$16 sps:$4 sm:$0xff]   ;;  %v3555_v61 = vld [vmem:[%s4601_s14 + $0x180] ss:$16 sps:$4 sm:$0xff]   ;;  %v3576_v30 = vld [vmem:[%s4601_s14 + $0x6c] ss:$16 sps:$4 sm:$0xff]  }
 0x107   : > { %v3556_v62 = vld [vmem:[%s4601_s14 + $0x1a4] ss:$16 sps:$4 sm:$0xff]   ;;  %v3558_v63 = vld [vmem:[%s4601_s14 + $0x1a0] ss:$16 sps:$4 sm:$0xff]   ;;  %v3574_v34 = vld [vmem:[%s4601_s14 + $0x68] ss:$16 sps:$4 sm:$0xff]  }
 0x108   : > { %982 = vmatpush1.bf16.msra.mxu1 %v3528_v40  ;;  %v3559_v0 = vld [vmem:[%s4601_s14 + $0x1c4] ss:$16 sps:$4 sm:$0xff]   ;;  %v3561_v1 = vld [vmem:[%s4601_s14 + $0x1c0] ss:$16 sps:$4 sm:$0xff]   ;;  %v3579_v37 = vld [vmem:[%s4601_s14 + $0x8c] ss:$16 sps:$4 sm:$0xff]  }
 0x109   : > { %983 = vmatprep.subr.bf16.mxu1 %v3529_v41  ;;  %v3562_v2 = vld [vmem:[%s4601_s14 + $0x1e4] ss:$16 sps:$4 sm:$0xff]   ;;  %v3615_v4 = vld [vmem:[%s4609_s0] ss:$8 sps:$4 sm:$0xff]   ;;  %v3618_v12 = vld [vmem:[%s4609_s0 + $0x10] ss:$8 sps:$4 sm:$0xff]  }
 0x10a   : > { %v3613_v3 = vld [vmem:[%s4609_s0 + $0x4] ss:$8 sps:$4 sm:$0xff]   ;;  %v3616_v5 = vld [vmem:[%s4609_s0 + $0x14] ss:$8 sps:$4 sm:$0xff]   ;;  %v3564_v6 = vld [vmem:[%s4601_s14 + $0x1e0] ss:$16 sps:$4 sm:$0xff]  }
 0x10b   : > { %v521_v7 = vld [vmem:[#allocation2] sm:$0xff]  ;;  %v523_v8 = vld [vmem:[#allocation2 + $0x10] sm:$0xff]  ;;  %1713 = vmatprep.subr.bf16.mxu0 %v3613_v3  ;;  %v534_v38 = vld [vmem:[#allocation2 + $0x68] sm:$0xff] }
 0x10c   : > { %984 = vmatpush1.bf16.msra.mxu1 %v3531_v42  ;;  %1714 = vmatpush1.bf16.msra.mxu0 %v3615_v4  ;;  %v4699_v13 = vpack.c.bf16 %v523_v8, %v521_v7  ;;  %v3619_v14 = vld [vmem:[%s4609_s0 + $0x24] ss:$8 sps:$4 sm:$0xff]   ;;  %v525_v19 = vld [vmem:[#allocation2 + $0x20] sm:$0xff]  ;;  %v3621_v20 = vld [vmem:[%s4609_s0 + $0x20] ss:$8 sps:$4 sm:$0xff]  }
 0x10d   : > { %985 = vmatprep.subr.bf16.mxu1 %v3532_v43  ;;  %1715 = vmatprep.subr.bf16.mxu0 %v3616_v5  ;;  %v527_v21 = vld [vmem:[#allocation2 + $0x30] sm:$0xff]  ;;  %v3622_v22 = vld [vmem:[%s4609_s0 + $0x34] ss:$8 sps:$4 sm:$0xff]   ;;  %v3624_v26 = vld [vmem:[%s4609_s0 + $0x30] ss:$8 sps:$4 sm:$0xff]  }
 0x10e   : > { %v4713_v27 = vpack.c.bf16 %v527_v21, %v525_v19  ;;  %v3625_v29 = vld [vmem:[%s4609_s0 + $0x44] ss:$8 sps:$4 sm:$0xff]   ;;  %v3627_v32 = vld [vmem:[%s4609_s0 + $0x40] ss:$8 sps:$4 sm:$0xff]   ;;  %v3628_v33 = vld [vmem:[%s4609_s0 + $0x54] ss:$8 sps:$4 sm:$0xff]  }
 0x10f   : > { %v529_v35 = vld [vmem:[#allocation2 + $0x40] sm:$0xff]  ;;  %v531_v36 = vld [vmem:[#allocation2 + $0x50] sm:$0xff]  ;;  %v536_v39 = vld [vmem:[#allocation2 + $0x78] sm:$0xff] }
 0x110   : > { %986 = vmatpush1.bf16.msra.mxu1 %v3534_v44  ;;  %1716 = vmatpush1.bf16.msra.mxu0 %v3618_v12  ;;  %v3630_v40 = vld [vmem:[%s4609_s0 + $0x50] ss:$8 sps:$4 sm:$0xff]   ;;  %v3631_v41 = vld [vmem:[%s4609_s0 + $0x64] ss:$8 sps:$4 sm:$0xff]   ;;  %v4729_v43 = vpack.c.bf16 %v531_v36, %v529_v35  ;;  %v3633_v46 = vld [vmem:[%s4609_s0 + $0x60] ss:$8 sps:$4 sm:$0xff]  }
 0x111   : > { %987 = vmatprep.subr.bf16.mxu1 %v3535_v45  ;;  %1717 = vmatprep.subr.bf16.mxu0 %v3619_v14  ;;  %v3577_v42 = vld [vmem:[%s4601_s14 + $0x88] ss:$16 sps:$4 sm:$0xff]   ;;  %v3582_v44 = vld [vmem:[%s4601_s14 + $0xac] ss:$16 sps:$4 sm:$0xff]   ;;  %v4732_v45 = vpack.c.bf16 %v536_v39, %v534_v38 }
 0x112   : > { %v3634_v47 = vld [vmem:[%s4609_s0 + $0x74] ss:$8 sps:$4 sm:$0xff]   ;;  %v542_v3 = vld [vmem:[#allocation2 + $0xa8] sm:$0xff]  ;;  %v3642_v5 = vld [vmem:[%s4609_s0 + $0x90] ss:$8 sps:$4 sm:$0xff]  }
 0x113   : > { %v544_v4 = vld [vmem:[#allocation2 + $0xb8] sm:$0xff]  ;;  %v3643_v7 = vld [vmem:[%s4609_s0 + $0xa4] ss:$8 sps:$4 sm:$0xff]   ;;  %v3645_v11 = vld [vmem:[%s4609_s0 + $0xa0] ss:$8 sps:$4 sm:$0xff]  }
 0x114   : > { %988 = vmatpush1.bf16.msra.mxu1 %v3537_v49  ;;  %1718 = vmatpush1.bf16.msra.mxu0 %v3621_v20  ;;  %v3580_v49 = vld [vmem:[%s4601_s14 + $0xa8] ss:$16 sps:$4 sm:$0xff]   ;;  %v3594_v10 = vld [vmem:[%s4601_s14 + $0x12c] ss:$16 sps:$4 sm:$0xff]  }
 0x115   : > { %989 = vmatprep.subr.bf16.mxu1 %v3538_v50  ;;  %1719 = vmatprep.subr.bf16.mxu0 %v3622_v22  ;;  %v533_v50 = vld [vmem:[#allocation2 + $0x60] sm:$0xff]  ;;  %v3589_v8 = vld [vmem:[%s4601_s14 + $0x108] ss:$16 sps:$4 sm:$0xff]  }
 0x116   : > { %v3646_v12 = vld [vmem:[%s4609_s0 + $0xb4] ss:$8 sps:$4 sm:$0xff]   ;;  %v3592_v14 = vld [vmem:[%s4601_s14 + $0x128] ss:$16 sps:$4 sm:$0xff]  }
 0x117   : > { %v546_v19 = vld [vmem:[#allocation2 + $0xc8] sm:$0xff]  ;;  %v548_v20 = vld [vmem:[#allocation2 + $0xd8] sm:$0xff] }
 0x118   : > { %990 = vmatpush1.bf16.msra.mxu1 %v3540_v51  ;;  %1720 = vmatpush1.bf16.msra.mxu0 %v3624_v26  ;;  %v535_v51 = vld [vmem:[#allocation2 + $0x70] sm:$0xff]  ;;  %v3648_v21 = vld [vmem:[%s4609_s0 + $0xb0] ss:$8 sps:$4 sm:$0xff]   ;;  %v4773_v25 = vpack.c.bf16 %v548_v20, %v546_v19  ;;  %v3600_v26 = vld [vmem:[%s4601_s14 + $0x16c] ss:$16 sps:$4 sm:$0xff]  }
 0x119   : > { %991 = vmatprep.subr.bf16.mxu1 %v3541_v52  ;;  %1721 = vmatprep.subr.bf16.mxu0 %v3625_v29  ;;  %v3585_v52 = vld [vmem:[%s4601_s14 + $0xcc] ss:$16 sps:$4 sm:$0xff]   ;;  %v3595_v24 = vld [vmem:[%s4601_s14 + $0x148] ss:$16 sps:$4 sm:$0xff]  }
 0x11a   : > { %v3652_v29 = vld [vmem:[%s4609_s0 + $0xd4] ss:$8 sps:$4 sm:$0xff]   ;;  %v550_v35 = vld [vmem:[#allocation2 + $0xe8] sm:$0xff]  ;;  %v3664_v20 = vld [vmem:[%s4609_s0 + $0x110] ss:$8 sps:$4 sm:$0xff]  }
 0x11b   : > { %v552_v36 = vld [vmem:[#allocation2 + $0xf8] sm:$0xff] }
 0x11c   : > { %992 = vmatpush1.bf16.msra.mxu1 %v3543_v53  ;;  %1722 = vmatpush1.bf16.msra.mxu0 %v3627_v32  ;;  %v538_v53 = vld [vmem:[#allocation2 + $0x88] sm:$0xff]  ;;  %v545_v32 = vld [vmem:[#allocation2 + $0xc0] sm:$0xff]  ;;  %v568_v39 = vpack.c.bf16 %v552_v36, %v550_v35 }
 0x11d   : > { %993 = vmatprep.subr.bf16.mxu1 %v3544_v54  ;;  %1723 = vmatprep.subr.bf16.mxu0 %v3628_v33  ;;  %v540_v54 = vld [vmem:[#allocation2 + $0x98] sm:$0xff]  ;;  %v547_v33 = vld [vmem:[#allocation2 + $0xd0] sm:$0xff] }
 0x11e   : > { %v3601_v38 = vld [vmem:[%s4601_s14 + $0x188] ss:$16 sps:$4 sm:$0xff]  }
 0x120   : > { %994 = vmatpush1.bf16.msra.mxu1 %v3546_v55  ;;  %1724 = vmatpush1.bf16.msra.mxu0 %v3630_v40  ;;  %v3636_v55 = vld [vmem:[%s4609_s0 + $0x70] ss:$8 sps:$4 sm:$0xff]   ;;  %v3606_v40 = vld [vmem:[%s4601_s14 + $0x1ac] ss:$16 sps:$4 sm:$0xff]  }
 0x121   : > { %995 = vmatprep.subr.bf16.mxu1 %v3547_v56  ;;  %1725 = vmatprep.subr.bf16.mxu0 %v3631_v41  ;;  %v4741_v56 = vpack.c.bf16 %v535_v51, %v533_v50  ;;  %v3604_v41 = vld [vmem:[%s4601_s14 + $0x1a8] ss:$16 sps:$4 sm:$0xff]   ;;  %v3612_v50 = vld [vmem:[%s4601_s14 + $0x1ec] ss:$16 sps:$4 sm:$0xff]  }
 0x122   : > { %v3610_v51 = vld [vmem:[%s4601_s14 + $0x1e8] ss:$16 sps:$4 sm:$0xff]  }
 0x124   : > { %996 = vmatpush1.bf16.msra.mxu1 %v3549_v57  ;;  %1726 = vmatpush1.bf16.msra.mxu0 %v3633_v46  ;;  %v3637_v57 = vld [vmem:[%s4609_s0 + $0x84] ss:$8 sps:$4 sm:$0xff]  }
 0x125   : > { %997 = vmatprep.subr.bf16.mxu1 %v3550_v58  ;;  %1727 = vmatprep.subr.bf16.mxu0 %v3634_v47  ;;  %v3583_v58 = vld [vmem:[%s4601_s14 + $0xc8] ss:$16 sps:$4 sm:$0xff]   ;;  %v3609_v46 = vld [vmem:[%s4601_s14 + $0x1cc] ss:$16 sps:$4 sm:$0xff]  }
 0x128   : > { %998 = vmatpush1.bf16.msra.mxu1 %v3552_v59  ;;  %v4745_v59 = vpack.c.bf16 %v540_v54, %v538_v53  ;;  %1728 = vmatpush1.bf16.msra.mxu0 %v3636_v55  ;;  %v3657_v53 = vld [vmem:[%s4609_s0 + $0xe0] ss:$8 sps:$4 sm:$0xff]   ;;  %v4814_v54 = vld [vmem:[%s4607_s8] sm:$0xf] }
 0x129   : > { %999 = vmatprep.subr.bf16.mxu1 %v3553_v60  ;;  %v3588_v60 = vld [vmem:[%s4601_s14 + $0xec] ss:$16 sps:$4 sm:$0xff]   ;;  %1729 = vmatprep.subr.bf16.mxu0 %v3637_v57 }
 0x12c   : > { %1000 = vmatpush1.bf16.msra.mxu1 %v3555_v61  ;;  %v3639_v61 = vld [vmem:[%s4609_s0 + $0x80] ss:$8 sps:$4 sm:$0xff]  }
 0x12d   : > { %1001 = vmatprep.subr.bf16.mxu1 %v3556_v62  ;;  %v3640_v62 = vld [vmem:[%s4609_s0 + $0x94] ss:$8 sps:$4 sm:$0xff]   ;;  %1730 = vmatpush1.bf16.msra.mxu0 %v3639_v61 }
 0x12e   : > { %1731 = vmatprep.subr.bf16.mxu0 %v3640_v62 }
 0x130   : > { %1002 = vmatpush1.bf16.msra.mxu1 %v3558_v63  ;;  %v3586_v63 = vld [vmem:[%s4601_s14 + $0xe8] ss:$16 sps:$4 sm:$0xff]  }
 0x131   : > { %1003 = vmatprep.subr.bf16.mxu1 %v3559_v0  ;;  %v537_v0 = vld [vmem:[#allocation2 + $0x80] sm:$0xff]  ;;  %1732 = vmatpush1.bf16.msra.mxu0 %v3642_v5 }
 0x132   : > { %1733 = vmatprep.subr.bf16.mxu0 %v3643_v7 }
 0x134   : > { %1004 = vmatpush1.bf16.msra.mxu1 %v3561_v1  ;;  %v539_v1 = vld [vmem:[#allocation2 + $0x90] sm:$0xff] }
 0x135   : > { %1005 = vmatprep.subr.bf16.mxu1 %v3562_v2  ;;  %v3591_v2 = vld [vmem:[%s4601_s14 + $0x10c] ss:$16 sps:$4 sm:$0xff]   ;;  %1734 = vmatpush1.bf16.msra.mxu0 %v3645_v11 }
 0x136   : > { %1735 = vmatprep.subr.bf16.mxu0 %v3646_v12  ;;  %v3666_v12 = vld [vmem:[%s4609_s0 + $0x114] ss:$8 sps:$4 sm:$0xff]  }
 0x138   : > { %1006 = vmatpush1.bf16.msra.mxu1 %v3564_v6  ;;  %v4755_v6 = vpack.c.bf16 %v539_v1, %v537_v0 }
 0x139   : > { %1088 = vmatprep.subr.bf16.mxu1 %v3567_v9  ;;  %v4759_v9 = vpack.c.bf16 %v544_v4, %v542_v3  ;;  %1736 = vmatpush1.bf16.msra.mxu0 %v3648_v21 }
 0x13b   : > { %1008 = vmatmul.mubr.bf16.vlgmr.msra.gmra.mrb[0].mxu1 %v4699_v13 }
 0x13c   : > { %1089 = vmatpush1.bf16.msra.mxu1 %v3565_v15  ;;  %1017 = vmatprep.mubr.bf16.mxu1 %v4703_v16  ;;  %v541_v15 = vld [vmem:[#allocation2 + $0xa0] sm:$0xff] }
 0x13d   : > { %1090 = vmatprep.subr.bf16.mxu1 %v3570_v17  ;;  %v543_v17 = vld [vmem:[#allocation2 + $0xb0] sm:$0xff] }
 0x13e   : > { %v4769_v22 = vpack.c.bf16 %v543_v17, %v541_v15 }
 0x140   : > { %1091 = vmatpush1.bf16.msra.mxu1 %v3568_v18  ;;  %v3597_v18 = vld [vmem:[%s4601_s14 + $0x14c] ss:$16 sps:$4 sm:$0xff]  }
 0x141   : > { %1092 = vmatprep.subr.bf16.mxu1 %v3573_v23  ;;  %v3649_v23 = vld [vmem:[%s4609_s0 + $0xc4] ss:$8 sps:$4 sm:$0xff]  }
 0x142   : > { %1737 = vmatprep.subr.bf16.mxu0 %v3649_v23  ;;  %v3669_v23 = vld [vmem:[%s4609_s0 + $0x124] ss:$8 sps:$4 sm:$0xff]  }
 0x143   : > { %1018 = vmatmul.mubr.bf16.gmra.mrb[4].mxu1 %v4713_v27 }
 0x144   : > { %1093 = vmatpush1.bf16.msra.mxu1 %v3571_v28  ;;  %1027 = vmatprep.mubr.bf16.mxu1 %v4718_v31  ;;  %v3651_v28 = vld [vmem:[%s4609_s0 + $0xc0] ss:$8 sps:$4 sm:$0xff]  }
 0x145   : > { %1094 = vmatprep.subr.bf16.mxu1 %v3576_v30  ;;  %v3598_v30 = vld [vmem:[%s4601_s14 + $0x168] ss:$16 sps:$4 sm:$0xff]   ;;  %1738 = vmatpush1.bf16.msra.mxu0 %v3651_v28 }
 0x146   : > { %1739 = vmatprep.subr.bf16.mxu0 %v3652_v29 }
 0x148   : > { %1095 = vmatpush1.bf16.msra.mxu1 %v3574_v34  ;;  %v3603_v34 = vld [vmem:[%s4601_s14 + $0x18c] ss:$16 sps:$4 sm:$0xff]  }
 0x149   : > { %1096 = vmatprep.subr.bf16.mxu1 %v3579_v37  ;;  %v565_v37 = vpack.c.bf16 %v547_v33, %v545_v32 }
 0x14b   : > { %1028 = vmatmul.mubr.bf16.gmra.mrb[8].mxu1 %v4729_v43 }
 0x14c   : > { %1097 = vmatpush1.bf16.msra.mxu1 %v3577_v42  ;;  %1037 = vmatprep.mubr.bf16.mxu1 %v4732_v45  ;;  %v549_v42 = vld [vmem:[#allocation2 + $0xe0] sm:$0xff] }
 0x14d   : > { %1098 = vmatprep.subr.bf16.mxu1 %v3582_v44  ;;  %v551_v44 = vld [vmem:[#allocation2 + $0xf0] sm:$0xff] }
 0x14e   : > { %v567_v47 = vpack.c.bf16 %v551_v44, %v549_v42  ;;  %v3675_v44 = vld [vmem:[%s4609_s0 + $0x144] ss:$8 sps:$4 sm:$0xff]  }
 0x150   : > { %1099 = vmatpush1.bf16.msra.mxu1 %v3580_v49  ;;  %v3607_v49 = vld [vmem:[%s4601_s14 + $0x1c8] ss:$16 sps:$4 sm:$0xff]  }
 0x151   : > { %1100 = vmatprep.subr.bf16.mxu1 %v3585_v52  ;;  %v3654_v52 = vld [vmem:[%s4609_s0 + $0xd0] ss:$8 sps:$4 sm:$0xff]  }
 0x152   : > { %1740 = vmatpush1.bf16.msra.mxu0 %v3654_v52  ;;  %v3673_v52 = vld [vmem:[%s4609_s0 + $0x140] ss:$8 sps:$4 sm:$0xff]  }
 0x153   : > { %1038 = vmatmul.mubr.bf16.gmra.mrb[12].mxu1 %v4741_v56 }
 0x154   : > { %1101 = vmatpush1.bf16.msra.mxu1 %v3583_v58  ;;  %1047 = vmatprep.mubr.bf16.mxu1 %v4745_v59 }
 0x155   : > { %1102 = vmatprep.subr.bf16.mxu1 %v3588_v60 }
 0x158   : > { %1103 = vmatpush1.bf16.msra.mxu1 %v3586_v63 }
 0x159   : > { %1104 = vmatprep.subr.bf16.mxu1 %v3591_v2 }
 0x15b   : > { %1048 = vmatmul.mubr.bf16.gmra.mrb[16].mxu1 %v4755_v6 }
 0x15c   : > { %1105 = vmatpush1.bf16.msra.mxu1 %v3589_v8  ;;  %1057 = vmatprep.mubr.bf16.mxu1 %v4759_v9 }
 0x15d   : > { %1106 = vmatprep.subr.bf16.mxu1 %v3594_v10 }
 0x160   : > { %1107 = vmatpush1.bf16.msra.mxu1 %v3592_v14 }
 0x161   : > { %1108 = vmatprep.subr.bf16.mxu1 %v3597_v18 }
 0x163   : > { %1058 = vmatmul.mubr.bf16.gmra.mrb[20].mxu1 %v4769_v22 }
 0x164   : > { %1109 = vmatpush1.bf16.msra.mxu1 %v3595_v24  ;;  %1067 = vmatprep.mubr.bf16.mxu1 %v4773_v25 }
 0x165   : > { %1110 = vmatprep.subr.bf16.mxu1 %v3600_v26 }
 0x168   : > { %1111 = vmatpush1.bf16.msra.mxu1 %v3598_v30  ;;  %v3667_v30 = vld [vmem:[%s4609_s0 + $0x120] ss:$8 sps:$4 sm:$0xff]  }
 0x169   : > { %1112 = vmatprep.subr.bf16.mxu1 %v3603_v34  ;;  %v3672_v34 = vld [vmem:[%s4609_s0 + $0x134] ss:$8 sps:$4 sm:$0xff]  }
 0x16b   : > { %1068 = vmatmul.mubr.bf16.gmra.mrb[24].mxu1 %v565_v37 }
 0x16c   : > { %1113 = vmatpush1.bf16.msra.mxu1 %v3601_v38  ;;  %1077 = vmatprep.mubr.bf16.mxu1 %v568_v39 }
 0x16d   : > { %1114 = vmatprep.subr.bf16.mxu1 %v3606_v40  ;;  %v3670_v40 = vld [vmem:[%s4609_s0 + $0x130] ss:$8 sps:$4 sm:$0xff]  }
 0x170   : > { %1115 = vmatpush1.bf16.msra.mxu1 %v3604_v41 }
 0x171   : > { %1116 = vmatprep.subr.bf16.mxu1 %v3609_v46 }
 0x173   : > { %1078 = vmatmul.mubr.bf16.gmra.mrb[28].mxu1 %v567_v47 }
 0x174   : > { %1117 = vmatpush1.bf16.msra.mxu1 %v3607_v49  ;;  %1120 = vmatprep.mubr.bf16.mxu1 %v4672_v48  ;;  %v3655_v48 = vld [vmem:[%s4609_s0 + $0xe4] ss:$8 sps:$4 sm:$0xff]  }
 0x175   : > { %1118 = vmatprep.subr.bf16.mxu1 %v3612_v50  ;;  %1741 = vmatprep.subr.bf16.mxu0 %v3655_v48 }
 0x176   : > { %1742 = vmatpush1.bf16.msra.mxu0 %v3657_v53 }
 0x178   : > { %1119 = vmatpush1.bf16.msra.mxu1 %v3610_v51 }
 0x17b   : > { %1121 = vmatmul.mubr.bf16.vlgmr.msra.gmra.mrb[32].mxu1 %v4699_v13  ;;  %v3658_v13 = vld [vmem:[%s4609_s0 + $0xf4] ss:$8 sps:$4 sm:$0xff]  }
 0x17c   : > { %1130 = vmatprep.mubr.bf16.mxu1 %v4703_v16  ;;  %v3660_v16 = vld [vmem:[%s4609_s0 + $0xf0] ss:$8 sps:$4 sm:$0xff]   ;;  %1743 = vmatprep.subr.bf16.mxu0 %v3658_v13  ;;  %v3678_v13 = vld [vmem:[%s4609_s0 + $0x154] ss:$8 sps:$4 sm:$0xff]  }
 0x17d   : > { %1744 = vmatpush1.bf16.msra.mxu0 %v3660_v16 }
 0x183   : > { %1131 = vmatmul.mubr.bf16.gmra.mrb[36].mxu1 %v4713_v27  ;;  %v3663_v27 = vld [vmem:[%s4609_s0 + $0x104] ss:$8 sps:$4 sm:$0xff]  }
 0x184   : > { %1140 = vmatprep.mubr.bf16.mxu1 %v4718_v31  ;;  %1826 = vmatprep.subr.bf16.mxu0 %v3663_v27  ;;  %v635_v31 = vlaneseq }
 0x18b   : > { %1141 = vmatmul.mubr.bf16.gmra.mrb[40].mxu1 %v4729_v43  ;;  %v4808_v43 = vshrl.u32 %v635_v31, 7 }
 0x18c   : > { %1150 = vmatprep.mubr.bf16.mxu1 %v4732_v45 }
 0x18d   : > { %v4811_v45 = vsub.s32 0, %v4808_v43  ;;  %v4817_v55 = vsub.s32 1, %v4808_v43 }
 0x18f   : > { %v4825_v57 = vrot.slane %v4814_v54, %v4817_v55 }
 0x193   : > { %1151 = vmatmul.mubr.bf16.gmra.mrb[44].mxu1 %v4741_v56  ;;  %v4821_v56 = vrot.slane %v4814_v54, %v4811_v45 }
 0x194   : > { %1160 = vmatprep.mubr.bf16.mxu1 %v4745_v59 }
 0x19b   : > { %1161 = vmatmul.mubr.bf16.gmra.mrb[48].mxu1 %v4755_v6 }
 0x19c   : > { %1170 = vmatprep.mubr.bf16.mxu1 %v4759_v9  ;;  %v3661_v9 = vld [vmem:[%s4609_s0 + $0x100] ss:$8 sps:$4 sm:$0xff]  }
 0x1a3   : > { %1171 = vmatmul.mubr.bf16.gmra.mrb[52].mxu1 %v4769_v22 }
 0x1a4   : > { %1180 = vmatprep.mubr.bf16.mxu1 %v4773_v25 }
 0x1ab   : > { %1181 = vmatmul.mubr.bf16.gmra.mrb[56].mxu1 %v565_v37 }
 0x1ac   : > { %1190 = vmatprep.mubr.bf16.mxu1 %v568_v39 }
 0x1b3   : > { %1191 = vmatmul.mubr.bf16.gmra.mrb[60].mxu1 %v567_v47 }
 0x20e   : > { %v1009_v58 = vpop.f32.mrb[0].mxu1 }
 0x20f   : > { %v1010_v59 = vadd.f32 %v1009_v58, %v4821_v56  ;;  %v1011_v60 = vpop.f32.mrb[1].mxu1 }
 0x210   : > { %v1012_v61 = vadd.f32 %v1011_v60, %v4825_v57  ;;  %v1013_v62 = vpop.f32.mrb[2].mxu1  ;;  %v3676_v60 = vld [vmem:[%s4609_s0 + $0x150] ss:$8 sps:$4 sm:$0xff]  }
 0x211   : > { %v1014_v63 = vadd.f32 %v1013_v62, %v4821_v56  ;;  %v1015_v0 = vpop.f32.mrb[3].mxu1  ;;  %v1201_v2 = vmax.f32 %v1010_v59, 0.0 }
 0x212   : > { %v1016_v1 = vadd.f32 %v1015_v0, %v4825_v57  ;;  %v1202_v4 = vmax.f32 %v1012_v61, 0.0 }
 0x213   : > { %v1205_v3 = vmax.f32 %v1014_v63, 0.0  ;;  %v3681_v63 = vld [vmem:[%s4609_s0 + $0x164] ss:$8 sps:$4 sm:$0xff]  }
 0x214   : > { %v1206_v5 = vmax.f32 %v1016_v1, 0.0 }
 0x215   : > { %v1297_v6 = vpack.c.bf16 %v1205_v3, %v1201_v2 }
 0x216   : > { %v1019_v7 = vpop.f32.mrb[4].mxu1  ;;  %v1298_v8 = vpack.c.bf16 %v1206_v5, %v1202_v4  ;;  %v3679_v5 = vld [vmem:[%s4609_s0 + $0x160] ss:$8 sps:$4 sm:$0xff]  }
 0x217   : > { %v1020_v10 = vadd.f32 %v1019_v7, %v4821_v56  ;;  %v1021_v11 = vpop.f32.mrb[5].mxu1 }
 0x218   : > { %v1022_v14 = vadd.f32 %v1021_v11, %v4825_v57  ;;  %v1023_v15 = vpop.f32.mrb[6].mxu1  ;;  %1745 = vmatprep.mubr.bf16.mxu0 %v1298_v8  ;;  %v3684_v8 = vld [vmem:[%s4609_s0 + $0x174] ss:$8 sps:$4 sm:$0xff]  }
 0x219   : > { %v1024_v17 = vadd.f32 %v1023_v15, %v4821_v56  ;;  %v1025_v18 = vpop.f32.mrb[7].mxu1  ;;  %1746 = vmatmul.mubr.bf16.vlgmr.msra.gmra.mrb[0].mxu0 %v1297_v6  ;;  %v1209_v21 = vmax.f32 %v1020_v10, 0.0  ;;  %v3682_v15 = vld [vmem:[%s4609_s0 + $0x170] ss:$8 sps:$4 sm:$0xff]  }
 0x21a   : > { %v1026_v19 = vadd.f32 %v1025_v18, %v4825_v57  ;;  %1827 = vmatpush1.bf16.msra.mxu0 %v3661_v9  ;;  %v1210_v24 = vmax.f32 %v1022_v14, 0.0 }
 0x21b   : > { %v1213_v22 = vmax.f32 %v1024_v17, 0.0  ;;  %1828 = vmatprep.subr.bf16.mxu0 %v3666_v12 }
 0x21c   : > { %v1214_v25 = vmax.f32 %v1026_v19, 0.0  ;;  %v3687_v19 = vld [vmem:[%s4609_s0 + $0x184] ss:$8 sps:$4 sm:$0xff]  }
 0x21d   : > { %v1301_v26 = vpack.c.bf16 %v1213_v22, %v1209_v21 }
 0x21e   : > { %v1302_v28 = vpack.c.bf16 %v1214_v25, %v1210_v24  ;;  %v1029_v29 = vpop.f32.mrb[8].mxu1  ;;  %1829 = vmatpush1.bf16.msra.mxu0 %v3664_v20  ;;  %v3685_v25 = vld [vmem:[%s4609_s0 + $0x180] ss:$8 sps:$4 sm:$0xff]  }
 0x21f   : > { %v1030_v32 = vadd.f32 %v1029_v29, %v4821_v56  ;;  %v1031_v33 = vpop.f32.mrb[9].mxu1  ;;  %1830 = vmatprep.subr.bf16.mxu0 %v3669_v23  ;;  %v3690_v29 = vld [vmem:[%s4609_s0 + $0x194] ss:$8 sps:$4 sm:$0xff]  }
 0x220   : > { %v1032_v35 = vadd.f32 %v1031_v33, %v4825_v57  ;;  %v1033_v36 = vpop.f32.mrb[10].mxu1  ;;  %1755 = vmatprep.mubr.bf16.mxu0 %v1302_v28 }
 0x221   : > { %v1034_v37 = vadd.f32 %v1033_v36, %v4821_v56  ;;  %v1035_v38 = vpop.f32.mrb[11].mxu1  ;;  %1756 = vmatmul.mubr.bf16.gmra.mrb[4].mxu0 %v1301_v26  ;;  %v1217_v41 = vmax.f32 %v1030_v32, 0.0  ;;  %v3688_v36 = vld [vmem:[%s4609_s0 + $0x190] ss:$8 sps:$4 sm:$0xff]  }
 0x222   : > { %v1036_v39 = vadd.f32 %v1035_v38, %v4825_v57  ;;  %1831 = vmatpush1.bf16.msra.mxu0 %v3667_v30  ;;  %v1218_v46 = vmax.f32 %v1032_v35, 0.0 }
 0x223   : > { %v1221_v42 = vmax.f32 %v1034_v37, 0.0  ;;  %1832 = vmatprep.subr.bf16.mxu0 %v3672_v34 }
 0x224   : > { %v1222_v47 = vmax.f32 %v1036_v39, 0.0  ;;  %v3693_v39 = vld [vmem:[%s4609_s0 + $0x1a4] ss:$8 sps:$4 sm:$0xff]  }
 0x225   : > { %v1305_v49 = vpack.c.bf16 %v1221_v42, %v1217_v41 }
 0x226   : > { %v1306_v50 = vpack.c.bf16 %v1222_v47, %v1218_v46  ;;  %v1039_v51 = vpop.f32.mrb[12].mxu1  ;;  %1833 = vmatpush1.bf16.msra.mxu0 %v3670_v40  ;;  %v3691_v47 = vld [vmem:[%s4609_s0 + $0x1a0] ss:$8 sps:$4 sm:$0xff]  }
 0x227   : > { %v1040_v48 = vadd.f32 %v1039_v51, %v4821_v56  ;;  %v1041_v53 = vpop.f32.mrb[13].mxu1  ;;  %1834 = vmatprep.subr.bf16.mxu0 %v3675_v44  ;;  %v3696_v51 = vld [vmem:[%s4609_s0 + $0x1b4] ss:$8 sps:$4 sm:$0xff]  }
 0x228   : > { %v1042_v16 = vadd.f32 %v1041_v53, %v4825_v57  ;;  %v1043_v27 = vpop.f32.mrb[14].mxu1  ;;  %1765 = vmatprep.mubr.bf16.mxu0 %v1306_v50 }
 0x229   : > { %v1044_v31 = vadd.f32 %v1043_v27, %v4821_v56  ;;  %v1045_v58 = vpop.f32.mrb[15].mxu1  ;;  %1766 = vmatmul.mubr.bf16.gmra.mrb[8].mxu0 %v1305_v49  ;;  %v1225_v61 = vmax.f32 %v1040_v48, 0.0  ;;  %v3694_v27 = vld [vmem:[%s4609_s0 + $0x1b0] ss:$8 sps:$4 sm:$0xff]  }
 0x22a   : > { %v1046_v59 = vadd.f32 %v1045_v58, %v4825_v57  ;;  %1835 = vmatpush1.bf16.msra.mxu0 %v3673_v52  ;;  %v1226_v0 = vmax.f32 %v1042_v16, 0.0 }
 0x22b   : > { %v1229_v62 = vmax.f32 %v1044_v31, 0.0  ;;  %1836 = vmatprep.subr.bf16.mxu0 %v3678_v13 }
 0x22c   : > { %v1230_v1 = vmax.f32 %v1046_v59, 0.0  ;;  %v3699_v59 = vld [vmem:[%s4609_s0 + $0x1c4] ss:$8 sps:$4 sm:$0xff]  }
 0x22d   : > { %v1309_v2 = vpack.c.bf16 %v1229_v62, %v1225_v61 }
 0x22e   : > { %v1310_v3 = vpack.c.bf16 %v1230_v1, %v1226_v0  ;;  %v1049_v4 = vpop.f32.mrb[16].mxu1  ;;  %1837 = vmatpush1.bf16.msra.mxu0 %v3676_v60  ;;  %v3697_v1 = vld [vmem:[%s4609_s0 + $0x1c0] ss:$8 sps:$4 sm:$0xff]  }
 0x22f   : > { %v1050_v6 = vadd.f32 %v1049_v4, %v4821_v56  ;;  %v1051_v7 = vpop.f32.mrb[17].mxu1  ;;  %1838 = vmatprep.subr.bf16.mxu0 %v3681_v63  ;;  %v3702_v4 = vld [vmem:[%s4609_s0 + $0x1d4] ss:$8 sps:$4 sm:$0xff]  }
 0x230   : > { %v1052_v9 = vadd.f32 %v1051_v7, %v4825_v57  ;;  %v1053_v10 = vpop.f32.mrb[18].mxu1  ;;  %1775 = vmatprep.mubr.bf16.mxu0 %v1310_v3 }
 0x231   : > { %v1054_v11 = vadd.f32 %v1053_v10, %v4821_v56  ;;  %v1055_v12 = vpop.f32.mrb[19].mxu1  ;;  %1776 = vmatmul.mubr.bf16.gmra.mrb[12].mxu0 %v1309_v2  ;;  %v1233_v17 = vmax.f32 %v1050_v6, 0.0 }
 0x232   : > { %v1056_v14 = vadd.f32 %v1055_v12, %v4825_v57  ;;  %1839 = vmatpush1.bf16.msra.mxu0 %v3679_v5  ;;  %v1234_v20 = vmax.f32 %v1052_v9, 0.0  ;;  %v4883_v5 = vsub.s32 2, %v4808_v43  ;;  %v3700_v12 = vld [vmem:[%s4609_s0 + $0x1d0] ss:$8 sps:$4 sm:$0xff]  }
 0x233   : > { %v1237_v18 = vmax.f32 %v1054_v11, 0.0  ;;  %1840 = vmatprep.subr.bf16.mxu0 %v3684_v8  ;;  %v649_v8 = vsub.s32 3, %v4808_v43 }
 0x234   : > { %v1238_v21 = vmax.f32 %v1056_v14, 0.0 }
 0x235   : > { %v1313_v22 = vpack.c.bf16 %v1237_v18, %v1233_v17  ;;  %v4892_v17 = vrot.slane %v4814_v54, %v4883_v5  ;;  %v3705_v18 = vld [vmem:[%s4609_s0 + $0x1e4] ss:$8 sps:$4 sm:$0xff]  }
 0x236   : > { %v1314_v23 = vpack.c.bf16 %v1238_v21, %v1234_v20  ;;  %v1059_v24 = vpop.f32.mrb[20].mxu1  ;;  %1841 = vmatpush1.bf16.msra.mxu0 %v3682_v15 }
 0x237   : > { %v1060_v26 = vadd.f32 %v1059_v24, %v4821_v56  ;;  %v1061_v28 = vpop.f32.mrb[21].mxu1  ;;  %1842 = vmatprep.subr.bf16.mxu0 %v3687_v19 }
 0x238   : > { %v1062_v30 = vadd.f32 %v1061_v28, %v4825_v57  ;;  %v1063_v32 = vpop.f32.mrb[22].mxu1  ;;  %1785 = vmatprep.mubr.bf16.mxu0 %v1314_v23  ;;  %v3703_v23 = vld [vmem:[%s4609_s0 + $0x1e0] ss:$8 sps:$4 sm:$0xff]  }
 0x239   : > { %v1064_v33 = vadd.f32 %v1063_v32, %v4821_v56  ;;  %v1065_v34 = vpop.f32.mrb[23].mxu1  ;;  %1786 = vmatmul.mubr.bf16.gmra.mrb[16].mxu0 %v1313_v22  ;;  %v1241_v37 = vmax.f32 %v1060_v26, 0.0  ;;  %v3708_v26 = vld [vmem:[%s4609_s0 + $0x1f4] ss:$8 sps:$4 sm:$0xff]  }
 0x23a   : > { %v1066_v35 = vadd.f32 %v1065_v34, %v4825_v57  ;;  %1843 = vmatpush1.bf16.msra.mxu0 %v3685_v25  ;;  %v1242_v40 = vmax.f32 %v1062_v30, 0.0 }
 0x23b   : > { %v1245_v38 = vmax.f32 %v1064_v33, 0.0  ;;  %1844 = vmatprep.subr.bf16.mxu0 %v3690_v29  ;;  %v3706_v33 = vld [vmem:[%s4609_s0 + $0x1f0] ss:$8 sps:$4 sm:$0xff]  }
 0x23c   : > { %v1246_v41 = vmax.f32 %v1066_v35, 0.0 }
 0x23d   : > { %v1317_v42 = vpack.c.bf16 %v1245_v38, %v1241_v37 }
 0x23e   : > { %v1318_v44 = vpack.c.bf16 %v1246_v41, %v1242_v40  ;;  %v1069_v46 = vpop.f32.mrb[24].mxu1  ;;  %1845 = vmatpush1.bf16.msra.mxu0 %v3688_v36 }
 0x23f   : > { %v1070_v49 = vadd.f32 %v1069_v46, %v4821_v56  ;;  %v1071_v50 = vpop.f32.mrb[25].mxu1  ;;  %1846 = vmatprep.subr.bf16.mxu0 %v3693_v39 }
 0x240   : > { %v1072_v52 = vadd.f32 %v1071_v50, %v4825_v57  ;;  %v1073_v48 = vpop.f32.mrb[26].mxu1  ;;  %1795 = vmatprep.mubr.bf16.mxu0 %v1318_v44 }
 0x241   : > { %v1074_v53 = vadd.f32 %v1073_v48, %v4821_v56  ;;  %v1075_v13 = vpop.f32.mrb[27].mxu1  ;;  %1796 = vmatmul.mubr.bf16.gmra.mrb[20].mxu0 %v1317_v42  ;;  %v1249_v31 = vmax.f32 %v1070_v49, 0.0 }
 0x242   : > { %v1076_v16 = vadd.f32 %v1075_v13, %v4825_v57  ;;  %1847 = vmatpush1.bf16.msra.mxu0 %v3691_v47  ;;  %v1250_v60 = vmax.f32 %v1072_v52, 0.0 }
 0x243   : > { %v1253_v58 = vmax.f32 %v1074_v53, 0.0  ;;  %1848 = vmatprep.subr.bf16.mxu0 %v3696_v51 }
 0x244   : > { %v1254_v61 = vmax.f32 %v1076_v16, 0.0 }
 0x245   : > { %v1321_v62 = vpack.c.bf16 %v1253_v58, %v1249_v31 }
 0x246   : > { %v1322_v63 = vpack.c.bf16 %v1254_v61, %v1250_v60  ;;  %v1079_v0 = vpop.f32.mrb[28].mxu1  ;;  %1849 = vmatpush1.bf16.msra.mxu0 %v3694_v27 }
 0x247   : > { %v1080_v2 = vadd.f32 %v1079_v0, %v4821_v56  ;;  %v1081_v3 = vpop.f32.mrb[29].mxu1  ;;  %1850 = vmatprep.subr.bf16.mxu0 %v3699_v59 }
 0x248   : > { %v1082_v6 = vadd.f32 %v1081_v3, %v4825_v57  ;;  %v1083_v7 = vpop.f32.mrb[30].mxu1  ;;  %1805 = vmatprep.mubr.bf16.mxu0 %v1322_v63 }
 0x249   : > { %v1084_v9 = vadd.f32 %v1083_v7, %v4821_v56  ;;  %v1085_v10 = vpop.f32.mrb[31].mxu1  ;;  %1806 = vmatmul.mubr.bf16.gmra.mrb[24].mxu0 %v1321_v62  ;;  %v1257_v14 = vmax.f32 %v1080_v2, 0.0  ;;  %v4896_v56 = vrot.slane %v4814_v54, %v649_v8 }
 0x24a   : > { %v1086_v11 = vadd.f32 %v1085_v10, %v4825_v57  ;;  %1851 = vmatpush1.bf16.msra.mxu0 %v3697_v1  ;;  %v1258_v19 = vmax.f32 %v1082_v6, 0.0 }
 0x24b   : > { %v1261_v15 = vmax.f32 %v1084_v9, 0.0  ;;  %1852 = vmatprep.subr.bf16.mxu0 %v3702_v4 }
 0x24c   : > { %v1262_v20 = vmax.f32 %v1086_v11, 0.0 }
 0x24d   : > { %v1325_v21 = vpack.c.bf16 %v1261_v15, %v1257_v14 }
 0x24e   : > { %v1326_v22 = vpack.c.bf16 %v1262_v20, %v1258_v19  ;;  %v1122_v57 = vpop.f32.mrb[32].mxu1  ;;  %1853 = vmatpush1.bf16.msra.mxu0 %v3700_v12 }
 0x24f   : > { %v1123_v24 = vadd.f32 %v1122_v57, %v4892_v17  ;;  %v1124_v25 = vpop.f32.mrb[33].mxu1  ;;  %1854 = vmatprep.subr.bf16.mxu0 %v3705_v18 }
 0x250   : > { %v1125_v28 = vadd.f32 %v1124_v25, %v4896_v56  ;;  %v1126_v29 = vpop.f32.mrb[34].mxu1  ;;  %1815 = vmatprep.mubr.bf16.mxu0 %v1326_v22 }
 0x251   : > { %v1127_v30 = vadd.f32 %v1126_v29, %v4892_v17  ;;  %v1128_v32 = vpop.f32.mrb[35].mxu1  ;;  %1816 = vmatmul.mubr.bf16.gmra.mrb[28].mxu0 %v1325_v21  ;;  %v1203_v34 = vmax.f32 %v1123_v24, 0.0 }
 0x252   : > { %v1129_v54 = vadd.f32 %v1128_v32, %v4896_v56  ;;  %1855 = vmatpush1.bf16.msra.mxu0 %v3703_v23  ;;  %v1204_v36 = vmax.f32 %v1125_v28, 0.0 }
 0x253   : > { %v1207_v35 = vmax.f32 %v1127_v30, 0.0  ;;  %1856 = vmatprep.subr.bf16.mxu0 %v3708_v26 }
 0x254   : > { %v1208_v37 = vmax.f32 %v1129_v54, 0.0 }
 0x255   : > { %v1299_v38 = vpack.c.bf16 %v1207_v35, %v1203_v34 }
 0x256   : > { %v1300_v39 = vpack.c.bf16 %v1208_v37, %v1204_v36  ;;  %v1132_v40 = vpop.f32.mrb[36].mxu1  ;;  %1857 = vmatpush1.bf16.msra.mxu0 %v3706_v33 }
 0x257   : > { %v1133_v41 = vadd.f32 %v1132_v40, %v4892_v17  ;;  %v1134_v42 = vpop.f32.mrb[37].mxu1 }
 0x258   : > { %v1135_v44 = vadd.f32 %v1134_v42, %v4896_v56  ;;  %v1136_v46 = vpop.f32.mrb[38].mxu1  ;;  %1858 = vmatprep.mubr.bf16.mxu0 %v1300_v39 }
 0x259   : > { %v1137_v47 = vadd.f32 %v1136_v46, %v4892_v17  ;;  %v1138_v49 = vpop.f32.mrb[39].mxu1  ;;  %1859 = vmatmul.mubr.bf16.vlgmr.msra.gmra.mrb[0].mxu0 %v1299_v38  ;;  %v1211_v51 = vmax.f32 %v1133_v41, 0.0 }
 0x25a   : > { %v1139_v50 = vadd.f32 %v1138_v49, %v4896_v56  ;;  %v1212_v48 = vmax.f32 %v1135_v44, 0.0 }
 0x25b   : > { %v1215_v52 = vmax.f32 %v1137_v47, 0.0 }
 0x25c   : > { %v1216_v53 = vmax.f32 %v1139_v50, 0.0 }
 0x25d   : > { %v1303_v13 = vpack.c.bf16 %v1215_v52, %v1211_v51 }
 0x25e   : > { %v1304_v16 = vpack.c.bf16 %v1216_v53, %v1212_v48  ;;  %v1142_v27 = vpop.f32.mrb[40].mxu1 }
 0x25f   : > { %v1143_v31 = vadd.f32 %v1142_v27, %v4892_v17  ;;  %v1144_v58 = vpop.f32.mrb[41].mxu1 }
 0x260   : > { %v1145_v59 = vadd.f32 %v1144_v58, %v4896_v56  ;;  %v1146_v60 = vpop.f32.mrb[42].mxu1  ;;  %1868 = vmatprep.mubr.bf16.mxu0 %v1304_v16 }
 0x261   : > { %v1147_v61 = vadd.f32 %v1146_v60, %v4892_v17  ;;  %v1148_v62 = vpop.f32.mrb[43].mxu1  ;;  %1869 = vmatmul.mubr.bf16.gmra.mrb[4].mxu0 %v1303_v13  ;;  %v1219_v0 = vmax.f32 %v1143_v31, 0.0 }
 0x262   : > { %v1149_v63 = vadd.f32 %v1148_v62, %v4896_v56  ;;  %v1220_v2 = vmax.f32 %v1145_v59, 0.0 }
 0x263   : > { %v1223_v1 = vmax.f32 %v1147_v61, 0.0 }
 0x264   : > { %v1224_v3 = vmax.f32 %v1149_v63, 0.0 }
 0x265   : > { %v1307_v4 = vpack.c.bf16 %v1223_v1, %v1219_v0 }
 0x266   : > { %v1308_v6 = vpack.c.bf16 %v1224_v3, %v1220_v2  ;;  %v1152_v7 = vpop.f32.mrb[44].mxu1 }
 0x267   : > { %v1153_v8 = vadd.f32 %v1152_v7, %v4892_v17  ;;  %v1154_v9 = vpop.f32.mrb[45].mxu1 }
 0x268   : > { %v1155_v10 = vadd.f32 %v1154_v9, %v4896_v56  ;;  %v1156_v11 = vpop.f32.mrb[46].mxu1  ;;  %1878 = vmatprep.mubr.bf16.mxu0 %v1308_v6 }
 0x269   : > { %v1157_v12 = vadd.f32 %v1156_v11, %v4892_v17  ;;  %v1158_v14 = vpop.f32.mrb[47].mxu1  ;;  %1879 = vmatmul.mubr.bf16.gmra.mrb[8].mxu0 %v1307_v4  ;;  %v1227_v18 = vmax.f32 %v1153_v8, 0.0 }
 0x26a   : > { %v1159_v15 = vadd.f32 %v1158_v14, %v4896_v56  ;;  %v1228_v20 = vmax.f32 %v1155_v10, 0.0 }
 0x26b   : > { %v1231_v19 = vmax.f32 %v1157_v12, 0.0 }
 0x26c   : > { %v1232_v21 = vmax.f32 %v1159_v15, 0.0 }
 0x26d   : > { %v1311_v22 = vpack.c.bf16 %v1231_v19, %v1227_v18 }
 0x26e   : > { %v1312_v57 = vpack.c.bf16 %v1232_v21, %v1228_v20  ;;  %v1162_v23 = vpop.f32.mrb[48].mxu1 }
 0x26f   : > { %v1163_v24 = vadd.f32 %v1162_v23, %v4892_v17  ;;  %v1164_v25 = vpop.f32.mrb[49].mxu1 }
 0x270   : > { %v1165_v26 = vadd.f32 %v1164_v25, %v4896_v56  ;;  %v1166_v28 = vpop.f32.mrb[50].mxu1  ;;  %1888 = vmatprep.mubr.bf16.mxu0 %v1312_v57  ;;  %v1266_v57 = vld [vmem:[#allocation3 + $0x8] sm:$0xff] }
 0x271   : > { %v1167_v29 = vadd.f32 %v1166_v28, %v4892_v17  ;;  %v1168_v30 = vpop.f32.mrb[51].mxu1  ;;  %1889 = vmatmul.mubr.bf16.gmra.mrb[12].mxu0 %v1311_v22  ;;  %v1235_v54 = vmax.f32 %v1163_v24, 0.0  ;;  %v1265_v22 = vld [vmem:[#allocation3] sm:$0xff]  ;;  %v1267_v24 = vld [vmem:[#allocation3 + $0x10] sm:$0xff]  ;;  %v1268_v28 = vld [vmem:[#allocation3 + $0x18] sm:$0xff] }
 0x272   : > { %v1169_v32 = vadd.f32 %v1168_v30, %v4896_v56  ;;  %v1236_v34 = vmax.f32 %v1165_v26, 0.0 }
 0x273   : > { %v1239_v33 = vmax.f32 %v1167_v29, 0.0 }
 0x274   : > { %v1240_v35 = vmax.f32 %v1169_v32, 0.0 }
 0x275   : > { %v1315_v36 = vpack.c.bf16 %v1239_v33, %v1235_v54  ;;  %v1269_v54 = vld [vmem:[#allocation3 + $0x20] sm:$0xff]  ;;  %v1270_v33 = vld [vmem:[#allocation3 + $0x28] sm:$0xff] }
 0x276   : > { %v1316_v37 = vpack.c.bf16 %v1240_v35, %v1236_v34  ;;  %v1172_v38 = vpop.f32.mrb[52].mxu1  ;;  %v1271_v35 = vld [vmem:[#allocation3 + $0x30] sm:$0xff] }
 0x277   : > { %v1173_v39 = vadd.f32 %v1172_v38, %v4892_v17  ;;  %v1174_v40 = vpop.f32.mrb[53].mxu1  ;;  %v1272_v38 = vld [vmem:[#allocation3 + $0x38] sm:$0xff] }
 0x278   : > { %v1175_v41 = vadd.f32 %v1174_v40, %v4896_v56  ;;  %v1176_v42 = vpop.f32.mrb[54].mxu1  ;;  %1898 = vmatprep.mubr.bf16.mxu0 %v1316_v37 }
 0x279   : > { %v1177_v44 = vadd.f32 %v1176_v42, %v4892_v17  ;;  %v1178_v46 = vpop.f32.mrb[55].mxu1  ;;  %1899 = vmatmul.mubr.bf16.gmra.mrb[16].mxu0 %v1315_v36  ;;  %v1243_v49 = vmax.f32 %v1173_v39, 0.0 }
 0x27a   : > { %v1179_v47 = vadd.f32 %v1178_v46, %v4896_v56  ;;  %v1244_v51 = vmax.f32 %v1175_v41, 0.0  ;;  %v1273_v46 = vld [vmem:[#allocation3 + $0x40] sm:$0xff] }
 0x27b   : > { %v1247_v50 = vmax.f32 %v1177_v44, 0.0 }
 0x27c   : > { %v1248_v52 = vmax.f32 %v1179_v47, 0.0  ;;  %v1274_v47 = vld [vmem:[#allocation3 + $0x48] sm:$0xff] }
 0x27d   : > { %v1319_v48 = vpack.c.bf16 %v1247_v50, %v1243_v49  ;;  %v1275_v50 = vld [vmem:[#allocation3 + $0x50] sm:$0xff] }
 0x27e   : > { %v1320_v53 = vpack.c.bf16 %v1248_v52, %v1244_v51  ;;  %v1182_v13 = vpop.f32.mrb[56].mxu1 }
 0x27f   : > { %v1183_v16 = vadd.f32 %v1182_v13, %v4892_v17  ;;  %v1184_v27 = vpop.f32.mrb[57].mxu1 }
 0x280   : > { %v1185_v31 = vadd.f32 %v1184_v27, %v4896_v56  ;;  %v1186_v58 = vpop.f32.mrb[58].mxu1  ;;  %1908 = vmatprep.mubr.bf16.mxu0 %v1320_v53 }
 0x281   : > { %v1187_v59 = vadd.f32 %v1186_v58, %v4892_v17  ;;  %v1188_v60 = vpop.f32.mrb[59].mxu1  ;;  %1909 = vmatmul.mubr.bf16.gmra.mrb[20].mxu0 %v1319_v48  ;;  %v1251_v62 = vmax.f32 %v1183_v16, 0.0  ;;  %v1276_v48 = vld [vmem:[#allocation3 + $0x58] sm:$0xff]  ;;  %v1277_v58 = vld [vmem:[#allocation3 + $0x60] sm:$0xff] }
 0x282   : > { %v1189_v61 = vadd.f32 %v1188_v60, %v4896_v56  ;;  %v1252_v0 = vmax.f32 %v1185_v31, 0.0 }
 0x283   : > { %v1255_v63 = vmax.f32 %v1187_v59, 0.0  ;;  %v1278_v59 = vld [vmem:[#allocation3 + $0x68] sm:$0xff] }
 0x284   : > { %v1256_v1 = vmax.f32 %v1189_v61, 0.0  ;;  %v1279_v61 = vld [vmem:[#allocation3 + $0x70] sm:$0xff] }
 0x285   : > { %v1323_v2 = vpack.c.bf16 %v1255_v63, %v1251_v62 }
 0x286   : > { %v1324_v3 = vpack.c.bf16 %v1256_v1, %v1252_v0  ;;  %v1192_v4 = vpop.f32.mrb[60].mxu1  ;;  %v1280_v0 = vld [vmem:[#allocation3 + $0x78] sm:$0xff] }
 0x287   : > { %v1193_v6 = vadd.f32 %v1192_v4, %v4892_v17  ;;  %v1194_v7 = vpop.f32.mrb[61].mxu1 }
 0x288   : > { %v1195_v8 = vadd.f32 %v1194_v7, %v4896_v56  ;;  %v1196_v9 = vpop.f32.mrb[62].mxu1  ;;  %1918 = vmatprep.mubr.bf16.mxu0 %v1324_v3  ;;  %v1281_v7 = vld [vmem:[#allocation3 + $0x80] sm:$0xff] }
 0x289   : > { %v1197_v10 = vadd.f32 %v1196_v9, %v4892_v17  ;;  %v1198_v11 = vpop.f32.mrb[63].mxu1  ;;  %1919 = vmatmul.mubr.bf16.gmra.mrb[24].mxu0 %v1323_v2  ;;  %v1259_v14 = vmax.f32 %v1193_v6, 0.0 }
 0x28a   : > { %v1199_v12 = vadd.f32 %v1198_v11, %v4896_v56  ;;  %v1260_v18 = vmax.f32 %v1195_v8, 0.0  ;;  %v1282_v8 = vld [vmem:[#allocation3 + $0x88] sm:$0xff] }
 0x28b   : > { %v1263_v15 = vmax.f32 %v1197_v10, 0.0  ;;  %v1283_v10 = vld [vmem:[#allocation3 + $0x90] sm:$0xff] }
 0x28c   : > { %v1264_v19 = vmax.f32 %v1199_v12, 0.0 }
 0x28d   : > { %v1327_v20 = vpack.c.bf16 %v1263_v15, %v1259_v14  ;;  %v1284_v14 = vld [vmem:[#allocation3 + $0x98] sm:$0xff] }
 0x28e   : > { %v1328_v21 = vpack.c.bf16 %v1264_v19, %v1260_v18 }
 0x290   : > { %1928 = vmatprep.mubr.bf16.mxu0 %v1328_v21 }
 0x291   : > { %1929 = vmatmul.mubr.bf16.gmra.mrb[28].mxu0 %v1327_v20 }
 0x32c   : > { %v1860_v23 = vpop.f32.mrb[0].mxu0 }
 0x32d   : > { %v1939_v25 = vadd.f32 %v1860_v23, %v1265_v22  ;;  %v1862_v26 = vpop.f32.mrb[1].mxu0  ;;  %v1285_v22 = vld [vmem:[#allocation3 + $0xa0] sm:$0xff] }
 0x32e   : > { %v1940_v17 = vadd.f32 %v1862_v26, %v1266_v57  ;;  %v1864_v29 = vpop.f32.mrb[2].mxu0  ;;  %v1286_v57 = vld [vmem:[#allocation3 + $0xa8] sm:$0xff] }
 0x32f   : > { %1971 = vst [vmem:[#allocation3] sm:$0xff] %v1939_v25  ;;  %v1941_v30 = vadd.f32 %v1864_v29, %v1267_v24  ;;  %v1866_v56 = vpop.f32.mrb[3].mxu0  ;;  %v1287_v24 = vld [vmem:[#allocation3 + $0xb0] sm:$0xff] }
 0x330   : > { %1972 = vst [vmem:[#allocation3 + $0x8] sm:$0xff] %v1940_v17  ;;  %v1942_v32 = vadd.f32 %v1866_v56, %v1268_v28  ;;  %v1288_v28 = vld [vmem:[#allocation3 + $0xb8] sm:$0xff] }
 0x331   : > { %1973 = vst [vmem:[#allocation3 + $0x10] sm:$0xff] %v1941_v30 }
 0x332   : > { %1974 = vst [vmem:[#allocation3 + $0x18] sm:$0xff] %v1942_v32 }
 0x334   : > { %v1870_v34 = vpop.f32.mrb[4].mxu0 }
 0x335   : > { %v1943_v36 = vadd.f32 %v1870_v34, %v1269_v54  ;;  %v1872_v37 = vpop.f32.mrb[5].mxu0  ;;  %v1289_v54 = vld [vmem:[#allocation3 + $0xc0] sm:$0xff] }
 0x336   : > { %v1944_v39 = vadd.f32 %v1872_v37, %v1270_v33  ;;  %v1874_v40 = vpop.f32.mrb[6].mxu0  ;;  %v1290_v33 = vld [vmem:[#allocation3 + $0xc8] sm:$0xff] }
 0x337   : > { %1975 = vst [vmem:[#allocation3 + $0x20] sm:$0xff] %v1943_v36  ;;  %v1945_v41 = vadd.f32 %v1874_v40, %v1271_v35  ;;  %v1876_v42 = vpop.f32.mrb[7].mxu0  ;;  %v1291_v35 = vld [vmem:[#allocation3 + $0xd0] sm:$0xff] }
 0x338   : > { %1976 = vst [vmem:[#allocation3 + $0x28] sm:$0xff] %v1944_v39  ;;  %v1946_v44 = vadd.f32 %v1876_v42, %v1272_v38  ;;  %v1292_v38 = vld [vmem:[#allocation3 + $0xd8] sm:$0xff] }
 0x339   : > { %1977 = vst [vmem:[#allocation3 + $0x30] sm:$0xff] %v1945_v41 }
 0x33a   : > { %1978 = vst [vmem:[#allocation3 + $0x38] sm:$0xff] %v1946_v44 }
 0x33c   : > { %v1880_v49 = vpop.f32.mrb[8].mxu0 }
 0x33d   : > { %v1947_v51 = vadd.f32 %v1880_v49, %v1273_v46  ;;  %v1882_v52 = vpop.f32.mrb[9].mxu0  ;;  %v1293_v46 = vld [vmem:[#allocation3 + $0xe0] sm:$0xff] }
 0x33e   : > { %v1948_v53 = vadd.f32 %v1882_v52, %v1274_v47  ;;  %v1884_v13 = vpop.f32.mrb[10].mxu0  ;;  %v1294_v47 = vld [vmem:[#allocation3 + $0xe8] sm:$0xff] }
 0x33f   : > { %1979 = vst [vmem:[#allocation3 + $0x40] sm:$0xff] %v1947_v51  ;;  %v1949_v16 = vadd.f32 %v1884_v13, %v1275_v50  ;;  %v1886_v27 = vpop.f32.mrb[11].mxu0  ;;  %v1295_v50 = vld [vmem:[#allocation3 + $0xf0] sm:$0xff] }
 0x340   : > { %1980 = vst [vmem:[#allocation3 + $0x48] sm:$0xff] %v1948_v53  ;;  %v1950_v31 = vadd.f32 %v1886_v27, %v1276_v48  ;;  %v1296_v48 = vld [vmem:[#allocation3 + $0xf8] sm:$0xff] }
 0x341   : > { %1981 = vst [vmem:[#allocation3 + $0x50] sm:$0xff] %v1949_v16 }
 0x342   : > { %1982 = vst [vmem:[#allocation3 + $0x58] sm:$0xff] %v1950_v31 }
 0x344   : > { %v1890_v60 = vpop.f32.mrb[12].mxu0 }
 0x345   : > { %v1951_v62 = vadd.f32 %v1890_v60, %v1277_v58  ;;  %v1892_v63 = vpop.f32.mrb[13].mxu0 }
 0x346   : > { %v1952_v1 = vadd.f32 %v1892_v63, %v1278_v59  ;;  %v1894_v2 = vpop.f32.mrb[14].mxu0 }
 0x347   : > { %1983 = vst [vmem:[#allocation3 + $0x60] sm:$0xff] %v1951_v62  ;;  %v1953_v3 = vadd.f32 %v1894_v2, %v1279_v61  ;;  %v1896_v4 = vpop.f32.mrb[15].mxu0 }
 0x348   : > { %1984 = vst [vmem:[#allocation3 + $0x68] sm:$0xff] %v1952_v1  ;;  %v1954_v6 = vadd.f32 %v1896_v4, %v1280_v0 }
 0x349   : > { %1985 = vst [vmem:[#allocation3 + $0x70] sm:$0xff] %v1953_v3 }
 0x34a   : > { %1986 = vst [vmem:[#allocation3 + $0x78] sm:$0xff] %v1954_v6 }
 0x34c   : > { %v1900_v9 = vpop.f32.mrb[16].mxu0 }
 0x34d   : > { %v1955_v11 = vadd.f32 %v1900_v9, %v1281_v7  ;;  %v1902_v12 = vpop.f32.mrb[17].mxu0 }
 0x34e   : > { %v1956_v15 = vadd.f32 %v1902_v12, %v1282_v8  ;;  %v1904_v18 = vpop.f32.mrb[18].mxu0 }
 0x34f   : > { %1987 = vst [vmem:[#allocation3 + $0x80] sm:$0xff] %v1955_v11  ;;  %v1957_v19 = vadd.f32 %v1904_v18, %v1283_v10  ;;  %v1906_v20 = vpop.f32.mrb[19].mxu0 }
 0x350   : > { %1988 = vst [vmem:[#allocation3 + $0x88] sm:$0xff] %v1956_v15  ;;  %v1958_v21 = vadd.f32 %v1906_v20, %v1284_v14 }
 0x351   : > { %1989 = vst [vmem:[#allocation3 + $0x90] sm:$0xff] %v1957_v19 }
 0x352   : > { %1990 = vst [vmem:[#allocation3 + $0x98] sm:$0xff] %v1958_v21 }
 0x354   : > { %v1910_v23 = vpop.f32.mrb[20].mxu0 }
 0x355   : > { %v1959_v25 = vadd.f32 %v1910_v23, %v1285_v22  ;;  %v1912_v26 = vpop.f32.mrb[21].mxu0 }
 0x356   : > { %v1960_v17 = vadd.f32 %v1912_v26, %v1286_v57  ;;  %v1914_v29 = vpop.f32.mrb[22].mxu0 }
 0x357   : > { %1991 = vst [vmem:[#allocation3 + $0xa0] sm:$0xff] %v1959_v25  ;;  %v1961_v30 = vadd.f32 %v1914_v29, %v1287_v24  ;;  %v1916_v56 = vpop.f32.mrb[23].mxu0 }
 0x358   : > { %1992 = vst [vmem:[#allocation3 + $0xa8] sm:$0xff] %v1960_v17  ;;  %v1962_v32 = vadd.f32 %v1916_v56, %v1288_v28 }
 0x359   : > { %1993 = vst [vmem:[#allocation3 + $0xb0] sm:$0xff] %v1961_v30 }
 0x35a   : > { %1994 = vst [vmem:[#allocation3 + $0xb8] sm:$0xff] %v1962_v32 }
 0x35c   : > { %v1920_v34 = vpop.f32.mrb[24].mxu0 }
 0x35d   : > { %v1963_v36 = vadd.f32 %v1920_v34, %v1289_v54  ;;  %v1922_v37 = vpop.f32.mrb[25].mxu0 }
 0x35e   : > { %v1964_v39 = vadd.f32 %v1922_v37, %v1290_v33  ;;  %v1924_v40 = vpop.f32.mrb[26].mxu0 }
 0x35f   : > { %1995 = vst [vmem:[#allocation3 + $0xc0] sm:$0xff] %v1963_v36  ;;  %v1965_v41 = vadd.f32 %v1924_v40, %v1291_v35  ;;  %v1926_v42 = vpop.f32.mrb[27].mxu0 }
 0x360   : > { %1996 = vst [vmem:[#allocation3 + $0xc8] sm:$0xff] %v1964_v39  ;;  %v1966_v44 = vadd.f32 %v1926_v42, %v1292_v38 }
 0x361   : > { %1997 = vst [vmem:[#allocation3 + $0xd0] sm:$0xff] %v1965_v41 }
 0x362   : > { %1998 = vst [vmem:[#allocation3 + $0xd8] sm:$0xff] %v1966_v44 }
 0x364   : > { %v1930_v49 = vpop.f32.mrb[28].mxu0  ;;  %2006 = sbr.rel (%p3298_p3) target bundleno = 1258 (0x4ea), region = 68 }
 0x365   : > { %v1967_v51 = vadd.f32 %v1930_v49, %v1293_v46  ;;  %v1932_v52 = vpop.f32.mrb[29].mxu0 }
 0x366   : > { %v1968_v53 = vadd.f32 %v1932_v52, %v1294_v47  ;;  %v1934_v13 = vpop.f32.mrb[30].mxu0 }
 0x367   : > { %1999 = vst [vmem:[#allocation3 + $0xe0] sm:$0xff] %v1967_v51  ;;  %v1969_v16 = vadd.f32 %v1934_v13, %v1295_v50  ;;  %v1936_v27 = vpop.f32.mrb[31].mxu0 }
 0x368   : > { %2000 = vst [vmem:[#allocation3 + $0xe8] sm:$0xff] %v1968_v53  ;;  %v1970_v31 = vadd.f32 %v1936_v27, %v1296_v48 }
 0x369   : > { %2001 = vst [vmem:[#allocation3 + $0xf0] sm:$0xff] %v1969_v16 }
 0x36a   : > { %2002 = vst [vmem:[#allocation3 + $0xf8] sm:$0xff] %v1970_v31 }
 0x36b   : > { %v4935_v58 = vld [vmem:[%s4622_s5] sm:$0x77]  ;;  %v2047_v59 = vsub.s32 4, %v4808_v43  ;;  %v2013_v61 = vld [vmem:[#allocation3 + $0x28] sm:$0xff]  ;;  %v2014_v1 = vld [vmem:[#allocation3 + $0x30] sm:$0xff]  ;;  %s5954_s9 = sld [smem:[#allocation21_spill]] }
 0x36c   : > { %v2012_v60 = vld [vmem:[#allocation3 + $0x20] sm:$0xff]  ;;  %v2044_v62 = vrot.slane %v4935_v58, %v4811_v45  ;;  %v2010_v2 = vld [vmem:[#allocation3 + $0x10] sm:$0xff]  ;;  %v2009_v4 = vld [vmem:[#allocation3 + $0x8] sm:$0xff] }
 0x36d   : > { %v2048_v63 = vrot.slane %v4935_v58, %v2047_v59  ;;  %v2008_v0 = vld [vmem:[#allocation3] sm:$0xff]  ;;  %v2015_v6 = vld [vmem:[#allocation3 + $0x38] sm:$0xff]  ;;  %v2018_v19 = vld [vmem:[#allocation3 + $0x50] sm:$0xff] }
 0x36e   : > { %v4942_v3 = vrot.slane %v2044_v62, %v4811_v45  ;;  %v2011_v7 = vld [vmem:[#allocation3 + $0x18] sm:$0xff]  ;;  %v2016_v21 = vld [vmem:[#allocation3 + $0x40] sm:$0xff]  ;;  %v2017_v22 = vld [vmem:[#allocation3 + $0x48] sm:$0xff] }
 0x36f   : > { %v4945_v8 = vrot.slane %v2048_v63, %v4811_v45  ;;  %v2019_v20 = vld [vmem:[#allocation3 + $0x58] sm:$0xff]  ;;  %v2022_v30 = vld [vmem:[#allocation3 + $0x70] sm:$0xff]  ;;  %v2020_v32 = vld [vmem:[#allocation3 + $0x60] sm:$0xff] }
 0x370   : > { %v4948_v9 = vadd.f32 %v4942_v3, %v2012_v60  ;;  %v4951_v10 = vadd.f32 %v4942_v3, %v2008_v0  ;;  %v4954_v11 = vadd.f32 %v4942_v3, %v2014_v1  ;;  %v4957_v12 = vadd.f32 %v4942_v3, %v2010_v2  ;;  %v2023_v56 = vld [vmem:[#allocation3 + $0x78] sm:$0xff]  ;;  %v2021_v54 = vld [vmem:[#allocation3 + $0x68] sm:$0xff]  ;;  %v2026_v39 = vld [vmem:[#allocation3 + $0x90] sm:$0xff] }
 0x371   : > { %v4960_v14 = vadd.f32 %v4945_v8, %v2013_v61  ;;  %v4963_v15 = vadd.f32 %v4945_v8, %v2009_v4  ;;  %v4966_v45 = vadd.f32 %v4945_v8, %v2015_v6  ;;  %v4969_v18 = vadd.f32 %v4945_v8, %v2011_v7  ;;  %v2027_v40 = vld [vmem:[#allocation3 + $0x98] sm:$0xff]  ;;  %v2024_v41 = vld [vmem:[#allocation3 + $0x80] sm:$0xff]  ;;  %v2025_v42 = vld [vmem:[#allocation3 + $0x88] sm:$0xff]  ;;  %p3331_p5 = scmp.ne.s32.totalorder %s5954_s9, 3 }
 0x372   : > { %v4976_v24 = vadd.f32 %v4942_v3, %v2018_v19  ;;  %v4979_v25 = vadd.f32 %v4945_v8, %v2019_v20  ;;  %v4982_v26 = vadd.f32 %v4942_v3, %v2016_v21  ;;  %v4989_v29 = vadd.f32 %v4945_v8, %v2017_v22  ;;  %v2030_v52 = vld [vmem:[#allocation3 + $0xb0] sm:$0xff]  ;;  %v2031_v48 = vld [vmem:[#allocation3 + $0xb8] sm:$0xff]  ;;  %v2028_v53 = vld [vmem:[#allocation3 + $0xa0] sm:$0xff] }
 0x373   : > { %v2097_v57 = vadd.f32 %v4960_v14, %v4948_v9  ;;  %v2091_v23 = vadd.f32 %v4963_v15, %v4951_v10  ;;  %v2100_v28 = vadd.f32 %v4966_v45, %v4954_v11  ;;  %v2094_v17 = vadd.f32 %v4969_v18, %v4957_v12  ;;  %v2029_v13 = vld [vmem:[#allocation3 + $0xa8] sm:$0xff]  ;;  %v2034_v62 = vld [vmem:[#allocation3 + $0xd0] sm:$0xff]  ;;  %v2035_v63 = vld [vmem:[#allocation3 + $0xd8] sm:$0xff] }
 0x374   : > { %v2106_v33 = vadd.f32 %v4979_v25, %v4976_v24  ;;  %v4994_v34 = vadd.f32 %v4942_v3, %v2022_v30  ;;  %v4997_v35 = vadd.f32 %v4945_v8, %v2023_v56  ;;  %v2103_v36 = vadd.f32 %v4989_v29, %v4982_v26  ;;  %v2032_v0 = vld [vmem:[#allocation3 + $0xc0] sm:$0xff]  ;;  %v2033_v1 = vld [vmem:[#allocation3 + $0xc8] sm:$0xff]  ;;  %v2038_v21 = vld [vmem:[#allocation3 + $0xf0] sm:$0xff] }
 0x375   : > { %2098 = vadd.xlane.f32.xlu1 %v2097_v57  ;;  %2092 = vadd.xlane.f32.xlu0 %v2091_v23  ;;  %v5002_v37 = vadd.f32 %v4942_v3, %v2020_v32  ;;  %v5005_v38 = vadd.f32 %v4945_v8, %v2021_v54  ;;  %v5010_v46 = vadd.f32 %v4942_v3, %v2026_v39  ;;  %v2039_v22 = vld [vmem:[#allocation3 + $0xf8] sm:$0xff]  ;;  %v2036_v57 = vld [vmem:[#allocation3 + $0xe0] sm:$0xff]  ;;  %v2037_v23 = vld [vmem:[#allocation3 + $0xe8] sm:$0xff] }
 0x376   : > { %v2112_v44 = vadd.f32 %v4997_v35, %v4994_v34  ;;  %v5013_v47 = vadd.f32 %v4945_v8, %v2027_v40  ;;  %v5018_v50 = vadd.f32 %v4942_v3, %v2024_v41  ;;  %v5021_v51 = vadd.f32 %v4945_v8, %v2025_v42 }
 0x377   : > { %v2109_v49 = vadd.f32 %v5005_v38, %v5002_v37  ;;  %v5024_v16 = vadd.f32 %v4942_v3, %v2030_v52  ;;  %v5027_v27 = vadd.f32 %v4945_v8, %v2031_v48  ;;  %v5030_v31 = vadd.f32 %v4942_v3, %v2028_v53 }
 0x378   : > { %v2118_v59 = vadd.f32 %v5013_v47, %v5010_v46  ;;  %v2115_v60 = vadd.f32 %v5021_v51, %v5018_v50  ;;  %v5037_v61 = vadd.f32 %v4945_v8, %v2029_v13  ;;  %v5042_v4 = vadd.f32 %v4942_v3, %v2034_v62 }
 0x379   : > { %2101 = vadd.xlane.f32.xlu1 %v2100_v28  ;;  %2095 = vadd.xlane.f32.xlu0 %v2094_v17  ;;  %v2124_v2 = vadd.f32 %v5027_v27, %v5024_v16  ;;  %v5045_v6 = vadd.f32 %v4945_v8, %v2035_v63  ;;  %v5050_v19 = vadd.f32 %v4942_v3, %v2032_v0 }
 0x37a   : > { %v2121_v7 = vadd.f32 %v5037_v61, %v5030_v31  ;;  %v5053_v20 = vadd.f32 %v4945_v8, %v2033_v1  ;;  %v5058_v17 = vadd.f32 %v4942_v3, %v2038_v21  ;;  %v5061_v30 = vadd.f32 %v4945_v8, %v2039_v22 }
 0x37b   : > { %5936 = vst [vmem:[#allocation32_spill] sm:$0xff] %v5045_v6  ;;  %5937 = vst [vmem:[#allocation33_spill] sm:$0xff] %v5050_v19  ;;  %v2130_v28 = vadd.f32 %v5045_v6, %v5042_v4  ;;  %v5066_v32 = vadd.f32 %v4942_v3, %v2036_v57  ;;  %v5069_v54 = vadd.f32 %v4945_v8, %v2037_v23 }
 0x37c   : > { %5938 = vst [vmem:[#allocation34_spill] sm:$0xff] %v5053_v20  ;;  %5939 = vst [vmem:[#allocation35_spill] sm:$0xff] %v5058_v17  ;;  %v2127_v56 = vadd.f32 %v5053_v20, %v5050_v19  ;;  %v2159_v39 = vmul.f32 %v4969_v18, %v4969_v18  ;;  %v2156_v3 = vmul.f32 %v4951_v10, %v4951_v10 }
 0x37d   : > { %2107 = vadd.xlane.f32.xlu1 %v2106_v33  ;;  %2104 = vadd.xlane.f32.xlu0 %v2103_v36  ;;  %5940 = vst [vmem:[#allocation36_spill] sm:$0xff] %v5061_v30  ;;  %5941 = vst [vmem:[#allocation37_spill] sm:$0xff] %v5066_v32  ;;  %v2136_v33 = vadd.f32 %v5061_v30, %v5058_v17  ;;  %v2158_v36 = vmul.f32 %v4957_v12, %v4957_v12 }
 0x37e   : > { %5942 = vst [vmem:[#allocation38_spill] sm:$0xff] %v5069_v54  ;;  %v2133_v40 = vadd.f32 %v5069_v54, %v5066_v32  ;;  %v2157_v8 = vmul.f32 %v4963_v15, %v4963_v15  ;;  %v2162_v42 = vmul.f32 %v4954_v11, %v4954_v11  ;;  %v2160_v52 = vmul.f32 %v4948_v9, %v4948_v9 }
 0x37f   : > { %v2191_v41 = vadd.f32 %v2159_v39, %v2158_v36  ;;  %v2161_v48 = vmul.f32 %v4960_v14, %v4960_v14  ;;  %v2166_v53 = vmul.f32 %v4976_v24, %v4976_v24  ;;  %v2167_v13 = vmul.f32 %v4979_v25, %v4979_v25 }
 0x380   : > { %v2165_v63 = vmul.f32 %v4989_v29, %v4989_v29  ;;  %v2170_v1 = vmul.f32 %v4994_v34, %v4994_v34  ;;  %v2168_v21 = vmul.f32 %v5002_v37, %v5002_v37  ;;  %v2169_v22 = vmul.f32 %v5005_v38, %v5005_v38 }
 0x381   : > { %2113 = vadd.xlane.f32.xlu1 %v2112_v44  ;;  %2110 = vadd.xlane.f32.xlu0 %v2109_v49  ;;  %v2163_v44 = vmul.f32 %v4966_v45, %v4966_v45  ;;  %v2188_v49 = vadd.f32 %v2157_v8, %v2156_v3  ;;  %v2194_v62 = vadd.f32 %v2161_v48, %v2160_v52 }
 0x382   : > { %v2203_v0 = vadd.f32 %v2167_v13, %v2166_v53  ;;  %v2174_v23 = vmul.f32 %v5010_v46, %v5010_v46  ;;  %v2173_v36 = vmul.f32 %v5021_v51, %v5021_v51  ;;  %v2179_v3 = vmul.f32 %v5027_v27, %v5027_v27 }
 0x383   : > { %v2183_v52 = vmul.f32 %v5045_v6, %v5045_v6  ;;  %v2180_v53 = vmul.f32 %v5050_v19, %v5050_v19  ;;  %v2181_v13 = vmul.f32 %v5053_v20, %v5053_v20 }
 0x385   : > { %2119 = vadd.xlane.f32.xlu1 %v2118_v59  ;;  %2116 = vadd.xlane.f32.xlu0 %v2115_v60  ;;  %v2164_v59 = vmul.f32 %v4982_v26, %v4982_v26  ;;  %v2197_v60 = vadd.f32 %v2163_v44, %v2162_v42  ;;  %v2177_v42 = vmul.f32 %v5037_v61, %v5037_v61 }
 0x389   : > { %2125 = vadd.xlane.f32.xlu1 %v2124_v2  ;;  %2122 = vadd.xlane.f32.xlu0 %v2121_v7  ;;  %v2171_v2 = vmul.f32 %v4997_v35, %v4997_v35  ;;  %v2200_v7 = vadd.f32 %v2165_v63, %v2164_v59  ;;  %v2186_v59 = vmul.f32 %v5058_v17, %v5058_v17 }
 0x38b   : > { %v2209_v57 = vadd.f32 %v2171_v2, %v2170_v1  ;;  %v2185_v1 = vmul.f32 %v5069_v54, %v5069_v54 }
 0x38d   : > { %2131 = vadd.xlane.f32.xlu1 %v2130_v28  ;;  %2128 = vadd.xlane.f32.xlu0 %v2127_v56  ;;  %v2175_v28 = vmul.f32 %v5013_v47, %v5013_v47  ;;  %v2206_v56 = vadd.f32 %v2169_v22, %v2168_v21 }
 0x38f   : > { %v2215_v39 = vadd.f32 %v2175_v28, %v2174_v23 }
 0x391   : > { %2137 = vadd.xlane.f32.xlu1 %v2136_v33  ;;  %2134 = vadd.xlane.f32.xlu0 %v2133_v40  ;;  %v2172_v33 = vmul.f32 %v5018_v50, %v5018_v50  ;;  %v2178_v40 = vmul.f32 %v5024_v16, %v5024_v16 }
 0x393   : > { %v2212_v8 = vadd.f32 %v2173_v36, %v2172_v33  ;;  %v2221_v44 = vadd.f32 %v2179_v3, %v2178_v40 }
 0x395   : > { %2192 = vadd.xlane.f32.xlu1 %v2191_v41  ;;  %2189 = vadd.xlane.f32.xlu0 %v2188_v49  ;;  %v2176_v41 = vmul.f32 %v5030_v31, %v5030_v31  ;;  %v2182_v49 = vmul.f32 %v5042_v4, %v5042_v4 }
 0x397   : > { %v2218_v48 = vadd.f32 %v2177_v42, %v2176_v41  ;;  %v2227_v63 = vadd.f32 %v2183_v52, %v2182_v49 }
 0x399   : > { %2198 = vadd.xlane.f32.xlu1 %v2197_v60  ;;  %2195 = vadd.xlane.f32.xlu0 %v2194_v62  ;;  %v2187_v60 = vmul.f32 %v5061_v30, %v5061_v30  ;;  %v2184_v62 = vmul.f32 %v5066_v32, %v5066_v32 }
 0x39b   : > { %v2233_v2 = vadd.f32 %v2187_v60, %v2186_v59 }
 0x39d   : > { %2204 = vadd.xlane.f32.xlu1 %v2203_v0  ;;  %2201 = vadd.xlane.f32.xlu0 %v2200_v7  ;;  %v2224_v0 = vadd.f32 %v2181_v13, %v2180_v53  ;;  %v2230_v7 = vadd.f32 %v2185_v1, %v2184_v62 }
 0x3a1   : > { %2210 = vadd.xlane.f32.xlu1 %v2209_v57  ;;  %2207 = vadd.xlane.f32.xlu0 %v2206_v56 }
 0x3a5   : > { %2216 = vadd.xlane.f32.xlu1 %v2215_v39  ;;  %2213 = vadd.xlane.f32.xlu0 %v2212_v8 }
 0x3a9   : > { %2222 = vadd.xlane.f32.xlu1 %v2221_v44  ;;  %2219 = vadd.xlane.f32.xlu0 %v2218_v48 }
 0x3ad   : > { %2228 = vadd.xlane.f32.xlu1 %v2227_v63  ;;  %2225 = vadd.xlane.f32.xlu0 %v2224_v0 }
 0x3b1   : > { %2234 = vadd.xlane.f32.xlu1 %v2233_v2  ;;  %2231 = vadd.xlane.f32.xlu0 %v2230_v7 }
 0x402   : > { %v2099_v21 = vpop.xlane.xlu1 %2098  ;;  %v2093_v22 = vpop.xlane.xlu0 %2092 }
 0x403   : > { %v5157_v52 = vmul.f32 0.00390625, %v2093_v22  ;;  %v5161_v53 = vmul.f32 0.00390625, %v2099_v21 }
 0x405   : > { %v2252_v0 = vmul.f32 %v5157_v52, %v5157_v52 }
 0x406   : > { %v2102_v57 = vpop.xlane.xlu1 %2101  ;;  %v2096_v23 = vpop.xlane.xlu0 %2095 }
 0x407   : > { %v5159_v48 = vmul.f32 0.00390625, %v2096_v23  ;;  %v5163_v13 = vmul.f32 0.00390625, %v2102_v57  ;;  %v2254_v57 = vmul.f32 %v5161_v53, %v5161_v53 }
 0x409   : > { %v2253_v63 = vmul.f32 %v5159_v48, %v5159_v48  ;;  %v2255_v21 = vmul.f32 %v5163_v13, %v5163_v13 }
 0x40a   : > { %v2108_v28 = vpop.xlane.xlu1 %2107  ;;  %v2105_v56 = vpop.xlane.xlu0 %2104 }
 0x40b   : > { %v5169_v22 = vmul.f32 0.00390625, %v2108_v28  ;;  %v5175_v20 = vmul.f32 0.00390625, %v2105_v56 }
 0x40e   : > { %v2114_v33 = vpop.xlane.xlu1 %2113  ;;  %v5139_v36 = vpop.xlane.xlu0 %2110 }
 0x40f   : > { %v5177_v28 = vmul.f32 0.00390625, %v2114_v33  ;;  %v2335_v33 = vrot.slane %v4935_v58, %v4817_v55 }
 0x412   : > { %v5141_v39 = vpop.xlane.xlu1 %2119  ;;  %v5143_v40 = vpop.xlane.xlu0 %2116 }
 0x416   : > { %v5145_v3 = vpop.xlane.xlu1 %2125  ;;  %v5147_v8 = vpop.xlane.xlu0 %2122 }
 0x41a   : > { %v5149_v41 = vpop.xlane.xlu1 %2131  ;;  %v5151_v42 = vpop.xlane.xlu0 %2128 }
 0x41e   : > { %v5153_v44 = vpop.xlane.xlu1 %2137  ;;  %v5155_v49 = vpop.xlane.xlu0 %2134 }
 0x41f   : > { %5943 = vst [vmem:[#allocation39_spill] sm:$0xff] %v5155_v49 }
 0x422   : > { %v2193_v59 = vpop.xlane.xlu1 %2192  ;;  %v2190_v60 = vpop.xlane.xlu0 %2189 }
 0x423   : > { %v2237_v62 = vmul.f32 0.00390625, %v2193_v59  ;;  %v2236_v1 = vmul.f32 0.00390625, %v2190_v60 }
 0x425   : > { %v2269_v2 = vsub.f32 %v2237_v62, %v2253_v63  ;;  %v2268_v7 = vsub.f32 %v2236_v1, %v2252_v0  ;;  %v2338_v0 = vsub.s32 5, %v4808_v43  ;;  %v2257_v1 = vmul.f32 %v5169_v22, %v5169_v22 }
 0x426   : > { %v2199_v23 = vpop.xlane.xlu1 %2198  ;;  %v2196_v54 = vpop.xlane.xlu0 %2195 }
 0x427   : > { %v2285_v59 = vmax.f32 %v2269_v2, 0.0  ;;  %v2284_v32 = vmax.f32 %v2268_v7, 0.0  ;;  %v2239_v30 = vmul.f32 0.00390625, %v2199_v23  ;;  %v2238_v17 = vmul.f32 0.00390625, %v2196_v54 }
 0x428   : > { %v2256_v54 = vmul.f32 %v5175_v20, %v5175_v20 }
 0x429   : > { %v2301_v49 = vadd.f32 1e-05, %v2285_v59  ;;  %v2300_v60 = vadd.f32 1e-05, %v2284_v32  ;;  %v2271_v62 = vsub.f32 %v2239_v30, %v2255_v21  ;;  %v2270_v63 = vsub.f32 %v2238_v17, %v2254_v57 }
 0x42a   : > { %v2205_v19 = vpop.xlane.xlu1 %2204  ;;  %v2202_v6 = vpop.xlane.xlu0 %2201  ;;  %v2339_v21 = vrot.slane %v4935_v58, %v2338_v0  ;;  %v2452_v57 = vsub.s32 6, %v4808_v43  ;;  %v2449_v43 = vrot.slane %v4935_v58, %v4883_v5 }
 0x42b   : > { %3709 = vrsqrt.f32 %v2301_v49  ;;  %v2287_v2 = vmax.f32 %v2271_v62, 0.0  ;;  %v2286_v7 = vmax.f32 %v2270_v63, 0.0  ;;  %v2241_v23 = vmul.f32 0.00390625, %v2205_v19 }
 0x42c   : > { %3711 = vrsqrt.f32 %v2300_v60  ;;  %v2240_v32 = vmul.f32 0.00390625, %v2202_v6  ;;  %v2259_v19 = vmul.f32 %v5177_v28, %v5177_v28  ;;  %v2453_v0 = vrot.slane %v4935_v58, %v2452_v57 }
 0x42d   : > { %v2303_v30 = vadd.f32 1e-05, %v2287_v2  ;;  %v2302_v17 = vadd.f32 1e-05, %v2286_v7  ;;  %v2273_v56 = vsub.f32 %v2241_v23, %v2257_v1  ;;  %v5191_v1 = vrot.slane %v2335_v33, %v4817_v55 }
 0x42e   : > { %v2272_v59 = vsub.f32 %v2240_v32, %v2256_v54  ;;  %v2211_v49 = vpop.xlane.xlu1 %2210  ;;  %v5194_v7 = vrot.slane %v2339_v21, %v4817_v55  ;;  %v5203_v33 = vrot.slane %v2453_v0, %v4883_v5 }
 0x42f   : > { %3713 = vrsqrt.f32 %v2303_v30  ;;  %v2289_v62 = vmax.f32 %v2273_v56, 0.0  ;;  %v2243_v60 = vmul.f32 0.00390625, %v2211_v49  ;;  %v5200_v56 = vrot.slane %v2449_v43, %v4883_v5 }
 0x430   : > { %3715 = vrsqrt.f32 %v2302_v17  ;;  %v2288_v6 = vmax.f32 %v2272_v59, 0.0 }
 0x431   : > { %v2305_v63 = vadd.f32 1e-05, %v2289_v62  ;;  %v2275_v2 = vsub.f32 %v2243_v60, %v2259_v19 }
 0x432   : > { %v2304_v23 = vadd.f32 1e-05, %v2288_v6 }
 0x433   : > { %3717 = vrsqrt.f32 %v2305_v63  ;;  %v2291_v54 = vmax.f32 %v2275_v2, 0.0 }
 0x434   : > { %3719 = vrsqrt.f32 %v2304_v23 }
 0x435   : > { %v3710_v32 = vpop.eup %3709  ;;  %v2307_v30 = vadd.f32 1e-05, %v2291_v54 }
 0x436   : > { %v3712_v17 = vpop.eup %3711  ;;  %v2352_v55 = vmul.f32 %v3710_v32, %v5191_v1  ;;  %v2353_v21 = vmul.f32 %v3710_v32, %v5194_v7 }
 0x437   : > { %v2350_v59 = vmul.f32 %v3712_v17, %v5191_v1  ;;  %v2351_v58 = vmul.f32 %v3712_v17, %v5194_v7  ;;  %3721 = vrsqrt.f32 %v2307_v30 }
 0x438   : > { %v2384_v57 = vmul.f32 %v2352_v55, %v4957_v12  ;;  %v2416_v49 = vmul.f32 %v2352_v55, %v5159_v48  ;;  %v2417_v62 = vmul.f32 %v2353_v21, %v5159_v48  ;;  %v2385_v5 = vmul.f32 %v2353_v21, %v4969_v18 }
 0x439   : > { %v3714_v19 = vpop.eup %3713  ;;  %v2382_v60 = vmul.f32 %v2350_v59, %v4951_v10  ;;  %v2414_v6 = vmul.f32 %v2350_v59, %v5157_v52  ;;  %v2415_v63 = vmul.f32 %v2351_v58, %v5157_v52  ;;  %v2383_v48 = vmul.f32 %v2351_v58, %v4963_v15 }
 0x43a   : > { %v3716_v2 = vpop.eup %3715  ;;  %v2466_v43 = vsub.f32 %v5200_v56, %v2416_v49  ;;  %v2467_v0 = vsub.f32 %v5203_v33, %v2417_v62  ;;  %v2356_v12 = vmul.f32 %v3714_v19, %v5191_v1  ;;  %v2357_v23 = vmul.f32 %v3714_v19, %v5194_v7 }
 0x43b   : > { %v2464_v54 = vsub.f32 %v5200_v56, %v2414_v6  ;;  %v2465_v18 = vsub.f32 %v5203_v33, %v2415_v63  ;;  %v2354_v10 = vmul.f32 %v3716_v2, %v5191_v1  ;;  %v2355_v17 = vmul.f32 %v3716_v2, %v5194_v7 }
 0x43c   : > { %v5224_v32 = vadd.f32 %v2466_v43, %v2384_v57  ;;  %v5226_v52 = vadd.f32 %v2467_v0, %v2385_v5  ;;  %v2388_v30 = vmul.f32 %v2356_v12, %v4954_v11  ;;  %v2420_v15 = vmul.f32 %v2356_v12, %v5163_v13 }
 0x43d   : > { %v3718_v55 = vpop.eup %3717  ;;  %v5230_v21 = vadd.f32 %v2464_v54, %v2382_v60  ;;  %v5232_v59 = vadd.f32 %v2465_v18, %v2383_v48  ;;  %v2421_v58 = vmul.f32 %v2357_v23, %v5163_v13  ;;  %v2389_v62 = vmul.f32 %v2357_v23, %v4966_v45 }
 0x43e   : > { %v3301_v49 = vmul.f32 -1.442695, %v5224_v32  ;;  %v3302_v57 = vmul.f32 -1.442695, %v5226_v52  ;;  %v2386_v19 = vmul.f32 %v2354_v10, %v4948_v9  ;;  %v2470_v60 = vsub.f32 %v5200_v56, %v2420_v15  ;;  %v3720_v43 = vpop.eup %3719 }
 0x43f   : > { %v3299_v11 = vmul.f32 -1.442695, %v5230_v21  ;;  %v3300_v5 = vmul.f32 -1.442695, %v5232_v59  ;;  %v2471_v6 = vsub.f32 %v5203_v33, %v2421_v58  ;;  %v2418_v63 = vmul.f32 %v2354_v10, %v5161_v53 }
 0x440   : > { %3723 = vpow2.f32 %v3301_v49  ;;  %v2419_v13 = vmul.f32 %v2355_v17, %v5161_v53  ;;  %v2360_v2 = vmul.f32 %v3718_v55, %v5191_v1  ;;  %v5247_v45 = vadd.f32 %v2470_v60, %v2388_v30 }
 0x441   : > { %3725 = vpow2.f32 %v3302_v57  ;;  %v5249_v9 = vadd.f32 %v2471_v6, %v2389_v62  ;;  %v2361_v0 = vmul.f32 %v3718_v55, %v5194_v7  ;;  %v5252_v12 = vpop.eup %3721  ;;  %v2387_v23 = vmul.f32 %v2355_v17, %v4960_v14 }
 0x442   : > { %3727 = vpow2.f32 %v3299_v11  ;;  %v2468_v48 = vsub.f32 %v5200_v56, %v2418_v63  ;;  %v2469_v54 = vsub.f32 %v5203_v33, %v2419_v13  ;;  %v3305_v53 = vmul.f32 -1.442695, %v5247_v45 }
 0x443   : > { %3729 = vpow2.f32 %v3300_v5  ;;  %v3306_v18 = vmul.f32 -1.442695, %v5249_v9  ;;  %v2392_v10 = vmul.f32 %v2360_v2, %v4976_v24  ;;  %v2424_v55 = vmul.f32 %v2360_v2, %v5169_v22 }
 0x444   : > { %v5260_v30 = vadd.f32 %v2468_v48, %v2386_v19  ;;  %v5262_v15 = vadd.f32 %v2469_v54, %v2387_v23  ;;  %v2425_v58 = vmul.f32 %v2361_v0, %v5169_v22  ;;  %3731 = vpow2.f32 %v3305_v53  ;;  %v2208_v54 = vpop.xlane.xlu0 %2207 }
 0x445   : > { %v2358_v14 = vmul.f32 %v3720_v43, %v5191_v1  ;;  %v2359_v17 = vmul.f32 %v3720_v43, %v5194_v7  ;;  %v2364_v49 = vmul.f32 %v5252_v12, %v5191_v1  ;;  %3733 = vpow2.f32 %v3306_v18 }
 0x446   : > { %v3303_v57 = vmul.f32 -1.442695, %v5260_v30  ;;  %v3304_v24 = vmul.f32 -1.442695, %v5262_v15  ;;  %v2474_v62 = vsub.f32 %v5200_v56, %v2424_v55  ;;  %v2393_v19 = vmul.f32 %v2361_v0, %v4979_v25 }
 0x447   : > { %v2475_v11 = vsub.f32 %v5203_v33, %v2425_v58  ;;  %v2422_v22 = vmul.f32 %v2358_v14, %v5175_v20  ;;  %v2423_v60 = vmul.f32 %v2359_v17, %v5175_v20  ;;  %v2390_v43 = vmul.f32 %v2358_v14, %v4982_v26 }
 0x448   : > { %3735 = vpow2.f32 %v3303_v57  ;;  %v5276_v5 = vadd.f32 %v2474_v62, %v2392_v10  ;;  %v2428_v25 = vmul.f32 %v2364_v49, %v5177_v28  ;;  %v2391_v26 = vmul.f32 %v2359_v17, %v4989_v29  ;;  %v2214_v17 = vpop.xlane.xlu0 %2213 }
 0x449   : > { %3737 = vpow2.f32 %v3304_v24  ;;  %v5279_v6 = vadd.f32 %v2475_v11, %v2393_v19  ;;  %v2472_v63 = vsub.f32 %v5200_v56, %v2422_v22  ;;  %v2473_v48 = vsub.f32 %v5203_v33, %v2423_v60  ;;  %v2217_v19 = vpop.xlane.xlu1 %2216 }
 0x44a   : > { %v3724_v13 = vpop.eup %3723  ;;  %v3309_v2 = vmul.f32 -1.442695, %v5276_v5  ;;  %v2478_v10 = vsub.f32 %v5200_v56, %v2428_v25  ;;  %v5292_v14 = vmul.f32 0.00390625, %v5139_v36  ;;  %v2396_v62 = vmul.f32 %v2364_v49, %v4994_v34 }
 0x44b   : > { %v3726_v0 = vpop.eup %3725  ;;  %v2626_v23 = vadd.f32 1.0, %v3724_v13  ;;  %v5286_v20 = vadd.f32 %v2472_v63, %v2390_v43  ;;  %v3310_v57 = vmul.f32 -1.442695, %v5279_v6  ;;  %v5295_v22 = vadd.f32 %v2473_v48, %v2391_v26 }
 0x44c   : > { %v3728_v53 = vpop.eup %3727  ;;  %v2627_v18 = vadd.f32 1.0, %v3726_v0  ;;  %3739 = vpow2.f32 %v3309_v2  ;;  %v5298_v2 = vadd.f32 %v2478_v10, %v2396_v62  ;;  %v5301_v29 = vmul.f32 0.00390625, %v5141_v39 }
 0x44d   : > { %v3730_v55 = vpop.eup %3729  ;;  %3741 = vrcp.f32 %v2626_v23  ;;  %v2624_v58 = vadd.f32 1.0, %v3728_v53  ;;  %v3307_v13 = vmul.f32 -1.442695, %v5286_v20  ;;  %v2365_v34 = vmul.f32 %v5252_v12, %v5194_v7 }
 0x44e   : > { %3743 = vrcp.f32 %v2627_v18  ;;  %v2625_v24 = vadd.f32 1.0, %v3730_v55  ;;  %v3732_v11 = vpop.eup %3731  ;;  %v5306_v43 = vmul.f32 0.00390625, %v5143_v40  ;;  %v5309_v25 = vmul.f32 0.00390625, %v5145_v3  ;;  %v2223_v18 = vpop.xlane.xlu1 %2222 }
 0x44f   : > { %3745 = vrcp.f32 %v2624_v58  ;;  %v3734_v60 = vpop.eup %3733  ;;  %v2630_v63 = vadd.f32 1.0, %v3732_v11  ;;  %v2258_v0 = vmul.f32 %v5292_v14, %v5292_v14  ;;  %v5314_v39 = vmul.f32 0.00390625, %v5147_v8  ;;  %v2220_v11 = vpop.xlane.xlu0 %2219 }
 0x450   : > { %3747 = vrcp.f32 %v2625_v24  ;;  %v2631_v36 = vadd.f32 1.0, %v3734_v60  ;;  %v3308_v12 = vmul.f32 -1.442695, %v5295_v22  ;;  %v5318_v53 = vmul.f32 0.00390625, %v5149_v41 }
 0x451   : > { %3749 = vpow2.f32 %v3310_v57  ;;  %v3313_v3 = vmul.f32 -1.442695, %v5298_v2  ;;  %v5322_v10 = vmul.f32 0.00390625, %v5151_v42  ;;  %v2429_v55 = vmul.f32 %v2365_v34, %v5177_v28 }
 0x452   : > { %v3736_v49 = vpop.eup %3735  ;;  %3751 = vrcp.f32 %v2630_v63  ;;  %v2261_v8 = vmul.f32 %v5301_v29, %v5301_v29  ;;  %v2242_v57 = vmul.f32 0.00390625, %v2208_v54  ;;  %v5329_v41 = vmul.f32 %v5306_v43, %v5306_v43 }
 0x453   : > { %v3738_v23 = vpop.eup %3737  ;;  %3753 = vrcp.f32 %v2631_v36  ;;  %v2628_v48 = vadd.f32 1.0, %v3736_v49  ;;  %v5333_v26 = vmul.f32 %v5309_v25, %v5309_v25  ;;  %v2245_v62 = vmul.f32 0.00390625, %v2217_v19 }
 0x454   : > { %v2629_v40 = vadd.f32 1.0, %v3738_v23  ;;  %3755 = vpow2.f32 %v3307_v13  ;;  %v5337_v28 = vmul.f32 %v5314_v39, %v5314_v39  ;;  %v5340_v54 = vmul.f32 0.00390625, %v5153_v44 }
 0x455   : > { %3757 = vrcp.f32 %v2628_v48  ;;  %v5347_v13 = vmul.f32 %v5318_v53, %v5318_v53  ;;  %v2479_v49 = vsub.f32 %v5203_v33, %v2429_v55  ;;  %v5355_v23 = vmul.f32 %v5322_v10, %v5322_v10 }
 0x456   : > { %v3740_v58 = vpop.eup %3739  ;;  %3759 = vrcp.f32 %v2629_v40  ;;  %5944 = vst [vmem:[#allocation40_spill] sm:$0xff] %v5340_v54  ;;  %v2274_v48 = vsub.f32 %v2242_v57, %v2258_v0  ;;  %v2229_v40 = vpop.xlane.xlu1 %2228  ;;  %v2397_v55 = vmul.f32 %v2365_v34, %v4997_v35  ;;  %v2246_v57 = vmul.f32 0.00390625, %v2220_v11 }
 0x457   : > { %v3742_v24 = vpop.eup %3741  ;;  %v2634_v42 = vadd.f32 1.0, %v3740_v58  ;;  %3761 = vpow2.f32 %v3308_v12  ;;  %v2244_v12 = vmul.f32 0.00390625, %v2214_v17  ;;  %v2277_v58 = vsub.f32 %v2245_v62, %v2261_v8  ;;  %v2226_v35 = vpop.xlane.xlu0 %2225 }
 0x458   : > { %v3744_v60 = vpop.eup %3743  ;;  %v5343_v63 = vmul.f32 %v3742_v24, %v5224_v32  ;;  %3763 = vpow2.f32 %v3313_v3 }
 0x459   : > { %v3746_v36 = vpop.eup %3745  ;;  %v5350_v19 = vmul.f32 %v3744_v60, %v5226_v52  ;;  %3765 = vrcp.f32 %v2634_v42  ;;  %v2247_v60 = vmul.f32 0.00390625, %v2223_v18  ;;  %v2290_v18 = vmax.f32 %v2274_v48, 0.0 }
 0x45a   : > { %v3748_v44 = vpop.eup %3747  ;;  %3767 = vtanh.f32 %v5343_v63  ;;  %v5359_v32 = vmul.f32 %v3746_v36, %v5230_v21  ;;  %v5369_v21 = vmul.f32 %v5340_v54, %v5340_v54  ;;  %v2276_v62 = vsub.f32 %v2244_v12, %v5329_v41 }
 0x45b   : > { %v3750_v3 = vpop.eup %3749  ;;  %3769 = vtanh.f32 %v5350_v19  ;;  %v5363_v52 = vmul.f32 %v3748_v44, %v5232_v59  ;;  %v5375_v59 = vadd.f32 %v2479_v49, %v2397_v55  ;;  %v2249_v54 = vmul.f32 0.00390625, %v2229_v40  ;;  %v2235_v55 = vpop.xlane.xlu1 %2234 }
 0x45c   : > { %v3752_v24 = vpop.eup %3751  ;;  %3771 = vtanh.f32 %v5359_v32  ;;  %v2635_v42 = vadd.f32 1.0, %v3750_v3  ;;  %v2293_v3 = vmax.f32 %v2277_v58, 0.0  ;;  %v2279_v49 = vsub.f32 %v2247_v60, %v5333_v26 }
 0x45d   : > { %v3754_v17 = vpop.eup %3753  ;;  %3773 = vtanh.f32 %v5363_v52  ;;  %v5373_v0 = vmul.f32 %v3752_v24, %v5247_v45  ;;  %v3314_v41 = vmul.f32 -1.442695, %v5375_v59  ;;  %v2278_v12 = vsub.f32 %v2246_v57, %v5337_v28 }
 0x45e   : > { %v3756_v34 = vpop.eup %3755  ;;  %v5378_v8 = vmul.f32 %v3754_v17, %v5249_v9  ;;  %3775 = vrcp.f32 %v2635_v42  ;;  %v2248_v9 = vmul.f32 0.00390625, %v2226_v35  ;;  %v2306_v42 = vadd.f32 1e-05, %v2290_v18 }
 0x45f   : > { %v3758_v36 = vpop.eup %3757  ;;  %3777 = vtanh.f32 %v5373_v0  ;;  %v2632_v44 = vadd.f32 1.0, %v3756_v34  ;;  %v2281_v60 = vsub.f32 %v2249_v54, %v5347_v13  ;;  %v2251_v35 = vmul.f32 0.00390625, %v2235_v55 }
 0x460   : > { %v3760_v45 = vpop.eup %3759  ;;  %3779 = vtanh.f32 %v5378_v8  ;;  %v5384_v11 = vmul.f32 %v3758_v36, %v5260_v30  ;;  %v2292_v30 = vmax.f32 %v2276_v62, 0.0  ;;  %v2295_v36 = vmax.f32 %v2279_v49, 0.0 }
 0x461   : > { %v3762_v24 = vpop.eup %3761  ;;  %v5388_v48 = vmul.f32 %v3760_v45, %v5262_v15  ;;  %3781 = vrcp.f32 %v2632_v44  ;;  %v2280_v28 = vsub.f32 %v2248_v9, %v5355_v23  ;;  %v2309_v18 = vadd.f32 1e-05, %v2293_v3 }
 0x462   : > { %v3764_v40 = vpop.eup %3763  ;;  %3783 = vtanh.f32 %v5384_v11  ;;  %v2633_v58 = vadd.f32 1.0, %v3762_v24  ;;  %v2294_v62 = vmax.f32 %v2278_v12, 0.0  ;;  %v2308_v54 = vadd.f32 1e-05, %v2292_v30 }
 0x463   : > { %v3766_v17 = vpop.eup %3765  ;;  %3785 = vtanh.f32 %v5388_v48  ;;  %v2638_v26 = vadd.f32 1.0, %v3764_v40  ;;  %v2297_v23 = vmax.f32 %v2281_v60, 0.0  ;;  %v2296_v9 = vmax.f32 %v2280_v28, 0.0 }
 0x464   : > { %v3768_v15 = vpop.eup %3767  ;;  %v2730_v34 = vmul.f32 %v3766_v17, %v5276_v5  ;;  %3787 = vrcp.f32 %v2633_v58 }
 0x465   : > { %v3770_v57 = vpop.eup %3769  ;;  %v5398_v44 = vadd.f32 %v3768_v15, %v5343_v63  ;;  %3789 = vpow2.f32 %v3314_v41  ;;  %v2283_v63 = vsub.f32 %v2251_v35, %v5369_v21  ;;  %v2313_v58 = vadd.f32 1e-05, %v2297_v23 }
 0x466   : > { %v3772_v45 = vpop.eup %3771  ;;  %v5401_v24 = vadd.f32 %v3770_v57, %v5350_v19  ;;  %3791 = vtanh.f32 %v2730_v34  ;;  %v2311_v19 = vadd.f32 1e-05, %v2295_v36  ;;  %v2312_v17 = vadd.f32 1e-05, %v2296_v9 }
 0x467   : > { %v3774_v13 = vpop.eup %3773  ;;  %2818 = vst [vmem:[#allocation2 + $0x10] sm:$0xff] %v5398_v44  ;;  %v5405_v5 = vadd.f32 %v3772_v45, %v5359_v32  ;;  %3793 = vrcp.f32 %v2638_v26  ;;  %v2310_v32 = vadd.f32 1e-05, %v2294_v62 }
 0x468   : > { %v3776_v49 = vpop.eup %3775  ;;  %2819 = vst [vmem:[#allocation2 + $0x18] sm:$0xff] %v5401_v24  ;;  %v5410_v3 = vadd.f32 %v3774_v13, %v5363_v52  ;;  %3795 = vrsqrt.f32 %v2306_v42  ;;  %v2299_v42 = vmax.f32 %v2283_v63, 0.0 }
 0x469   : > { %v3778_v55 = vpop.eup %3777  ;;  %2816 = vst [vmem:[#allocation2] sm:$0xff] %v5405_v5  ;;  %v2731_v41 = vmul.f32 %v3776_v49, %v5279_v6  ;;  %3797 = vrsqrt.f32 %v2309_v18 }
 0x46a   : > { %v3780_v12 = vpop.eup %3779  ;;  %2817 = vst [vmem:[#allocation2 + $0x8] sm:$0xff] %v5410_v3  ;;  %v5416_v21 = vadd.f32 %v3778_v55, %v5373_v0  ;;  %3799 = vrsqrt.f32 %v2308_v54 }
 0x46b   : > { %v3782_v40 = vpop.eup %3781  ;;  %v5419_v52 = vadd.f32 %v3780_v12, %v5378_v8  ;;  %3801 = vtanh.f32 %v2731_v41 }
 0x46c   : > { %v3784_v30 = vpop.eup %3783  ;;  %2822 = vst [vmem:[#allocation2 + $0x30] sm:$0xff] %v5416_v21  ;;  %v2728_v6 = vmul.f32 %v3782_v40, %v5286_v20  ;;  %3803 = vrsqrt.f32 %v2311_v19  ;;  %v2315_v20 = vadd.f32 1e-05, %v2299_v42 }
 0x46d   : > { %v3786_v26 = vpop.eup %3785  ;;  %2823 = vst [vmem:[#allocation2 + $0x38] sm:$0xff] %v5419_v52  ;;  %v5425_v0 = vadd.f32 %v3784_v30, %v5384_v11  ;;  %3805 = vrsqrt.f32 %v2310_v32 }
 0x46e   : > { %v3788_v60 = vpop.eup %3787  ;;  %v5428_v8 = vadd.f32 %v3786_v26, %v5388_v48  ;;  %3807 = vtanh.f32 %v2728_v6 }
 0x46f   : > { %v3790_v35 = vpop.eup %3789  ;;  %2820 = vst [vmem:[#allocation2 + $0x20] sm:$0xff] %v5425_v0  ;;  %v2729_v15 = vmul.f32 %v3788_v60, %v5295_v22  ;;  %3809 = vrsqrt.f32 %v2313_v58 }
 0x470   : > { %v3792_v36 = vpop.eup %3791  ;;  %2821 = vst [vmem:[#allocation2 + $0x28] sm:$0xff] %v5428_v8  ;;  %v2639_v28 = vadd.f32 1.0, %v3790_v35  ;;  %3811 = vrsqrt.f32 %v2312_v17 }
 0x471   : > { %v3794_v11 = vpop.eup %3793  ;;  %v5433_v57 = vadd.f32 %v3792_v36, %v2730_v34  ;;  %3813 = vtanh.f32 %v2729_v15 }
 0x472   : > { %v3796_v18 = vpop.eup %3795  ;;  %3815 = vrcp.f32 %v2639_v28  ;;  %v5436_v48 = vmul.f32 %v3794_v11, %v5298_v2 }
 0x473   : > { %v3798_v62 = vpop.eup %3797  ;;  %2826 = vst [vmem:[#allocation2 + $0x50] sm:$0xff] %v5433_v57  ;;  %v2362_v22 = vmul.f32 %v3796_v18, %v5191_v1  ;;  %v2363_v45 = vmul.f32 %v3796_v18, %v5194_v7  ;;  %3817 = vrsqrt.f32 %v2315_v20 }
 0x474   : > { %v3800_v54 = vpop.eup %3799  ;;  %3819 = vtanh.f32 %v5436_v48  ;;  %v2368_v34 = vmul.f32 %v3798_v62, %v5191_v1  ;;  %v2369_v13 = vmul.f32 %v3798_v62, %v5194_v7 }
 0x475   : > { %v3802_v23 = vpop.eup %3801  ;;  %v2394_v63 = vmul.f32 %v2362_v22, %v5002_v37  ;;  %v2395_v2 = vmul.f32 %v2363_v45, %v5005_v38  ;;  %v2426_v49 = vmul.f32 %v2362_v22, %v5292_v14  ;;  %v2427_v19 = vmul.f32 %v2363_v45, %v5292_v14 }
 0x476   : > { %v3804_v9 = vpop.eup %3803  ;;  %v5448_v55 = vadd.f32 %v3802_v23, %v2731_v41  ;;  %v2400_v32 = vmul.f32 %v2368_v34, %v5010_v46  ;;  %v2401_v12 = vmul.f32 %v2369_v13, %v5013_v47  ;;  %v2432_v40 = vmul.f32 %v2368_v34, %v5301_v29 }
 0x477   : > { %v3806_v58 = vpop.eup %3805  ;;  %v2476_v42 = vsub.f32 %v5200_v56, %v2426_v49  ;;  %v2477_v37 = vsub.f32 %v5203_v33, %v2427_v19  ;;  %v2433_v38 = vmul.f32 %v2369_v13, %v5301_v29  ;;  %v2366_v30 = vmul.f32 %v3800_v54, %v5191_v1 }
 0x478   : > { %v3808_v17 = vpop.eup %3807  ;;  %2827 = vst [vmem:[#allocation2 + $0x58] sm:$0xff] %v5448_v55  ;;  %v2482_v14 = vsub.f32 %v5200_v56, %v2432_v40  ;;  %v2367_v46 = vmul.f32 %v3800_v54, %v5194_v7  ;;  %v2372_v47 = vmul.f32 %v3804_v9, %v5191_v1  ;;  %v2373_v41 = vmul.f32 %v3804_v9, %v5194_v7 }
 0x479   : > { %v3810_v26 = vpop.eup %3809  ;;  %v5462_v60 = vadd.f32 %v3808_v17, %v2728_v6  ;;  %v5464_v35 = vadd.f32 %v2476_v42, %v2394_v63  ;;  %v5466_v20 = vadd.f32 %v2477_v37, %v2395_v2  ;;  %v2483_v29 = vsub.f32 %v5203_v33, %v2433_v38 }
 0x47a   : > { %v5469_v36 = vpop.eup %3811  ;;  %v5471_v28 = vadd.f32 %v2482_v14, %v2400_v32  ;;  %v2398_v11 = vmul.f32 %v2366_v30, %v5018_v50  ;;  %v2399_v18 = vmul.f32 %v2367_v46, %v5021_v51  ;;  %v2430_v62 = vmul.f32 %v2366_v30, %v5306_v43 }
 0x47b   : > { %v3814_v22 = vpop.eup %3813  ;;  %2824 = vst [vmem:[#allocation2 + $0x40] sm:$0xff] %v5462_v60  ;;  %v3311_v6 = vmul.f32 -1.442695, %v5464_v35  ;;  %v3312_v45 = vmul.f32 -1.442695, %v5466_v20  ;;  %v5479_v54 = vadd.f32 %v2483_v29, %v2401_v12  ;;  %v2431_v34 = vmul.f32 %v2367_v46, %v5306_v43 }
 0x47c   : > { %v3816_v13 = vpop.eup %3815  ;;  %v5482_v23 = vadd.f32 %v3814_v22, %v2729_v15  ;;  %v3317_v50 = vmul.f32 -1.442695, %v5471_v28  ;;  %v2480_v51 = vsub.f32 %v5200_v56, %v2430_v62  ;;  %v2404_v63 = vmul.f32 %v2372_v47, %v5024_v16 }
 0x47d   : > { %v5487_v2 = vpop.eup %3817  ;;  %v2735_v49 = vmul.f32 %v3816_v13, %v5375_v59  ;;  %3821 = vpow2.f32 %v3311_v6  ;;  %v3318_v19 = vmul.f32 -1.442695, %v5479_v54  ;;  %v2481_v9 = vsub.f32 %v5203_v33, %v2431_v34 }
 0x47e   : > { %v3820_v32 = vpop.eup %3819  ;;  %2825 = vst [vmem:[#allocation2 + $0x48] sm:$0xff] %v5482_v23  ;;  %3823 = vpow2.f32 %v3312_v45  ;;  %v5493_v43 = vadd.f32 %v2480_v51, %v2398_v11  ;;  %v2405_v15 = vmul.f32 %v2373_v41, %v5027_v27  ;;  %v2436_v12 = vmul.f32 %v2372_v47, %v5309_v25 }
 0x47f   : > { %3825 = vtanh.f32 %v2735_v49  ;;  %v5498_v16 = vadd.f32 %v3820_v32, %v5436_v48  ;;  %v5500_v59 = vadd.f32 %v2481_v9, %v2399_v18  ;;  %v2437_v40 = vmul.f32 %v2373_v41, %v5309_v25 }
 0x480   : > { %3827 = vpow2.f32 %v3317_v50  ;;  %v3315_v42 = vmul.f32 -1.442695, %v5493_v43  ;;  %v2486_v37 = vsub.f32 %v5200_v56, %v2436_v12  ;;  %v2370_v38 = vmul.f32 %v3806_v58, %v5191_v1 }
 0x481   : > { %2830 = vst [vmem:[#allocation2 + $0x70] sm:$0xff] %v5498_v16  ;;  %3829 = vpow2.f32 %v3318_v19  ;;  %v3316_v27 = vmul.f32 -1.442695, %v5500_v59  ;;  %v2487_v30 = vsub.f32 %v5203_v33, %v2437_v40  ;;  %v2371_v48 = vmul.f32 %v3806_v58, %v5194_v7 }
 0x482   : > { %3831 = vpow2.f32 %v3315_v42  ;;  %v5510_v17 = vadd.f32 %v2486_v37, %v2404_v63  ;;  %v2434_v25 = vmul.f32 %v2370_v38, %v5314_v39  ;;  %v2402_v46 = vmul.f32 %v2370_v38, %v5030_v31  ;;  %v5945_v37 = vld [vmem:[#allocation32_spill] sm:$0xff] }
 0x483   : > { %3833 = vpow2.f32 %v3316_v27  ;;  %v5513_v14 = vadd.f32 %v2487_v30, %v2405_v15  ;;  %v2435_v47 = vmul.f32 %v2371_v48, %v5314_v39  ;;  %v2376_v11 = vmul.f32 %v3810_v26, %v5191_v1 }
 0x484   : > { %v3321_v41 = vmul.f32 -1.442695, %v5510_v17  ;;  %v2484_v29 = vsub.f32 %v5200_v56, %v2434_v25  ;;  %v2377_v58 = vmul.f32 %v3810_v26, %v5194_v7  ;;  %v2374_v31 = vmul.f32 %v5469_v36, %v5191_v1 }
 0x485   : > { %v3322_v18 = vmul.f32 -1.442695, %v5513_v14  ;;  %v2485_v62 = vsub.f32 %v5203_v33, %v2435_v47  ;;  %v2403_v39 = vmul.f32 %v2371_v48, %v5037_v61  ;;  %v2440_v45 = vmul.f32 %v2376_v11, %v5318_v53 }
 0x486   : > { %3835 = vpow2.f32 %v3321_v41  ;;  %v5523_v22 = vadd.f32 %v2484_v29, %v2402_v46  ;;  %v2441_v34 = vmul.f32 %v2377_v58, %v5318_v53  ;;  %v2408_v51 = vmul.f32 %v2376_v11, %v5042_v4 }
 0x487   : > { %v3822_v6 = vpop.eup %3821  ;;  %3837 = vpow2.f32 %v3322_v18  ;;  %v5532_v9 = vadd.f32 %v2485_v62, %v2403_v39  ;;  %v2490_v32 = vsub.f32 %v5200_v56, %v2440_v45  ;;  %v2375_v53 = vmul.f32 %v5469_v36, %v5194_v7 }
 0x488   : > { %v3824_v13 = vpop.eup %3823  ;;  %v2636_v26 = vadd.f32 1.0, %v3822_v6  ;;  %v3319_v50 = vmul.f32 -1.442695, %v5523_v22  ;;  %v2491_v15 = vsub.f32 %v5203_v33, %v2441_v34  ;;  %v2438_v40 = vmul.f32 %v2374_v31, %v5322_v10 }
 0x489   : > { %v3826_v63 = vpop.eup %3825  ;;  %v2637_v19 = vadd.f32 1.0, %v3824_v13  ;;  %v2409_v38 = vmul.f32 %v2377_v58, %v5945_v37  ;;  %v5542_v27 = vadd.f32 %v2490_v32, %v2408_v51  ;;  %v3320_v41 = vmul.f32 -1.442695, %v5532_v9  ;;  %v5947_v32 = vld [vmem:[#allocation40_spill] sm:$0xff] }
 0x48a   : > { %v3828_v12 = vpop.eup %3827  ;;  %v5536_v61 = vadd.f32 %v3826_v63, %v2735_v49  ;;  %3839 = vrcp.f32 %v2636_v26  ;;  %v5946_v49 = vld [vmem:[#allocation33_spill] sm:$0xff]  ;;  %v2488_v46 = vsub.f32 %v5200_v56, %v2438_v40  ;;  %v2380_v45 = vmul.f32 %v5487_v2, %v5191_v1 }
 0x48b   : > { %v3830_v42 = vpop.eup %3829  ;;  %3841 = vrcp.f32 %v2637_v19  ;;  %v2642_v4 = vadd.f32 1.0, %v3828_v12  ;;  %v2406_v25 = vmul.f32 %v2374_v31, %v5946_v49  ;;  %v5548_v29 = vadd.f32 %v2491_v15, %v2409_v38  ;;  %v2232_v12 = vpop.xlane.xlu0 %2231  ;;  %v5949_v49 = vld [vmem:[#allocation34_spill] sm:$0xff] }
 0x48c   : > { %v3832_v30 = vpop.eup %3831  ;;  %2831 = vst [vmem:[#allocation2 + $0x78] sm:$0xff] %v5536_v61  ;;  %v2643_v48 = vadd.f32 1.0, %v3830_v42  ;;  %3843 = vpow2.f32 %v3319_v50  ;;  %v3325_v58 = vmul.f32 -1.442695, %v5542_v27  ;;  %v2439_v13 = vmul.f32 %v2375_v53, %v5322_v10  ;;  %v5948_v42 = vld [vmem:[#allocation39_spill] sm:$0xff] }
 0x48d   : > { %v3834_v47 = vpop.eup %3833  ;;  %3845 = vrcp.f32 %v2642_v4  ;;  %v2640_v36 = vadd.f32 1.0, %v3832_v30  ;;  %v5551_v18 = vadd.f32 %v2488_v46, %v2406_v25  ;;  %v3326_v39 = vmul.f32 -1.442695, %v5548_v29 }
 0x48e   : > { %3847 = vrcp.f32 %v2643_v48  ;;  %v2641_v11 = vadd.f32 1.0, %v3834_v47  ;;  %v2381_v50 = vmul.f32 %v5487_v2, %v5194_v7  ;;  %v2444_v15 = vmul.f32 %v2380_v45, %v5947_v32 }
 0x48f   : > { %3849 = vrcp.f32 %v2640_v36  ;;  %v3323_v26 = vmul.f32 -1.442695, %v5551_v18  ;;  %v5563_v4 = vmul.f32 0.00390625, %v5948_v42  ;;  %v2489_v37 = vsub.f32 %v5203_v33, %v2439_v13 }
 0x490   : > { %v3836_v62 = vpop.eup %3835  ;;  %3851 = vrcp.f32 %v2641_v11  ;;  %v2445_v30 = vmul.f32 %v2381_v50, %v5947_v32  ;;  %v2407_v25 = vmul.f32 %v2375_v53, %v5949_v49  ;;  %v2250_v46 = vmul.f32 0.00390625, %v2232_v12  ;;  %v5950_v53 = vld [vmem:[#allocation35_spill] sm:$0xff] }
 0x491   : > { %v3838_v6 = vpop.eup %3837  ;;  %v2646_v31 = vadd.f32 1.0, %v3836_v62  ;;  %3853 = vpow2.f32 %v3320_v41  ;;  %v2266_v62 = vmul.f32 %v5563_v4, %v5563_v4 }
 0x492   : > { %v2647_v34 = vadd.f32 1.0, %v3838_v6  ;;  %3855 = vpow2.f32 %v3325_v58  ;;  %v5573_v58 = vadd.f32 %v2489_v37, %v2407_v25 }
 0x493   : > { %3857 = vrcp.f32 %v2646_v31  ;;  %v2412_v31 = vmul.f32 %v2380_v45, %v5950_v53  ;;  %v2282_v13 = vsub.f32 %v2250_v46, %v2266_v62 }
 0x494   : > { %v3840_v51 = vpop.eup %3839  ;;  %3859 = vrcp.f32 %v2647_v34 }
 0x495   : > { %v3842_v63 = vpop.eup %3841  ;;  %v2732_v19 = vmul.f32 %v3840_v51, %v5464_v35  ;;  %3861 = vpow2.f32 %v3326_v39  ;;  %v5951_v51 = vld [vmem:[#allocation36_spill] sm:$0xff] }
 0x496   : > { %v3844_v40 = vpop.eup %3843  ;;  %v2733_v10 = vmul.f32 %v3842_v63, %v5466_v20  ;;  %3863 = vpow2.f32 %v3323_v26  ;;  %v2494_v20 = vsub.f32 %v5200_v56, %v2444_v15  ;;  %v2413_v63 = vmul.f32 %v2381_v50, %v5951_v51 }
 0x497   : > { %v3846_v38 = vpop.eup %3845  ;;  %3865 = vtanh.f32 %v2732_v19  ;;  %v2644_v2 = vadd.f32 1.0, %v3844_v40  ;;  %v3324_v40 = vmul.f32 -1.442695, %v5573_v58 }
 0x498   : > { %v3848_v48 = vpop.eup %3847  ;;  %3867 = vtanh.f32 %v2733_v10  ;;  %v2738_v35 = vmul.f32 %v3846_v38, %v5471_v28  ;;  %v5581_v32 = vadd.f32 %v2494_v20, %v2412_v31 }
 0x499   : > { %v3850_v47 = vpop.eup %3849  ;;  %v2739_v36 = vmul.f32 %v3848_v48, %v5479_v54  ;;  %3869 = vrcp.f32 %v2644_v2  ;;  %v2495_v54 = vsub.f32 %v5203_v33, %v2445_v30  ;;  %v2298_v2 = vmax.f32 %v2282_v13, 0.0 }
 0x49a   : > { %v3852_v41 = vpop.eup %3851  ;;  %3871 = vtanh.f32 %v2738_v35  ;;  %v2736_v11 = vmul.f32 %v3850_v47, %v5493_v43  ;;  %v3329_v48 = vmul.f32 -1.442695, %v5581_v32 }
 0x49b   : > { %v3854_v6 = vpop.eup %3853  ;;  %3873 = vtanh.f32 %v2739_v36  ;;  %v2737_v28 = vmul.f32 %v3852_v41, %v5500_v59  ;;  %v5586_v42 = vadd.f32 %v2495_v54, %v2413_v63  ;;  %v2314_v41 = vadd.f32 1e-05, %v2298_v2 }
 0x49c   : > { %v3856_v39 = vpop.eup %3855  ;;  %3875 = vtanh.f32 %v2736_v11  ;;  %v2645_v34 = vadd.f32 1.0, %v3854_v6 }
 0x49d   : > { %v3858_v26 = vpop.eup %3857  ;;  %3877 = vtanh.f32 %v2737_v28  ;;  %v2650_v43 = vadd.f32 1.0, %v3856_v39  ;;  %v3330_v46 = vmul.f32 -1.442695, %v5586_v42 }
 0x49e   : > { %v3860_v15 = vpop.eup %3859  ;;  %v2742_v12 = vmul.f32 %v3858_v26, %v5510_v17  ;;  %3879 = vrcp.f32 %v2645_v34 }
 0x49f   : > { %v3862_v59 = vpop.eup %3861  ;;  %v2743_v45 = vmul.f32 %v3860_v15, %v5513_v14  ;;  %3881 = vrcp.f32 %v2650_v43 }
 0x4a0   : > { %v3864_v37 = vpop.eup %3863  ;;  %3883 = vtanh.f32 %v2742_v12  ;;  %v2651_v38 = vadd.f32 1.0, %v3862_v59 }
 0x4a1   : > { %v3866_v30 = vpop.eup %3865  ;;  %3885 = vtanh.f32 %v2743_v45  ;;  %v2648_v50 = vadd.f32 1.0, %v3864_v37 }
 0x4a2   : > { %v3868_v49 = vpop.eup %3867  ;;  %v5589_v17 = vadd.f32 %v3866_v30, %v2732_v19  ;;  %3887 = vrcp.f32 %v2651_v38 }
 0x4a3   : > { %v3870_v25 = vpop.eup %3869  ;;  %v5591_v14 = vadd.f32 %v3868_v49, %v2733_v10  ;;  %3889 = vpow2.f32 %v3324_v40 }
 0x4a4   : > { %v3872_v47 = vpop.eup %3871  ;;  %2828 = vst [vmem:[#allocation2 + $0x60] sm:$0xff] %v5589_v17  ;;  %v2740_v20 = vmul.f32 %v3870_v25, %v5523_v22  ;;  %3891 = vrcp.f32 %v2648_v50  ;;  %v5952_v25 = vld [vmem:[#allocation37_spill] sm:$0xff] }
 0x4a5   : > { %v3874_v62 = vpop.eup %3873  ;;  %2829 = vst [vmem:[#allocation2 + $0x68] sm:$0xff] %v5591_v14  ;;  %v5597_v6 = vadd.f32 %v3872_v47, %v2738_v35  ;;  %3893 = vpow2.f32 %v3329_v48 }
 0x4a6   : > { %v3876_v19 = vpop.eup %3875  ;;  %v5599_v53 = vadd.f32 %v3874_v62, %v2739_v36  ;;  %3895 = vtanh.f32 %v2740_v20 }
 0x4a7   : > { %v3878_v10 = vpop.eup %3877  ;;  %2834 = vst [vmem:[#allocation2 + $0x90] sm:$0xff] %v5597_v6  ;;  %v5602_v31 = vadd.f32 %v3876_v19, %v2736_v11  ;;  %3897 = vpow2.f32 %v3330_v46 }
 0x4a8   : > { %v3880_v54 = vpop.eup %3879  ;;  %2835 = vst [vmem:[#allocation2 + $0x98] sm:$0xff] %v5599_v53  ;;  %v5605_v22 = vadd.f32 %v3878_v10, %v2737_v28  ;;  %3899 = vrsqrt.f32 %v2314_v41 }
 0x4a9   : > { %v3882_v39 = vpop.eup %3881  ;;  %2832 = vst [vmem:[#allocation2 + $0x80] sm:$0xff] %v5602_v31  ;;  %v2741_v35 = vmul.f32 %v3880_v54, %v5532_v9 }
 0x4aa   : > { %v3884_v36 = vpop.eup %3883  ;;  %2833 = vst [vmem:[#allocation2 + $0x88] sm:$0xff] %v5605_v22  ;;  %v2746_v34 = vmul.f32 %v3882_v39, %v5542_v27 }
 0x4ab   : > { %v3886_v13 = vpop.eup %3885  ;;  %v5611_v11 = vadd.f32 %v3884_v36, %v2742_v12  ;;  %3901 = vtanh.f32 %v2741_v35 }
 0x4ac   : > { %v3888_v26 = vpop.eup %3887  ;;  %v5613_v43 = vadd.f32 %v3886_v13, %v2743_v45  ;;  %3903 = vtanh.f32 %v2746_v34 }
 0x4ad   : > { %v3890_v28 = vpop.eup %3889  ;;  %2838 = vst [vmem:[#allocation2 + $0xb0] sm:$0xff] %v5611_v11  ;;  %v2747_v51 = vmul.f32 %v3888_v26, %v5548_v29 }
 0x4ae   : > { %v3892_v63 = vpop.eup %3891  ;;  %2839 = vst [vmem:[#allocation2 + $0xb8] sm:$0xff] %v5613_v43  ;;  %v2649_v9 = vadd.f32 1.0, %v3890_v28 }
 0x4af   : > { %v3894_v15 = vpop.eup %3893  ;;  %3905 = vtanh.f32 %v2747_v51  ;;  %v2744_v27 = vmul.f32 %v3892_v63, %v5551_v18 }
 0x4b0   : > { %v3896_v12 = vpop.eup %3895  ;;  %3907 = vrcp.f32 %v2649_v9  ;;  %v2654_v59 = vadd.f32 1.0, %v3894_v15 }
 0x4b1   : > { %v3898_v40 = vpop.eup %3897  ;;  %v5619_v45 = vadd.f32 %v3896_v12, %v2740_v20  ;;  %3909 = vtanh.f32 %v2744_v27  ;;  %v5953_v20 = vld [vmem:[#allocation38_spill] sm:$0xff] }
 0x4b2   : > { %v3900_v37 = vpop.eup %3899  ;;  %v2655_v38 = vadd.f32 1.0, %v3898_v40  ;;  %3911 = vrcp.f32 %v2654_v59 }
 0x4b3   : > { %2836 = vst [vmem:[#allocation2 + $0xa0] sm:$0xff] %v5619_v45  ;;  %v2378_v29 = vmul.f32 %v3900_v37, %v5191_v1  ;;  %v2379_v2 = vmul.f32 %v3900_v37, %v5194_v7 }
 0x4b4   : > { %3913 = vrcp.f32 %v2655_v38 }
 0x4b5   : > { %v3902_v30 = vpop.eup %3901  ;;  %v2442_v18 = vmul.f32 %v2378_v29, %v5563_v4  ;;  %v2443_v50 = vmul.f32 %v2379_v2, %v5563_v4  ;;  %v2410_v46 = vmul.f32 %v2378_v29, %v5952_v25  ;;  %v2411_v41 = vmul.f32 %v2379_v2, %v5953_v20  ;;  %v2853_v25 = vld [vmem:[%s4593_s16 + $0x8] sm:$0xff] (!%p3331_p5) }
 0x4b6   : > { %v3904_v48 = vpop.eup %3903  ;;  %v5626_v49 = vadd.f32 %v3902_v30, %v2741_v35 }
 0x4b7   : > { %v5629_v47 = vadd.f32 %v3904_v48, %v2746_v34  ;;  %v2492_v62 = vsub.f32 %v5200_v56, %v2442_v18  ;;  %v2493_v1 = vsub.f32 %v5203_v33, %v2443_v50  ;;  %v2852_v48 = vld [vmem:[%s4593_s16] sm:$0xff] (!%p3331_p5) }
 0x4b8   : > { %2837 = vst [vmem:[#allocation2 + $0xa8] sm:$0xff] %v5626_v49  ;;  %v2884_v20 = vadd.f32 (!%p3331_p5), %v2852_v48, %v5405_v5  ;;  %v2858_v5 = vld [vmem:[%s4593_s16 + $0x30] sm:$0xff] (!%p3331_p5)  ;;  %v2881_v48 = vld [vmem:[%s4593_s16 + $0xe8] sm:$0xff] (!%p3331_p5) }
 0x4b9   : > { %v3906_v7 = vpop.eup %3905  ;;  %2842 = vst [vmem:[#allocation2 + $0xd0] sm:$0xff] %v5629_v47  ;;  %v2524_v19 = vadd.f32 %v2492_v62, %v2410_v46  ;;  %v2525_v4 = vadd.f32 %v2493_v1, %v2411_v41  ;;  %v2854_v46 = vld [vmem:[%s4593_s16 + $0x10] sm:$0xff] (!%p3331_p5)  ;;  %v2885_v41 = vadd.f32 (!%p3331_p5), %v2853_v25, %v5410_v3  ;;  %v2855_v1 = vld [vmem:[%s4593_s16 + $0x18] sm:$0xff] (!%p3331_p5)  ;;  %v2860_v3 = vld [vmem:[%s4593_s16 + $0x40] sm:$0xff] (!%p3331_p5) }
 0x4ba   : > { %v3908_v10 = vpop.eup %3907  ;;  %v5636_v54 = vadd.f32 %v3906_v7, %v2747_v51  ;;  %v2886_v62 = vadd.f32 (!%p3331_p5), %v2854_v46, %v5398_v44  ;;  %v2856_v7 = vld [vmem:[%s4593_s16 + $0x20] sm:$0xff] (!%p3331_p5)  ;;  %2916 = vst [vmem:[%s4624_s17] sm:$0xff] (!%p3331_p5), %v2884_v20  ;;  %v2890_v44 = vadd.f32 (!%p3331_p5), %v2858_v5, %v5416_v21  ;;  %v2883_v20 = vld [vmem:[%s4593_s16 + $0xf8] sm:$0xff] (!%p3331_p5) }
 0x4bb   : > { %v3910_v39 = vpop.eup %3909  ;;  %v2745_v35 = vmul.f32 %v3908_v10, %v5573_v58  ;;  %v3327_v36 = vmul.f32 -1.442695, %v2524_v19  ;;  %v3328_v33 = vmul.f32 -1.442695, %v2525_v4  ;;  %v2888_v10 = vadd.f32 (!%p3331_p5), %v2856_v7, %v5425_v0  ;;  %2917 = vst [vmem:[%s4624_s17 + $0x8] sm:$0xff] (!%p3331_p5), %v2885_v41 }
 0x4bc   : > { %v3912_v34 = vpop.eup %3911  ;;  %2843 = vst [vmem:[#allocation2 + $0xd8] sm:$0xff] %v5636_v54  ;;  %v5640_v56 = vadd.f32 %v3910_v39, %v2744_v27  ;;  %2918 = vst [vmem:[%s4624_s17 + $0x10] sm:$0xff] (!%p3331_p5), %v2886_v62  ;;  %v2892_v0 = vadd.f32 (!%p3331_p5), %v2860_v3, %v5462_v60  ;;  %v2865_v60 = vld [vmem:[%s4593_s16 + $0x68] sm:$0xff] (!%p3331_p5) }
 0x4bd   : > { %3915 = vtanh.f32 %v2745_v35  ;;  %v2750_v13 = vmul.f32 %v3912_v34, %v5581_v32  ;;  %v2863_v34 = vld [vmem:[%s4593_s16 + $0x58] sm:$0xff] (!%p3331_p5)  ;;  %2920 = vst [vmem:[%s4624_s17 + $0x20] sm:$0xff] (!%p3331_p5), %v2888_v10  ;;  %2922 = vst [vmem:[%s4624_s17 + $0x30] sm:$0xff] (!%p3331_p5), %v2890_v44 }
 0x4be   : > { %v3914_v26 = vpop.eup %3913  ;;  %2840 = vst [vmem:[#allocation2 + $0xc0] sm:$0xff] %v5640_v56  ;;  %3917 = vpow2.f32 %v3327_v36  ;;  %v2861_v36 = vld [vmem:[%s4593_s16 + $0x48] sm:$0xff] (!%p3331_p5)  ;;  %2924 = vst [vmem:[%s4624_s17 + $0x40] sm:$0xff] (!%p3331_p5), %v2892_v0 }
 0x4bf   : > { %v2751_v28 = vmul.f32 %v3914_v26, %v5586_v42  ;;  %3919 = vtanh.f32 %v2750_v13  ;;  %v2866_v26 = vld [vmem:[%s4593_s16 + $0x70] sm:$0xff] (!%p3331_p5) }
 0x4c0   : > { %3921 = vpow2.f32 %v3328_v33  ;;  %v2893_v33 = vadd.f32 (!%p3331_p5), %v2861_v36, %v5482_v23  ;;  %v2897_v23 = vadd.f32 (!%p3331_p5), %v2865_v60, %v5591_v14 }
 0x4c1   : > { %3923 = vtanh.f32 %v2751_v28 }
 0x4c2   : > { %2925 = vst [vmem:[%s4624_s17 + $0x48] sm:$0xff] (!%p3331_p5), %v2893_v33  ;;  %2929 = vst [vmem:[%s4624_s17 + $0x68] sm:$0xff] (!%p3331_p5), %v2897_v23 }
 0x4c7   : > { %v3916_v58 = vpop.eup %3915 }
 0x4c8   : > { %v3918_v51 = vpop.eup %3917  ;;  %v5645_v63 = vadd.f32 %v3916_v58, %v2745_v35  ;;  %v2859_v35 = vld [vmem:[%s4593_s16 + $0x38] sm:$0xff] (!%p3331_p5) }
 0x4c9   : > { %v3920_v9 = vpop.eup %3919  ;;  %v2652_v15 = vadd.f32 1.0, %v3918_v51  ;;  %v2867_v58 = vld [vmem:[%s4593_s16 + $0x78] sm:$0xff] (!%p3331_p5)  ;;  %v2869_v51 = vld [vmem:[%s4593_s16 + $0x88] sm:$0xff] (!%p3331_p5) }
 0x4ca   : > { %v3922_v27 = vpop.eup %3921  ;;  %2841 = vst [vmem:[#allocation2 + $0xc8] sm:$0xff] %v5645_v63  ;;  %v5648_v12 = vadd.f32 %v3920_v9, %v2750_v13  ;;  %v2864_v13 = vld [vmem:[%s4593_s16 + $0x60] sm:$0xff] (!%p3331_p5)  ;;  %v2899_v9 = vadd.f32 (!%p3331_p5), %v2867_v58, %v5536_v61  ;;  %v2901_v14 = vadd.f32 (!%p3331_p5), %v2869_v51, %v5605_v22  ;;  %v2874_v22 = vld [vmem:[%s4593_s16 + $0xb0] sm:$0xff] (!%p3331_p5) }
 0x4cb   : > { %v3924_v32 = vpop.eup %3923  ;;  %v2653_v59 = vadd.f32 1.0, %v3922_v27  ;;  %3925 = vrcp.f32 %v2652_v15  ;;  %v2870_v15 = vld [vmem:[%s4593_s16 + $0x90] sm:$0xff] (!%p3331_p5)  ;;  %v2872_v27 = vld [vmem:[%s4593_s16 + $0xa0] sm:$0xff] (!%p3331_p5) }
 0x4cc   : > { %v5650_v40 = vadd.f32 %v3924_v32, %v2751_v28  ;;  %2846 = vst [vmem:[#allocation2 + $0xf0] sm:$0xff] %v5648_v12  ;;  %v2896_v28 = vadd.f32 (!%p3331_p5), %v2864_v13, %v5589_v17  ;;  %v2902_v32 = vadd.f32 (!%p3331_p5), %v2870_v15, %v5597_v6  ;;  %2931 = vst [vmem:[%s4624_s17 + $0x78] sm:$0xff] (!%p3331_p5), %v2899_v9 }
 0x4cd   : > { %3927 = vrcp.f32 %v2653_v59  ;;  %v2873_v59 = vld [vmem:[%s4593_s16 + $0xa8] sm:$0xff] (!%p3331_p5)  ;;  %2933 = vst [vmem:[%s4624_s17 + $0x88] sm:$0xff] (!%p3331_p5), %v2901_v14  ;;  %v2906_v6 = vadd.f32 (!%p3331_p5), %v2874_v22, %v5611_v11 }
 0x4ce   : > { %2847 = vst [vmem:[#allocation2 + $0xf8] sm:$0xff] %v5650_v40  ;;  %2928 = vst [vmem:[%s4624_s17 + $0x60] sm:$0xff] (!%p3331_p5), %v2896_v28  ;;  %v2915_v41 = vadd.f32 (!%p3331_p5), %v2883_v20, %v5650_v40 }
 0x4cf   : > { %2934 = vst [vmem:[%s4624_s17 + $0x90] sm:$0xff] (!%p3331_p5), %v2902_v32  ;;  %2938 = vst [vmem:[%s4624_s17 + $0xb0] sm:$0xff] (!%p3331_p5), %v2906_v6 }
 0x4d0   : > { %2947 = vst [vmem:[%s4624_s17 + $0xf8] sm:$0xff] (!%p3331_p5), %v2915_v41 }
 0x4d5   : > { %v3926_v42 = vpop.eup %3925 }
 0x4d6   : > { %v2748_v37 = vmul.f32 %v3926_v42, %v2524_v19  ;;  %v2857_v19 = vld [vmem:[%s4593_s16 + $0x28] sm:$0xff] (!%p3331_p5)  ;;  %v2875_v42 = vld [vmem:[%s4593_s16 + $0xb8] sm:$0xff] (!%p3331_p5) }
 0x4d7   : > { %v3928_v38 = vpop.eup %3927  ;;  %v2889_v39 = vadd.f32 (!%p3331_p5), %v2857_v19, %v5428_v8  ;;  %v2862_v8 = vld [vmem:[%s4593_s16 + $0x50] sm:$0xff] (!%p3331_p5) }
 0x4d8   : > { %v2749_v29 = vmul.f32 %v3928_v38, %v2525_v4  ;;  %3929 = vtanh.f32 %v2748_v37  ;;  %v2887_v4 = vadd.f32 (!%p3331_p5), %v2855_v1, %v5401_v24  ;;  %v2891_v24 = vadd.f32 (!%p3331_p5), %v2859_v35, %v5419_v52  ;;  %v2876_v38 = vld [vmem:[%s4593_s16 + $0xc0] sm:$0xff] (!%p3331_p5) }
 0x4d9   : > { %2921 = vst [vmem:[%s4624_s17 + $0x28] sm:$0xff] (!%p3331_p5), %v2889_v39  ;;  %v2894_v21 = vadd.f32 (!%p3331_p5), %v2862_v8, %v5433_v57  ;;  %v2895_v52 = vadd.f32 (!%p3331_p5), %v2863_v34, %v5448_v55  ;;  %v2898_v57 = vadd.f32 (!%p3331_p5), %v2866_v26, %v5498_v16  ;;  %v2868_v55 = vld [vmem:[%s4593_s16 + $0x80] sm:$0xff] (!%p3331_p5)  ;;  %v2871_v16 = vld [vmem:[%s4593_s16 + $0x98] sm:$0xff] (!%p3331_p5) }
 0x4da   : > { %3931 = vtanh.f32 %v2749_v29  ;;  %2919 = vst [vmem:[%s4624_s17 + $0x18] sm:$0xff] (!%p3331_p5), %v2887_v4  ;;  %2923 = vst [vmem:[%s4624_s17 + $0x38] sm:$0xff] (!%p3331_p5), %v2891_v24  ;;  %v2900_v17 = vadd.f32 (!%p3331_p5), %v2868_v55, %v5602_v31  ;;  %v2903_v61 = vadd.f32 (!%p3331_p5), %v2871_v16, %v5599_v53  ;;  %v2904_v31 = vadd.f32 (!%p3331_p5), %v2872_v27, %v5619_v45  ;;  %v2877_v45 = vld [vmem:[%s4593_s16 + $0xc8] sm:$0xff] (!%p3331_p5) }
 0x4db   : > { %2926 = vst [vmem:[%s4624_s17 + $0x50] sm:$0xff] (!%p3331_p5), %v2894_v21  ;;  %2927 = vst [vmem:[%s4624_s17 + $0x58] sm:$0xff] (!%p3331_p5), %v2895_v52  ;;  %v2907_v53 = vadd.f32 (!%p3331_p5), %v2875_v42, %v5613_v43  ;;  %v2880_v43 = vld [vmem:[%s4593_s16 + $0xe0] sm:$0xff] (!%p3331_p5) }
 0x4dc   : > { %2930 = vst [vmem:[%s4624_s17 + $0x70] sm:$0xff] (!%p3331_p5), %v2898_v57  ;;  %2932 = vst [vmem:[%s4624_s17 + $0x80] sm:$0xff] (!%p3331_p5), %v2900_v17 }
 0x4dd   : > { %2935 = vst [vmem:[%s4624_s17 + $0x98] sm:$0xff] (!%p3331_p5), %v2903_v61  ;;  %2936 = vst [vmem:[%s4624_s17 + $0xa0] sm:$0xff] (!%p3331_p5), %v2904_v31 }
 0x4de   : > { %2939 = vst [vmem:[%s4624_s17 + $0xb8] sm:$0xff] (!%p3331_p5), %v2907_v53 }
 0x4e1   : > { %2851 = sbr.rel (%p3331_p5) target bundleno = 1258 (0x4ea), region = 72 }
 0x4e2   : > { %v3930_v2 = vpop.eup %3929 }
 0x4e3   : > { %v5654_v30 = vadd.f32 %v3930_v2, %v2748_v37  ;;  %v2905_v37 = vadd.f32 (!%p3331_p5), %v2873_v59, %v5626_v49  ;;  %v2908_v2 = vadd.f32 (!%p3331_p5), %v2876_v38, %v5640_v56  ;;  %v2909_v49 = vadd.f32 (!%p3331_p5), %v2877_v45, %v5645_v63  ;;  %v2882_v63 = vld [vmem:[%s4593_s16 + $0xf0] sm:$0xff] (!%p3331_p5) }
 0x4e4   : > { %v3932_v18 = vpop.eup %3931 }
 0x4e5   : > { %v5656_v50 = vadd.f32 %v3932_v18, %v2749_v29  ;;  %2844 = vst [vmem:[#allocation2 + $0xe0] sm:$0xff] %v5654_v30  ;;  %v2878_v29 = vld [vmem:[%s4593_s16 + $0xd0] sm:$0xff] (!%p3331_p5)  ;;  %v2879_v18 = vld [vmem:[%s4593_s16 + $0xd8] sm:$0xff] (!%p3331_p5)  ;;  %2937 = vst [vmem:[%s4624_s17 + $0xa8] sm:$0xff] (!%p3331_p5), %v2905_v37  ;;  %v2912_v56 = vadd.f32 (!%p3331_p5), %v2880_v43, %v5654_v30 }
 0x4e6   : > { %v2910_v11 = vadd.f32 (!%p3331_p5), %v2878_v29, %v5629_v47  ;;  %v2911_v25 = vadd.f32 (!%p3331_p5), %v2879_v18, %v5636_v54  ;;  %2940 = vst [vmem:[%s4624_s17 + $0xc0] sm:$0xff] (!%p3331_p5), %v2908_v2  ;;  %2941 = vst [vmem:[%s4624_s17 + $0xc8] sm:$0xff] (!%p3331_p5), %v2909_v49  ;;  %v2914_v47 = vadd.f32 (!%p3331_p5), %v2882_v63, %v5648_v12 }
 0x4e7   : > { %2845 = vst [vmem:[#allocation2 + $0xe8] sm:$0xff] %v5656_v50  ;;  %v2913_v46 = vadd.f32 (!%p3331_p5), %v2881_v48, %v5656_v50  ;;  %2944 = vst [vmem:[%s4624_s17 + $0xe0] sm:$0xff] (!%p3331_p5), %v2912_v56 }
 0x4e8   : > { %2942 = vst [vmem:[%s4624_s17 + $0xd0] sm:$0xff] %v2910_v11  ;;  %2943 = vst [vmem:[%s4624_s17 + $0xd8] sm:$0xff] %v2911_v25 }
 0x4e9   : > { %2945 = vst [vmem:[%s4624_s17 + $0xe8] sm:$0xff] %v2913_v46  ;;  %2946 = vst [vmem:[%s4624_s17 + $0xf0] sm:$0xff] %v2914_v47 }
 0x4ea PF: > { %s5955_s20 = sld [smem:[#allocation22_spill]]  ;;  %s5956_s12 = sld [smem:[#allocation44_spill]] }
 0x4eb   : > { %s2963_s29 = sshll.u32 %s4624_s17, 4  ;;  %s2949_s14 = scalar_lea.sflag [#allocation6], %s4589_s24  ;;  %s5764_s29 = int_to_ptr.vmem [resolvable:$true] %s2963_s29 }
 0x4ec   : > { %s4053_s15 = scalar_lea.vmem %s5764_s29, 4096  ;;  %p5957_p1 = scmp.ne.s32.totalorder %s5913_s18, 0 }
 0x4ed   : > { %p4054_p0 = scmp.ne.s32.totalorder %s5764_s29, %s4053_s15  ;;  %s4211_s8 = smov [#allocation12]  }
 0x4ee   : > { %s4057_s7 = sshll.u32 %s4211_s8, 4  ;;  %s4058_s7 = int_to_ptr.vmem [resolvable:$false] %s4057_s7 }
 0x4ef   : > { %p4055_p7 = pnand %p4054_p0, %p5957_p1  ;;  %s4059_s0 = scalar_lea.vmem %s4058_s7, 8192 }
 0x4f0   : > { %s3343_s13 = sshll.u32 %s5955_s20, 12  ;;  %p4060_p9 = scmp.lt.s32.totalorder %s5764_s29, %s4058_s7 }
 0x4f1   : > { %s5761_s11 = scalar_lea.hbm %s5956_s12, %s3343_s13  ;;  %p4056_p2 = pneg %p4055_p7 }
 0x4f2   : > { %p4061_p4 = scmp.lt.s32.totalorder %s4059_s0, %s4053_s15 }
 0x4f4   : > { %p4062_p12 = por %p4061_p4, %p4060_p9 }
 0x4f6   : > { %p4063_p11 = pnand %p4062_p12, %p4056_p2 }
 0x4f8   : > { %4066 = shalt.err (!%p4063_p11)
}
 0x4f9   : > { %s4067_s4 = scalar_lea.hbm %s5761_s11, 4096  ;;  %s4071_s6 = scalar_lea.hbm %s5956_s12, 8192 }
 0x4fa   : > { %p4068_p8 = scmp.ne.s32.totalorder %s5761_s11, %s4067_s4  ;;  %p4072_p6 = scmp.lt.u32.totalorder %s5761_s11, %s5956_s12 }
 0x4fb   : > { %p4073_p3 = scmp.lt.u32.totalorder %s4071_s6, %s4067_s4  ;;  %p4075_p0 = scmp.lt.u32.totalorder %s4067_s4, %s5761_s11 }
 0x4fc   : > { %p4069_p10 = pnand %p4068_p8, %p5957_p1 }
 0x4fd   : > { %p4074_p5 = por %p4073_p3, %p4072_p6 }
 0x4fe   : > { %p4070_p13 = pneg %p4069_p10 }
 0x4ff   : > { %p4076_p7 = por %p4075_p0, %p4074_p5 }
 0x501   : > { %p4077_p2 = pnand %p4076_p7, %p4070_p13 }
 0x503   : > { %4080 = shalt.err (!%p4077_p2)
}
 0x504   : > { %s4212_s5 = smov 256   ;;  %s4213_s17 = smov 16  }
 0x505   : > { %3384 = dma.vmem_to_hbm [thread:$0]  (%p5957_p1), %s5764_s29, 4096, %s5761_s11, %s2949_s14, %s4212_s5, %s4212_s5, %s4213_s17  }
 0x506 PF: > { %s5958_s1 = sld [smem:[#allocation24_spill]]  ;;  %s5959_s26 = sld [smem:[#allocation18_spill]] }
 0x507   : > { %s5960_s9 = sld [smem:[#allocation31_spill]] }
 0x50c   : > { %p3404_p9 = scmp.ge.s32.totalorder %s5958_s1, 2  ;;  %s2978_s20 = sand.u32 1, %s5959_s26  }
 0x50d   : > { %p5961_p4 = scmp.ne.s32.totalorder %s5960_s9, 0  ;;  %s2979_s13 = scalar_lea.sflag [#allocation6], %s2978_s20 }
 0x50f   : > { %p3400_p12 = pnand %p3404_p9, %p5961_p4 }
 0x511   : > { %4146 = dma.done.wait (!%p3400_p12), %s2979_s13, 4096  }
 0x512   : > { %4148 = vsyncadd (!%p3400_p12), %s2979_s13, 4294963200  ;;  %s27_s30 = sadd.s32 1, %s5958_s1   ;;  %s5963_s24 = sld [smem:[#allocation17_spill]] }
 0x513   : > { %p5795_p11 = scmp.ge.s32.totalorder %s27_s30, 18   ;;  %s5964_s20 = sld [smem:[#allocation29_spill]] }
 0x514   : > { %s5965_s10 = sld [smem:[#allocation19_spill]]  ;;  %s5966_s23 = sld [smem:[#allocation30_spill]] }
 0x515   : > { %s5967_s26 = sld [smem:[#allocation23_spill]]  ;;  %s5968_s11 = sld [smem:[#allocation25_spill]] }
 0x516   : > { %s5969_s29 = sld [smem:[#allocation27_spill]]  ;;  %s5970_s14 = sld [smem:[#allocation28_spill]] }
 0x517   : > { %s5971_s18 = smov %s4155_s19  ;;  %s5973_s21 = smov %s4167_s22 }
 0x518   : > { %s5972_s19 = smov %s5963_s24  ;;  %s5975_s24 = smov %s4187_s27 }
 0x519   : > { %s5976_s25 = smov %s4191_s28  ;;  %26 = sbr.rel (!%p5795_p11) target bundleno = 19 (0x13), region = 141 }
 0x51a   : > { %s5974_s22 = smov %s5965_s10 }
 0x51b   : > { %s5977_s27 = smov %s5968_s11 }
 0x51c   : > { %s5978_s28 = smov %s5969_s29  ;;  %s5979_s29 = smov %s5970_s14 }
 0x520   :  { %2984 = vsyncpa [#allocation5], 1 }
 0x521   :  { %2986 = vsyncpa [#allocation5 + $0x1], 1 }
 0x522   :  { %2987 = vsyncpa [#allocation8], 1 }
 0x523   :  { %2989 = vsyncpa [#allocation8 + $0x1], 1 }
 0x524   :  { %2990 = vsyncpa [#allocation11], 1 }
 0x525   :  { %2992 = vsyncpa [#allocation11 + $0x1], 1 }
 0x526   :  { %2993 = vsyncpa [#allocation6], 1 }
 0x527   :  { %2995 = vsyncpa [#allocation6 + $0x1], 1 }

</bundles_post_ra>
